<compile_context>
chip_gen: v7x
topology: tpu7x:2x2x1
jax: 0.10.0
libtpu: 0.0.40
codegen_flags: <defaults>
</compile_context>

<pallas_src>
import functools

import jax
import jax.numpy as jnp
from jax.experimental import pallas as pl
from jax.experimental.pallas import tpu as pltpu


_CITYSCAPES_CLASS_WEIGHT = [0.8373, 0.918, 0.866, 1.0345, 1.0166, 0.9969, 0.9754,
                            1.0489, 0.8786, 1.0023, 0.9539, 0.9843, 1.1116, 0.9037,
                            1.0865, 1.0955, 1.0865, 1.1529, 1.0507]


# ----------------------------------------------------------------------------
# Kernel 1: softmax over classes + gather target nll / prob / class weight
#   logits_ref: (C, TILE_N)   target_ref: (1, TILE_N)   weight_ref: (C, 1)
#   outputs   : prob, nll, wt : (1, TILE_N) lane-dense
# ----------------------------------------------------------------------------
def _softmax_gather_kernel(logits_ref, target_ref, weight_ref,
                           prob_ref, nll_ref, wt_ref, *, ignore_index):
    logits = logits_ref[...].astype(jnp.float32)            # (C, TN)
    tgt = target_ref[...]                                    # (1, TN) int32
    wvec = weight_ref[...].astype(jnp.float32)               # (C, 1)

    c, tn = logits.shape
    valid = tgt != ignore_index                              # (1, TN) bool
    tgt_c = jnp.where(valid, tgt, 0)                         # masked target (as in reference)

    m = jnp.max(logits, axis=0, keepdims=True)               # (1, TN)
    shifted = logits - m                                     # (C, TN)
    s = jnp.sum(jnp.exp(shifted), axis=0, keepdims=True)     # (1, TN)

    onehot = jax.lax.broadcasted_iota(jnp.int32, (c, tn), 0) == tgt_c          # (C, TN)
    logit_t = jnp.sum(jnp.where(onehot, shifted, 0.0), axis=0, keepdims=True)  # (1, TN)
    w_t = jnp.sum(jnp.where(onehot, wvec, 0.0), axis=0, keepdims=True)         # (1, TN)

    nll = jnp.log(s) - logit_t                               # -log softmax(pred)[target]
    p_t = jnp.exp(-nll)                                      # softmax(pred)[target] (EUP, cheap)

    prob_ref[...] = jnp.where(valid, p_t, 1.0)               # masked_fill(~valid, 1)
    nll_ref[...] = nll
    wt_ref[...] = jnp.where(valid, w_t, 0.0)                 # ignored pixels contribute 0 weight


# ----------------------------------------------------------------------------
# Kernel 2: OHEM-masked weighted reduction -> per-tile partial sums
#   thr_ref: (1,1) f32 in SMEM;  nll/prob/wt: (1, TILE_N);  outputs: (1, 128) each
# ----------------------------------------------------------------------------
def _ohem_reduce_kernel(thr_ref, nll_ref, prob_ref, wt_ref, ploss_ref, pw_ref):
    thr = thr_ref[0, 0]                                      # scalar compare value from SMEM
    kept = prob_ref[...] <= thr                              # invalid pixels already have wt == 0
    w = jnp.where(kept, wt_ref[...], 0.0)
    ploss_ref[...] = jnp.broadcast_to(jnp.sum(nll_ref[...] * w), ploss_ref.shape)
    pw_ref[...] = jnp.broadcast_to(jnp.sum(w), pw_ref.shape)


# ----------------------------------------------------------------------------
# Wrapper reproducing OhemCrossEntropy2dTensor.forward
# ----------------------------------------------------------------------------
def ohem_cross_entropy(pred_nchw, target_bhw, *, ignore_index=255, thresh=0.7,
                       min_kept=10000, class_weight=None, tile_n=4096):
    b, c, h, w = pred_nchw.shape
    n = b * h * w
    tile_n = min(tile_n, n)
    # TODO(synk): pad N to a multiple of tile_n for ragged inputs instead of asserting.
    assert tile_n % 128 == 0 and n % tile_n == 0, "N = B*H*W must divide into 128-aligned tiles"
    num_tiles = n // tile_n

    # glue: NCHW -> (C, N) pixel-on-lanes, pixel order matching target.view(-1)
    logits = jnp.transpose(pred_nchw, (1, 0, 2, 3)).reshape(c, n).astype(jnp.float32)
    target = target_bhw.reshape(1, n).astype(jnp.int32)

    if class_weight is None:
        weight = jnp.ones((c, 1), jnp.float32)               # unweighted CE
    else:
        weight = jnp.asarray(class_weight, jnp.float32).reshape(c, 1)

    kernel1 = functools.partial(_softmax_gather_kernel, ignore_index=ignore_index)
    prob, nll, wt = pl.pallas_call(
        kernel1,
        out_shape=(jax.ShapeDtypeStruct((1, n), jnp.float32),) * 3,
        grid_spec=pltpu.PrefetchScalarGridSpec(
            num_scalar_prefetch=0,
            grid=(num_tiles,),
            in_specs=[pl.BlockSpec((c, tile_n), lambda i: (0, i)),
                      pl.BlockSpec((1, tile_n), lambda i: (0, i)),
                      pl.BlockSpec((c, 1), lambda i: (0, 0))],
            out_specs=[pl.BlockSpec((1, tile_n), lambda i: (0, i))] * 3,
        ),
        compiler_params=pltpu.CompilerParams(dimension_semantics=("parallel",)),
    )(logits, target, weight)

    # ---- glue: OHEM threshold selection -------------------------------------
    num_valid = jnp.sum(target != ignore_index)              # exact int count

    if min_kept > 0:
        k = min(int(min_kept), n)
        # k-th smallest target-prob via top_k of negated probs (no full sort).
        neg_topk, _ = jax.lax.top_k(-prob.reshape(-1), k)
        kth_val = -neg_topk[k - 1]
        thr_mined = jnp.maximum(kth_val, jnp.float32(thresh))
    else:
        thr_mined = jnp.float32(thresh)

    # reference: mining only when min_kept <= num_valid and num_valid > 0; otherwise
    # (the print-only branch) all valid pixels are kept -> threshold = +inf.
    do_mine = (num_valid > 0) & (num_valid >= min_kept)
    threshold = jnp.where(do_mine, thr_mined, jnp.float32(jnp.inf))
    thr_arr = threshold.reshape(1, 1).astype(jnp.float32)

    # ---- kernel 2: masked weighted reduction (per-tile partial sums) ---------
    lanes = 128
    ploss, pw = pl.pallas_call(
        _ohem_reduce_kernel,
        out_shape=(jax.ShapeDtypeStruct((1, lanes * num_tiles), jnp.float32),) * 2,
        grid_spec=pltpu.PrefetchScalarGridSpec(
            num_scalar_prefetch=0,
            grid=(num_tiles,),
            in_specs=[pl.BlockSpec(memory_space=pltpu.MemorySpace.SMEM),
                      pl.BlockSpec((1, tile_n), lambda i: (0, i)),
                      pl.BlockSpec((1, tile_n), lambda i: (0, i)),
                      pl.BlockSpec((1, tile_n), lambda i: (0, i))],
            out_specs=[pl.BlockSpec((1, lanes), lambda i: (0, i))] * 2,
        ),
        compiler_params=pltpu.CompilerParams(dimension_semantics=("parallel",)),
    )(thr_arr, nll, prob, wt)

    loss_sum = jnp.sum(ploss.reshape(num_tiles, lanes)[:, 0])
    kept_w = jnp.sum(pw.reshape(num_tiles, lanes)[:, 0])

    # CrossEntropyLoss 'mean' over kept (non-ignored) pixels; weighted mean if class
    # weights are supplied.  0/0 -> NaN when nothing is kept (matches torch semantics).
    return loss_sum / kept_w


# ----------------------------------------------------------------------------
# Pure-JAX reference for validation
# ----------------------------------------------------------------------------
def _reference_loss(pred, target, *, ignore_index, thresh, min_kept, class_weight=None):
    b, c, h, w = pred.shape
    n = b * h * w
    tgt = target.reshape(-1).astype(jnp.int32)
    valid = tgt != ignore_index
    tgt0 = jnp.where(valid, tgt, 0)
    num_valid = jnp.sum(valid)

    logits = jnp.transpose(pred, (0, 2, 3, 1)).reshape(n, c).astype(jnp.float32)
    prob = jax.nn.softmax(logits, axis=-1)
    idx = jnp.arange(n)
    mask_prob = jnp.where(valid, prob[idx, tgt0], 1.0)

    if min_kept > 0:
        k = min(int(min_kept), n)
        kth = jnp.sort(mask_prob)[k - 1]
        thr_mined = jnp.maximum(kth, jnp.float32(thresh))
    else:
        thr_mined = jnp.float32(thresh)
    do_mine = (num_valid > 0) & (num_valid >= min_kept)
    threshold = jnp.where(do_mine, thr_mined, jnp.float32(jnp.inf))

    kept = valid & (mask_prob <= threshold)
    nll = -jax.nn.log_softmax(logits, axis=-1)[idx, tgt0]
    wvec = (jnp.ones((c,), jnp.float32) if class_weight is None
            else jnp.asarray(class_weight, jnp.float32))
    wts = wvec[tgt0] * kept.astype(jnp.float32)
    return jnp.sum(nll * wts) / jnp.sum(wts)


if __name__ == "__main__":
    key = jax.random.PRNGKey(0)
    k1, k2, k3 = jax.random.split(key, 3)

    b, c, h, w = 2, 19, 64, 64        # 19 classes = size of the module's weight table
    pred = jax.random.normal(k1, (b, c, h, w), jnp.float32)
    target = jax.random.randint(k2, (b, h, w), 0, c).astype(jnp.int32)
    ignore_mask = jax.random.bernoulli(k3, 0.1, (b, h, w))
    target = jnp.where(ignore_mask, 255, target)

    # use_weight=False path (module default)
    loss = ohem_cross_entropy(pred, target, ignore_index=255, thresh=0.7, min_kept=2048)
    jax.block_until_ready(loss)
    ref = _reference_loss(pred, target, ignore_index=255, thresh=0.7, min_kept=2048)
    assert jnp.isfinite(loss), loss
    assert jnp.allclose(loss, ref, rtol=1e-3, atol=1e-3), (loss, ref)

    # use_weight=True path (Cityscapes class-weight table from the module)
    loss_w = ohem_cross_entropy(pred, target, ignore_index=255, thresh=0.7, min_kept=2048,
                                class_weight=_CITYSCAPES_CLASS_WEIGHT)
    jax.block_until_ready(loss_w)
    ref_w = _reference_loss(pred, target, ignore_index=255, thresh=0.7, min_kept=2048,
                            class_weight=_CITYSCAPES_CLASS_WEIGHT)
    assert jnp.isfinite(loss_w), loss_w
    assert jnp.allclose(loss_w, ref_w, rtol=1e-3, atol=1e-3), (loss_w, ref_w)

    print("KERNEL_OK")
</pallas_src>

<mosaic_0001>
module attributes {stable_mosaic.version = 11 : i64} {
  func.func @_softmax_gather_kernel(%arg0: i32, %arg1: memref<19x4096xf32, #tpu.memory_space<vmem>>, %arg2: memref<1x4096xi32, #tpu.memory_space<vmem>>, %arg3: memref<19x1xf32, #tpu.memory_space<vmem>>, %arg4: memref<1x4096xf32, #tpu.memory_space<vmem>>, %arg5: memref<1x4096xf32, #tpu.memory_space<vmem>>, %arg6: memref<1x4096xf32, #tpu.memory_space<vmem>>) attributes {dimension_semantics = [#tpu.dimension_semantics<parallel>], iteration_bounds = array<i64: 2>, scalar_prefetch = 0 : i64, scratch_operands = 0 : i64, tpu.core_type = #tpu.core_type<tc>, window_params = [{transform_indices = @transform_0, window_bounds = array<i64: 19, 4096>}, {transform_indices = @transform_1, window_bounds = array<i64: 1, 4096>}, {pipeline_mode = #tpu.pipeline_mode<synchronous>, transform_indices = @transform_2, window_bounds = array<i64: 19, 1>}, {transform_indices = @transform_3, window_bounds = array<i64: 1, 4096>}, {transform_indices = @transform_4, window_bounds = array<i64: 1, 4096>}, {transform_indices = @transform_5, window_bounds = array<i64: 1, 4096>}]} {
    %c0 = arith.constant 0 : index
    %c0_0 = arith.constant 0 : index
    %0 = vector.load %arg1[%c0, %c0_0] : memref<19x4096xf32, #tpu.memory_space<vmem>>, vector<19x4096xf32>
    %c0_1 = arith.constant 0 : index
    %c0_2 = arith.constant 0 : index
    %1 = vector.load %arg2[%c0_1, %c0_2] : memref<1x4096xi32, #tpu.memory_space<vmem>>, vector<1x4096xi32>
    %c0_3 = arith.constant 0 : index
    %c0_4 = arith.constant 0 : index
    %2 = vector.load %arg3[%c0_3, %c0_4] : memref<19x1xf32, #tpu.memory_space<vmem>>, vector<19x1xf32>
    %c255_i32 = arith.constant 255 : i32
    %3 = vector.broadcast %c255_i32 : i32 to vector<1x4096xi32>
    %4 = arith.cmpi ne, %1, %3 : vector<1x4096xi32>
    %c0_i32 = arith.constant 0 : i32
    %5 = vector.broadcast %c0_i32 : i32 to vector<1x4096xi32>
    %6 = arith.select %4, %1, %5 : vector<1x4096xi1>, vector<1x4096xi32>
    %cst = arith.constant dense<0xFF800000> : vector<4096xf32>
    %7 = vector.multi_reduction <maximumf>, %0, %cst [0] : vector<19x4096xf32> to vector<4096xf32>
    %8 = vector.shape_cast %7 : vector<4096xf32> to vector<1x4096xf32>
    %9 = vector.broadcast %8 : vector<1x4096xf32> to vector<19x4096xf32>
    %10 = arith.subf %0, %9 : vector<19x4096xf32>
    %11 = math.exp %10 : vector<19x4096xf32>
    %cst_5 = arith.constant dense<0.000000e+00> : vector<4096xf32>
    %12 = vector.multi_reduction <add>, %11, %cst_5 [0] : vector<19x4096xf32> to vector<4096xf32>
    %13 = vector.shape_cast %12 : vector<4096xf32> to vector<1x4096xf32>
    %14 = tpu.iota {dimensions = array<i32: 0>} : vector<19x4096xi32>
    %15 = vector.broadcast %6 : vector<1x4096xi32> to vector<19x4096xi32>
    %16 = arith.cmpi eq, %14, %15 : vector<19x4096xi32>
    %cst_6 = arith.constant 0.000000e+00 : f32
    %17 = vector.broadcast %cst_6 : f32 to vector<19x4096xf32>
    %18 = arith.select %16, %10, %17 : vector<19x4096xi1>, vector<19x4096xf32>
    %cst_7 = arith.constant dense<0.000000e+00> : vector<4096xf32>
    %19 = vector.multi_reduction <add>, %18, %cst_7 [0] : vector<19x4096xf32> to vector<4096xf32>
    %20 = vector.shape_cast %19 : vector<4096xf32> to vector<1x4096xf32>
    %cst_8 = arith.constant 0.000000e+00 : f32
    %21 = vector.shape_cast %2 : vector<19x1xf32> to vector<19x1xf32>
    %22 = vector.broadcast %21 : vector<19x1xf32> to vector<19x4096xf32>
    %23 = vector.broadcast %cst_8 : f32 to vector<19x4096xf32>
    %24 = arith.select %16, %22, %23 : vector<19x4096xi1>, vector<19x4096xf32>
    %cst_9 = arith.constant dense<0.000000e+00> : vector<4096xf32>
    %25 = vector.multi_reduction <add>, %24, %cst_9 [0] : vector<19x4096xf32> to vector<4096xf32>
    %26 = vector.shape_cast %25 : vector<4096xf32> to vector<1x4096xf32>
    %27 = math.log %13 : vector<1x4096xf32>
    %28 = arith.subf %27, %20 : vector<1x4096xf32>
    %cst_10 = arith.constant 0.000000e+00 : f32
    %29 = vector.broadcast %cst_10 : f32 to vector<1x4096xf32>
    %30 = arith.subf %29, %28 : vector<1x4096xf32>
    %31 = math.exp %30 : vector<1x4096xf32>
    %cst_11 = arith.constant 1.000000e+00 : f32
    %32 = vector.broadcast %cst_11 : f32 to vector<1x4096xf32>
    %33 = arith.select %4, %31, %32 : vector<1x4096xi1>, vector<1x4096xf32>
    %c0_12 = arith.constant 0 : index
    %c0_13 = arith.constant 0 : index
    %34 = vector.load %arg4[%c0_12, %c0_13] : memref<1x4096xf32, #tpu.memory_space<vmem>>, vector<1x4096xf32>
    tpu.vector_store %arg4[%c0_12, %c0_13], %33 {strides = array<i32>} : memref<1x4096xf32, #tpu.memory_space<vmem>>, vector<1x4096xf32>,
    %c0_14 = arith.constant 0 : index
    %c0_15 = arith.constant 0 : index
    %35 = vector.load %arg5[%c0_14, %c0_15] : memref<1x4096xf32, #tpu.memory_space<vmem>>, vector<1x4096xf32>
    tpu.vector_store %arg5[%c0_14, %c0_15], %28 {strides = array<i32>} : memref<1x4096xf32, #tpu.memory_space<vmem>>, vector<1x4096xf32>,
    %cst_16 = arith.constant 0.000000e+00 : f32
    %36 = vector.broadcast %cst_16 : f32 to vector<1x4096xf32>
    %37 = arith.select %4, %26, %36 : vector<1x4096xi1>, vector<1x4096xf32>
    %c0_17 = arith.constant 0 : index
    %c0_18 = arith.constant 0 : index
    %38 = vector.load %arg6[%c0_17, %c0_18] : memref<1x4096xf32, #tpu.memory_space<vmem>>, vector<1x4096xf32>
    tpu.vector_store %arg6[%c0_17, %c0_18], %37 {strides = array<i32>} : memref<1x4096xf32, #tpu.memory_space<vmem>>, vector<1x4096xf32>,
    return
  }
  func.func @transform_0(%arg0: i32) -> (i32, i32) {
    %c0_i32 = arith.constant 0 : i32
    %c0_i32_0 = arith.constant 0 : i32
    return %c0_i32, %arg0 : i32, i32
  }
  func.func @transform_1(%arg0: i32) -> (i32, i32) {
    %c0_i32 = arith.constant 0 : i32
    %c0_i32_0 = arith.constant 0 : i32
    return %c0_i32, %arg0 : i32, i32
  }
  func.func @transform_2(%arg0: i32) -> (i32, i32) {
    %c0_i32 = arith.constant 0 : i32
    %c0_i32_0 = arith.constant 0 : i32
    %c0_i32_1 = arith.constant 0 : i32
    return %c0_i32, %c0_i32_0 : i32, i32
  }
  func.func @transform_3(%arg0: i32) -> (i32, i32) {
    %c0_i32 = arith.constant 0 : i32
    %c0_i32_0 = arith.constant 0 : i32
    return %c0_i32, %arg0 : i32, i32
  }
  func.func @transform_4(%arg0: i32) -> (i32, i32) {
    %c0_i32 = arith.constant 0 : i32
    %c0_i32_0 = arith.constant 0 : i32
    return %c0_i32, %arg0 : i32, i32
  }
  func.func @transform_5(%arg0: i32) -> (i32, i32) {
    %c0_i32 = arith.constant 0 : i32
    %c0_i32_0 = arith.constant 0 : i32
    return %c0_i32, %arg0 : i32, i32
  }
}

</mosaic_0001>

<bundles_post_ra>
// kernel: tpu_custom_call.1
= control target key start
LH: loop header
LB: loop body
LE: loop exit
PB: predicated region body
PF: predicated region fallthrough
CT: control target
= control target key end

     0   :  { %s8207_s0 = inlined_call_operand.hbm [shape: f32[19,8192], index: 0, kind: input, shape index: {}]   ;;  %s8208_s1 = inlined_call_operand.hbm [shape: s32[1,8192], index: 1, kind: input, shape index: {}]   ;;  %s8209_s2 = inlined_call_operand.vmem [shape: f32[19,1], index: 2, kind: input, shape index: {}]   ;;  %s8210_s3 = inlined_call_operand.hbm [shape: f32[1,8192], index: 3, kind: output, shape index: {0}]   ;;  %s8211_s4 = inlined_call_operand.hbm [shape: f32[1,8192], index: 4, kind: output, shape index: {1}]   ;;  %s8212_s5 = inlined_call_operand.hbm [shape: f32[1,8192], index: 5, kind: output, shape index: {2}]  }
   0x1   :  { %8573 = sst [smem:[#allocation182_spill]] %s8207_s0 }
   0x2   :  { %11 = vsyncpa [#allocation3], 0 }
   0x3   :  { %13 = vsyncpa [#allocation3 + $0x1], 0 }
   0x4   :  { %14 = vsyncpa [#allocation6], 0 }
   0x5   :  { %16 = vsyncpa [#allocation6 + $0x1], 0 }
   0x6   :  { %17 = vsyncpa [#allocation4], 0 }
   0x7   :  { %19 = vsyncpa [#allocation4 + $0x1], 0 }
   0x8   :  { %20 = vsyncpa [#allocation9], 0 }
   0x9   :  { %22 = vsyncpa [#allocation9 + $0x1], 0  ;;  %s4057_s18 = smov 0   ;;  %s4059_s19 = smov 0  }
   0xa   :  { %s4061_s20 = smov 0   ;;  %s4063_s21 = smov 0  }
   0xb LB: > { %s4078_s22 = sadd.s32 4294967295, %s4015_s21   ;;  %s8214_s23 = sadd.s32 4294967294, %s4015_s21   ;;  %s4015_s21 = sphi %s4063_s21, %s9829_s21   ;;  %s4011_s20 = sphi %s4061_s20, %s9828_s20   ;;  %s4007_s19 = sphi %s4059_s19, %s9827_s19   ;;  %s4003_s18 = sphi %s4057_s18, %s9826_s18  }
   0xc   : > { %s4082_s24 = sadd.s32 1, %s4015_s21   ;;  %s35_s25 = sadd.s32 1, %s4011_s20 }
   0xd   : > { %s32_s26 = ssub.s32 %s4015_s21, %s4082_s24  ;;  %p42_p0 = scmp.ne.s32.totalorder %s4011_s20, %s4007_s19 }
   0xe   : > { %p33_p1 = scmp.eq.s32.totalorder %s32_s26, 0  ;;  %p43_p2 = scmp.eq.s32.totalorder %s4015_s21, 0 }
   0xf   : > { %p48_p3 = scmp.ne.s32.totalorder %s4007_s19, %s4003_s18  ;;  %p49_p4 = scmp.eq.s32.totalorder %s4078_s22, 0 }
  0x10   : > { %s4094_s27 = scalar_select %p33_p1, %s4011_s20, %s35_s25  }
  0x11   : > { %p44_p5 = por %p43_p2, %p42_p0  ;;  %p4096_p6 = por %p49_p4, %p48_p3 }
  0x12   : > { %p119_p7 = scmp.eq.s32.totalorder %s4078_s22, 1  ;;  %p125_p8 = scmp.eq.s32.totalorder %s8214_s23, 1 }
  0x13   : > { %s8574_s28 = scalar_select %p4096_p6, 1, 0 }
  0x14   : > { %p3464_p10 = scmp.lt.s32.totalorder %s4015_s21, 2  ;;  %p4105_p11 = por %p119_p7, %p42_p0 }
  0x15   : > { %p4109_p12 = por %p125_p8, %p48_p3  ;;  %s4114_s6 = sand.u32 1, %s4011_s20  }
  0x16   : > { %s8575_s29 = scalar_select %p4105_p11, 1, 0 }
  0x17   : > { %s8576_s30 = scalar_select %p4109_p12, 1, 0 }
  0x18   : > { %s3430_s7 = sshll.u32 %s4015_s21, 12  ;;  %s3435_s8 = smul.u32 768, %s4114_s6 }
  0x19   : > { %s8577_s0 = sld [smem:[#allocation182_spill]]  ;;  %p4123_p13 = pnand %p3464_p10, %p44_p5 }
  0x1a   : > { %s204_s13 = scalar_lea.vmem [#allocation2], %s3435_s8  ;;  %s201_s15 = scalar_lea.sflag [#allocation3], %s4114_s6 }
  0x1b   : > { %s211_s14 = sshll.u32 %s204_s13, 4  ;;  %p3827_p2 = pneg %p4123_p13  ;;  %s4127_s14 = int_to_ptr.vmem [resolvable:$true] %s211_s14 }
  0x1f   : > { %s4121_s11 = scalar_lea.hbm %s8577_s0, %s3430_s7  ;;  %s3830_s26 = scalar_lea.hbm %s8577_s0, 24576 }
  0x20   : > { %s3825_s16 = scalar_lea.hbm %s4121_s11, 12288  ;;  %p3831_p5 = scmp.lt.u32.totalorder %s4121_s11, %s8577_s0 }
  0x21   : > { %p3826_p1 = scmp.ne.s32.totalorder %s4121_s11, %s3825_s16  ;;  %p3832_p7 = scmp.lt.u32.totalorder %s3830_s26, %s3825_s16 }
  0x22   : > { %p3834_p10 = scmp.lt.u32.totalorder %s3825_s16, %s4121_s11 }
  0x23   : > { %p3828_p3 = pnand %p3827_p2, %p3826_p1  ;;  %p3833_p8 = por %p3832_p7, %p3831_p5 }
  0x25   : > { %p3829_p4 = pneg %p3828_p3  ;;  %p3835_p9 = por %p3834_p10, %p3833_p8 }
  0x27   : > { %p3836_p0 = pnand %p3835_p9, %p3829_p4 }
  0x29   : > { %3839 = shalt.err (!%p3836_p0)
}
  0x2a   : > { %s3840_s8 = scalar_lea.vmem %s4127_s14, 12288  ;;  %s4017_s10 = smov [#allocation2]  }
  0x2b   : > { %p3841_p1 = scmp.ne.s32.totalorder %s4127_s14, %s3840_s8  ;;  %s3845_s13 = sshll.u32 %s4017_s10, 4  ;;  %s3846_s13 = int_to_ptr.vmem [resolvable:$false] %s3845_s13 }
  0x2c   : > { %s3847_s17 = scalar_lea.vmem %s3846_s13, 24576  ;;  %p3848_p11 = scmp.lt.s32.totalorder %s4127_s14, %s3846_s13 }
  0x2d   : > { %p3843_p3 = pnand %p3841_p1, %p3827_p2  ;;  %p3849_p5 = scmp.lt.s32.totalorder %s3847_s17, %s3840_s8 }
  0x2f   : > { %p3844_p12 = pneg %p3843_p3  ;;  %p3850_p7 = por %p3849_p5, %p3848_p11 }
  0x31   : > { %p3851_p8 = pnand %p3850_p7, %p3844_p12 }
  0x33   : > { %3854 = shalt.err (!%p3851_p8)
}
  0x34   : > { %s4018_s16 = smov 8192   ;;  %s4019_s25 = smov 4096  }
  0x35   : > { %s4020_s26 = smov 256   ;;  %p238_p9 = scmp.lt.s32.totalorder %s4015_s21, 3 }
  0x36   : > { %3450 = dma.hbm_to_vmem [thread:$0]  (!%p4123_p13), %s4121_s11, 12288, %s4127_s14, %s201_s15, %s4018_s16, %s4019_s25, %s4020_s26  }
  0x37   : > { %s3411_s7 = sshll.u32 %s4114_s6, 5  ;;  %s3431_s9 = sshll.u32 %s4015_s21, 9 }
  0x38   : > { %p8579_p11 = scmp.ge.s32.totalorder %s4015_s21, 1  ;;  %s4170_s17 = scalar_lea.hbm %s8208_s1, %s3431_s9 }
  0x39   : > { %s225_s23 = scalar_lea.vmem [#allocation5], %s3411_s7  ;;  %s222_s11 = scalar_lea.sflag [#allocation6], %s4114_s6 }
  0x3a   : > { %p4163_p12 = pnand %p8579_p11, %p238_p9  ;;  %s233_s0 = sshll.u32 %s225_s23, 4  ;;  %s234_s0 = int_to_ptr.vmem [resolvable:$true] %s233_s0 }
  0x3b   : > { %s3855_s14 = scalar_lea.hbm %s4170_s17, 512  ;;  %s3860_s25 = scalar_lea.hbm %s8208_s1, 1024 }
  0x3c   : > { %s8580_s8 = scalar_select %p4163_p12, 1, 0 }
  0x3d   : > { %p3856_p0 = scmp.ne.s32.totalorder %s4170_s17, %s3855_s14  ;;  %p3861_p1 = scmp.lt.u32.totalorder %s4170_s17, %s8208_s1 }
  0x3e   : > { %p3862_p3 = scmp.lt.u32.totalorder %s3860_s25, %s3855_s14  ;;  %p3864_p7 = scmp.lt.u32.totalorder %s3855_s14, %s4170_s17 }
  0x3f   : > { %p3858_p4 = pnand %p3856_p0, %p3827_p2 }
  0x40   : > { %p3863_p5 = por %p3862_p3, %p3861_p1 }
  0x41   : > { %p3859_p10 = pneg %p3858_p4 }
  0x42   : > { %p3865_p8 = por %p3864_p7, %p3863_p5 }
  0x44   : > { %p3866_p9 = pnand %p3865_p8, %p3859_p10 }
  0x46   : > { %3869 = shalt.err (!%p3866_p9)
}
  0x47   : > { %s3870_s23 = scalar_lea.vmem %s234_s0, 512  ;;  %s4021_s6 = smov [#allocation5]  }
  0x48   : > { %p3871_p11 = scmp.ne.s32.totalorder %s234_s0, %s3870_s23  ;;  %s3875_s7 = sshll.u32 %s4021_s6, 4  ;;  %s3876_s7 = int_to_ptr.vmem [resolvable:$false] %s3875_s7 }
  0x49   : > { %s3877_s10 = scalar_lea.vmem %s3876_s7, 1024  ;;  %p3878_p6 = scmp.lt.s32.totalorder %s234_s0, %s3876_s7 }
  0x4a   : > { %p3873_p0 = pnand %p3871_p11, %p3827_p2  ;;  %p3879_p12 = scmp.lt.s32.totalorder %s3877_s10, %s3870_s23 }
  0x4c   : > { %p3874_p4 = pneg %p3873_p0  ;;  %p3880_p1 = por %p3879_p12, %p3878_p6 }
  0x4e   : > { %p3881_p3 = pnand %p3880_p1, %p3874_p4 }
  0x50   : > { %3884 = shalt.err (!%p3881_p3)
}
  0x51   : > { %3453 = dma.hbm_to_vmem [thread:$0]  (!%p4123_p13), %s4170_s17, 512, %s234_s0, %s222_s11  }
  0x52   : > { %p8581_p10 = scmp.ne.s32.totalorder %s8580_s8, 0 }
  0x54   : > { %242 = sbr.rel (%p8581_p10) target bundleno = 767 (0x2ff), region = 32 }
  0x5b   : > { %s4195_s13 = sand.u32 1, %s4007_s19   ;;  %p8582_p6 = scmp.ne.s32.totalorder %s8574_s28, 0 }
  0x5c   : > { %s3436_s14 = smul.u32 768, %s4195_s13  ;;  %s245_s15 = scalar_lea.sflag [#allocation3], %s4195_s13 }
  0x5e   : > { %s4199_s16 = scalar_lea.vmem [#allocation2], %s3436_s14 }
  0x5f   : > { %3986 = dma.done.wait (%p8582_p6), %s245_s15, 12288  }
  0x60   : > { %3988 = vsyncadd (%p8582_p6), %s245_s15, 4294955008  ;;  %s4206_s0 = sshll.u32 %s4195_s13, 5  ;;  %s254_s12 = scalar_lea.sflag [#allocation6], %s4195_s13 }
  0x61   : > { %s4210_s8 = scalar_lea.vmem [#allocation5], %s4206_s0 }
  0x62   : > { %3990 = dma.done.wait (%p8582_p6), %s254_s12, 512  }
  0x63   : > { %3992 = vsyncadd (%p8582_p6), %s254_s12, 4294966784  ;;  %v4022_v0 = vmov 0   ;;  %v404_v1 = vld [vmem:[%s8209_s2] sm:$0xff]  ;;  %v406_v2 = vld [vmem:[%s8209_s2 + $0x10] sm:$0x7]  ;;  %vm8486_vm0 = vcmask 1042432  }
  0x64   : > { %3503 = vset.pattern.permute.xlu0 %v4022_v0  ;;  %3504 = vset.pattern.permute.xlu1 %v4022_v0  ;;  %v405_v3 = vld [vmem:[%s8209_s2 + $0x8] sm:$0xff]  ;;  %v4226_v4 = vld [vmem:[%s4199_s16] sm:$0xff]  ;;  %v4232_v6 = vld [vmem:[%s4199_s16 + $0x10] sm:$0xff]  ;;  %s7241_s23 = scalar_lea.vmem [#allocation8], %s4206_s0  ;;  %s3204_s6 = sand.u32 1, %s4078_s22  }
  0x65   : > { %1894 = vperm.xlu0 %3503, %v404_v1   ;;  %1904 = vperm.xlu1 %3504, %v406_v2   ;;  %8583 = vst [vmem:[#allocation15_spill] sm:$0xff] %v4226_v4  ;;  %v4229_v5 = vld [vmem:[%s4199_s16 + $0x8] sm:$0xff]  ;;  %8585 = vst [vmem:[#allocation17_spill] sm:$0xff] %v4232_v6  ;;  %v4235_v7 = vld [vmem:[%s4199_s16 + $0x18] sm:$0xff]  ;;  %s7409_s7 = sshll.u32 %s4078_s22, 9  ;;  %s3238_s10 = sshll.u32 %s7241_s23, 4  ;;  %s7476_s10 = int_to_ptr.vmem [resolvable:$true] %s3238_s10 }
  0x66   : > { %8584 = vst [vmem:[#allocation16_spill] sm:$0xff] %v4229_v5  ;;  %8586 = vst [vmem:[#allocation18_spill] sm:$0xff] %v4235_v7  ;;  %v4238_v8 = vld [vmem:[%s4199_s16 + $0x100] sm:$0xff]  ;;  %v4241_v9 = vld [vmem:[%s4199_s16 + $0x108] sm:$0xff]  ;;  %s7536_s12 = scalar_lea.sflag [#allocation9], %s3204_s6  ;;  %p9636_p2 = scmp.ne.s32.totalorder %s8575_s29, 0 }
  0x67   : > { %8587 = vst [vmem:[#allocation19_spill] sm:$0xff] %v4238_v8  ;;  %8588 = vst [vmem:[#allocation20_spill] sm:$0xff] %v4241_v9  ;;  %v4244_v10 = vld [vmem:[%s4199_s16 + $0x110] sm:$0xff]  ;;  %v4247_v11 = vld [vmem:[%s4199_s16 + $0x118] sm:$0xff]  ;;  %v415_v50 = vmax.f32 %v4226_v4, %v4238_v8  ;;  %s4024_s17 = smov [#allocation8]  }
  0x68   : > { %8589 = vst [vmem:[#allocation21_spill] sm:$0xff] %v4244_v10  ;;  %8590 = vst [vmem:[#allocation22_spill] sm:$0xff] %v4247_v11  ;;  %v4250_v12 = vld [vmem:[%s4199_s16 + $0x20] sm:$0xff]  ;;  %v4253_v13 = vld [vmem:[%s4199_s16 + $0x28] sm:$0xff]  ;;  %s3889_s11 = sshll.u32 %s4024_s17, 4  ;;  %s3890_s11 = int_to_ptr.vmem [resolvable:$false] %s3889_s11 }
  0x69   : > { %1899 = vperm.xlu0 %3503, %v405_v3   ;;  %8591 = vst [vmem:[#allocation23_spill] sm:$0xff] %v4250_v12  ;;  %8592 = vst [vmem:[#allocation24_spill] sm:$0xff] %v4253_v13  ;;  %v4256_v14 = vld [vmem:[%s4199_s16 + $0x30] sm:$0xff]  ;;  %v4259_v15 = vld [vmem:[%s4199_s16 + $0x38] sm:$0xff]  ;;  %s3891_s25 = scalar_lea.vmem %s3890_s11, 1024  ;;  %p3892_p7 = scmp.lt.s32.totalorder %s7476_s10, %s3890_s11 }
  0x6a   : > { %8593 = vst [vmem:[#allocation25_spill] sm:$0xff] %v4256_v14  ;;  %8594 = vst [vmem:[#allocation26_spill] sm:$0xff] %v4259_v15  ;;  %v4262_v16 = vld [vmem:[%s4199_s16 + $0x120] sm:$0xff]  ;;  %v4265_v17 = vld [vmem:[%s4199_s16 + $0x128] sm:$0xff] }
  0x6b   : > { %8595 = vst [vmem:[#allocation27_spill] sm:$0xff] %v4262_v16  ;;  %8596 = vst [vmem:[#allocation28_spill] sm:$0xff] %v4265_v17  ;;  %v4268_v18 = vld [vmem:[%s4199_s16 + $0x130] sm:$0xff]  ;;  %v4271_v19 = vld [vmem:[%s4199_s16 + $0x138] sm:$0xff] }
  0x6c   : > { %8597 = vst [vmem:[#allocation29_spill] sm:$0xff] %v4268_v18  ;;  %8598 = vst [vmem:[#allocation30_spill] sm:$0xff] %v4271_v19  ;;  %v4274_v20 = vld [vmem:[%s4199_s16 + $0x40] sm:$0xff]  ;;  %v4277_v21 = vld [vmem:[%s4199_s16 + $0x48] sm:$0xff] }
  0x6d   : > { %8599 = vst [vmem:[#allocation31_spill] sm:$0xff] %v4274_v20  ;;  %8600 = vst [vmem:[#allocation32_spill] sm:$0xff] %v4277_v21  ;;  %v4280_v22 = vld [vmem:[%s4199_s16 + $0x50] sm:$0xff]  ;;  %v4283_v23 = vld [vmem:[%s4199_s16 + $0x58] sm:$0xff] }
  0x6e   : > { %8601 = vst [vmem:[#allocation33_spill] sm:$0xff] %v4280_v22  ;;  %8602 = vst [vmem:[#allocation34_spill] sm:$0xff] %v4283_v23  ;;  %v4286_v24 = vld [vmem:[%s4199_s16 + $0x140] sm:$0xff]  ;;  %v4289_v25 = vld [vmem:[%s4199_s16 + $0x148] sm:$0xff] }
  0x6f   : > { %8603 = vst [vmem:[#allocation35_spill] sm:$0xff] %v4286_v24  ;;  %8604 = vst [vmem:[#allocation36_spill] sm:$0xff] %v4289_v25  ;;  %v4292_v26 = vld [vmem:[%s4199_s16 + $0x150] sm:$0xff]  ;;  %v4295_v27 = vld [vmem:[%s4199_s16 + $0x158] sm:$0xff] }
  0x70   : > { %8605 = vst [vmem:[#allocation37_spill] sm:$0xff] %v4292_v26  ;;  %8606 = vst [vmem:[#allocation38_spill] sm:$0xff] %v4295_v27  ;;  %v4298_v28 = vld [vmem:[%s4199_s16 + $0x60] sm:$0xff]  ;;  %v4301_v29 = vld [vmem:[%s4199_s16 + $0x68] sm:$0xff] }
  0x71   : > { %8607 = vst [vmem:[#allocation39_spill] sm:$0xff] %v4298_v28  ;;  %8608 = vst [vmem:[#allocation40_spill] sm:$0xff] %v4301_v29  ;;  %v4304_v30 = vld [vmem:[%s4199_s16 + $0x70] sm:$0xff]  ;;  %v4307_v31 = vld [vmem:[%s4199_s16 + $0x78] sm:$0xff] }
  0x72   : > { %8609 = vst [vmem:[#allocation41_spill] sm:$0xff] %v4304_v30  ;;  %8610 = vst [vmem:[#allocation42_spill] sm:$0xff] %v4307_v31  ;;  %v4310_v32 = vld [vmem:[%s4199_s16 + $0x160] sm:$0xff]  ;;  %v4313_v33 = vld [vmem:[%s4199_s16 + $0x168] sm:$0xff] }
  0x73   : > { %8611 = vst [vmem:[#allocation43_spill] sm:$0xff] %v4310_v32  ;;  %8612 = vst [vmem:[#allocation44_spill] sm:$0xff] %v4313_v33  ;;  %v4316_v34 = vld [vmem:[%s4199_s16 + $0x170] sm:$0xff]  ;;  %v4319_v35 = vld [vmem:[%s4199_s16 + $0x178] sm:$0xff] }
  0x74   : > { %8613 = vst [vmem:[#allocation45_spill] sm:$0xff] %v4316_v34  ;;  %8614 = vst [vmem:[#allocation46_spill] sm:$0xff] %v4319_v35  ;;  %v4322_v36 = vld [vmem:[%s4199_s16 + $0x80] sm:$0xff]  ;;  %v4325_v37 = vld [vmem:[%s4199_s16 + $0x88] sm:$0xff] }
  0x75   : > { %8615 = vst [vmem:[#allocation47_spill] sm:$0xff] %v4322_v36  ;;  %8616 = vst [vmem:[#allocation48_spill] sm:$0xff] %v4325_v37  ;;  %v4328_v38 = vld [vmem:[%s4199_s16 + $0x90] sm:$0xff]  ;;  %v4331_v39 = vld [vmem:[%s4199_s16 + $0x180] sm:$0xff] }
  0x76   : > { %8617 = vst [vmem:[#allocation49_spill] sm:$0xff] %v4328_v38  ;;  %8618 = vst [vmem:[#allocation50_spill] sm:$0xff] %v4331_v39  ;;  %v4334_v40 = vld [vmem:[%s4199_s16 + $0x188] sm:$0xff]  ;;  %v4337_v41 = vld [vmem:[%s4199_s16 + $0x190] sm:$0xff] }
  0x77   : > { %8619 = vst [vmem:[#allocation51_spill] sm:$0xff] %v4334_v40  ;;  %8620 = vst [vmem:[#allocation52_spill] sm:$0xff] %v4337_v41  ;;  %v4340_v42 = vld [vmem:[%s4199_s16 + $0x98] sm:$0xff]  ;;  %v4343_v43 = vld [vmem:[%s4199_s16 + $0xa0] sm:$0xff] }
  0x78   : > { %8621 = vst [vmem:[#allocation53_spill] sm:$0xff] %v4340_v42  ;;  %8622 = vst [vmem:[#allocation54_spill] sm:$0xff] %v4343_v43  ;;  %v4346_v44 = vld [vmem:[%s4199_s16 + $0xa8] sm:$0xff]  ;;  %v4349_v45 = vld [vmem:[%s4199_s16 + $0xb0] sm:$0xff] }
  0x79   : > { %8623 = vst [vmem:[#allocation55_spill] sm:$0xff] %v4346_v44  ;;  %8624 = vst [vmem:[#allocation56_spill] sm:$0xff] %v4349_v45  ;;  %v4352_v46 = vld [vmem:[%s4199_s16 + $0x198] sm:$0xff]  ;;  %v4355_v47 = vld [vmem:[%s4199_s16 + $0x1a0] sm:$0xff] }
  0x7a   : > { %8625 = vst [vmem:[#allocation57_spill] sm:$0xff] %v4352_v46  ;;  %8626 = vst [vmem:[#allocation58_spill] sm:$0xff] %v4355_v47  ;;  %v4358_v48 = vld [vmem:[%s4199_s16 + $0x1a8] sm:$0xff]  ;;  %v4361_v49 = vld [vmem:[%s4199_s16 + $0x1b0] sm:$0xff] }
  0x7b   : > { %8627 = vst [vmem:[#allocation59_spill] sm:$0xff] %v4358_v48  ;;  %8628 = vst [vmem:[#allocation60_spill] sm:$0xff] %v4361_v49  ;;  %v4372_v54 = vld [vmem:[%s4199_s16 + $0xb8] sm:$0xff]  ;;  %v4375_v55 = vld [vmem:[%s4199_s16 + $0xc0] sm:$0xff] }
  0x7c   : > { %8629 = vst [vmem:[#allocation61_spill] sm:$0xff] %v4372_v54  ;;  %8630 = vst [vmem:[#allocation62_spill] sm:$0xff] %v4375_v55  ;;  %v4378_v56 = vld [vmem:[%s4199_s16 + $0xc8] sm:$0xff]  ;;  %v4381_v57 = vld [vmem:[%s4199_s16 + $0xd0] sm:$0xff] }
  0x7d   : > { %8631 = vst [vmem:[#allocation63_spill] sm:$0xff] %v4378_v56  ;;  %8632 = vst [vmem:[#allocation64_spill] sm:$0xff] %v4381_v57  ;;  %v4384_v58 = vld [vmem:[%s4199_s16 + $0x1b8] sm:$0xff]  ;;  %v4387_v59 = vld [vmem:[%s4199_s16 + $0x1c0] sm:$0xff] }
  0x7e   : > { %8633 = vst [vmem:[#allocation65_spill] sm:$0xff] %v4384_v58  ;;  %8634 = vst [vmem:[#allocation66_spill] sm:$0xff] %v4387_v59  ;;  %v4390_v60 = vld [vmem:[%s4199_s16 + $0x200] sm:$0x7]  ;;  %v4401_v1 = vld [vmem:[%s4199_s16 + $0xd8] sm:$0xff] }
  0x7f   : > { %8635 = vst [vmem:[#allocation67_spill] sm:$0xff] %v4390_v60  ;;  %8636 = vst [vmem:[#allocation68_spill] sm:$0xff] %v4401_v1  ;;  %v4404_v2 = vld [vmem:[%s4199_s16 + $0xe0] sm:$0xff]  ;;  %v4407_v3 = vld [vmem:[%s4199_s16 + $0x1c8] sm:$0xff]  ;;  %v417_v63 = vsel %vm8486_vm0, %v4390_v60, -inf }
  0x80   : > { %8637 = vst [vmem:[#allocation69_spill] sm:$0xff] %v4404_v2  ;;  %8638 = vst [vmem:[#allocation70_spill] sm:$0xff] %v4407_v3  ;;  %v4410_v53 = vld [vmem:[%s4199_s16 + $0x1d0] sm:$0xff]  ;;  %v4413_v61 = vld [vmem:[%s4199_s16 + $0x1d8] sm:$0xff]  ;;  %v418_v60 = vmax.f32 %v415_v50, %v417_v63 }
  0x81   : > { %8639 = vst [vmem:[#allocation71_spill] sm:$0xff] %v4410_v53  ;;  %8640 = vst [vmem:[#allocation72_spill] sm:$0xff] %v4413_v61  ;;  %v4424_v51 = vld [vmem:[%s4199_s16 + $0xe8] sm:$0xff]  ;;  %v4427_v8 = vld [vmem:[%s4199_s16 + $0xf0] sm:$0xff] }
  0x82   : > { %8641 = vst [vmem:[#allocation73_spill] sm:$0xff] %v4424_v51  ;;  %8642 = vst [vmem:[#allocation74_spill] sm:$0xff] %v4427_v8  ;;  %v4430_v4 = vld [vmem:[%s4199_s16 + $0x1e0] sm:$0xff]  ;;  %v4433_v19 = vld [vmem:[%s4199_s16 + $0x1e8] sm:$0xff] }
  0x83   : > { %8643 = vst [vmem:[#allocation75_spill] sm:$0xff] %v4430_v4  ;;  %8644 = vst [vmem:[#allocation76_spill] sm:$0xff] %v4433_v19  ;;  %v4436_v62 = vld [vmem:[%s4199_s16 + $0x1f0] sm:$0xff]  ;;  %v4447_v23 = vld [vmem:[%s4199_s16 + $0xf8] sm:$0xff] }
  0x84   : > { %8645 = vst [vmem:[#allocation77_spill] sm:$0xff] %v4436_v62  ;;  %8646 = vst [vmem:[#allocation78_spill] sm:$0xff] %v4447_v23  ;;  %v4450_v26 = vld [vmem:[%s4199_s16 + $0x1f8] sm:$0xff]  ;;  %v4453_v22 = vld [vmem:[%s4199_s16 + $0x208] sm:$0x7] }
  0x85   : > { %8647 = vst [vmem:[#allocation79_spill] sm:$0xff] %v4450_v26  ;;  %8648 = vst [vmem:[#allocation80_spill] sm:$0xff] %v4453_v22  ;;  %v4456_v25 = vld [vmem:[%s4199_s16 + $0x210] sm:$0x7]  ;;  %v4459_v0 = vld [vmem:[%s4210_s8] sm:$0xff]  ;;  %v426_v53 = vsel %vm8486_vm0, %v4453_v22, -inf  ;;  %v8667_v26 = vmax.f32 %v4229_v5, %v4241_v9 }
  0x86   : > { %8649 = vst [vmem:[#allocation81_spill] sm:$0xff] %v4456_v25  ;;  %8650 = vst [vmem:[#allocation82_spill] sm:$0xff] %v4459_v0  ;;  %v4470_v31 = vld [vmem:[%s4199_s16 + $0x218] sm:$0x7]  ;;  %v4473_v34 = vld [vmem:[%s4199_s16 + $0x220] sm:$0x7] }
  0x87   : > { %8651 = vst [vmem:[#allocation83_spill] sm:$0xff] %v4470_v31  ;;  %8652 = vst [vmem:[#allocation84_spill] sm:$0xff] %v4473_v34  ;;  %v4476_v30 = vld [vmem:[%s4210_s8 + $0x8] sm:$0xff]  ;;  %v4490_v38 = vld [vmem:[%s4199_s16 + $0x230] sm:$0x7]  ;;  %vm8485_vm1 = vcmp.ne.s32.totalorder %v4459_v0, 255  ;;  %v427_v23 = vmax.f32 %v8667_v26, %v426_v53  ;;  %v8670_v26 = vmax.f32 %v4250_v12, %v4262_v16 }
  0x88   : > { %8653 = vst [vmem:[#allocation85_spill] sm:$0xff] %v4476_v30  ;;  %v4487_v41 = vld [vmem:[%s4199_s16 + $0x228] sm:$0x7]  ;;  %8655 = vst [vmem:[#allocation87_spill] sm:$0xff] %v4490_v38  ;;  %v4493_v40 = vld [vmem:[%s4210_s8 + $0x10] sm:$0xff]  ;;  %vm8484_vm2 = vcmp.ne.s32.totalorder %v4476_v30, 255 }
  0x89   : > { %8654 = vst [vmem:[#allocation86_spill] sm:$0xff] %v4487_v41  ;;  %8656 = vst [vmem:[#allocation88_spill] sm:$0xff] %v4493_v40  ;;  %v4504_v49 = vld [vmem:[%s4199_s16 + $0x238] sm:$0x7]  ;;  %v4507_v45 = vld [vmem:[%s4199_s16 + $0x240] sm:$0x7] }
  0x8a   : > { %8657 = vst [vmem:[#allocation89_spill] sm:$0xff] %v4504_v49  ;;  %8658 = vst [vmem:[#allocation90_spill] sm:$0xff] %v4507_v45  ;;  %v4510_v48 = vld [vmem:[%s4210_s8 + $0x18] sm:$0xff]  ;;  %v4518_v27 = vld [vmem:[%s4199_s16 + $0x248] sm:$0x7]  ;;  %vm8483_vm3 = vcmp.ne.s32.totalorder %v4493_v40, 255 }
  0x8b   : > { %8659 = vst [vmem:[#allocation91_spill] sm:$0xff] %v4510_v48  ;;  %8660 = vst [vmem:[#allocation92_spill] sm:$0xff] %v4518_v27  ;;  %v4521_v35 = vld [vmem:[%s4199_s16 + $0x250] sm:$0x7]  ;;  %v4531_v63 = vld [vmem:[%s4199_s16 + $0x258] sm:$0x7] }
  0x8c   : > { %8661 = vst [vmem:[#allocation93_spill] sm:$0xff] %v4521_v35  ;;  %8662 = vst [vmem:[#allocation94_spill] sm:$0xff] %v4531_v63  ;;  %v435_v59 = vsel %vm8486_vm0, %v4456_v25, -inf  ;;  %v444_v52 = vsel %vm8486_vm0, %v4470_v31, -inf  ;;  %v4541_v22 = vld [vmem:[%s4199_s16 + $0x260] sm:$0x7] }
  0x8d   : > { %8663 = vst [vmem:[#allocation95_spill] sm:$0xff] %v4541_v22  ;;  %vm8482_vm4 = vcmp.ne.s32.totalorder %v4510_v48, 255  ;;  %v4547_v50 = vsel %vm8485_vm1, %v4459_v0, 0  ;;  %v453_v57 = vsel %vm8486_vm0, %v4473_v34, -inf  ;;  %v462_v25 = vsel %vm8486_vm0, %v4487_v41, -inf  ;;  %s3885_s8 = scalar_lea.vmem %s7476_s10, 512 }
  0x8e   : > { %8664 = vst [vmem:[#allocation96_spill] sm:$0xff] %v4547_v50  ;;  %v4554_v62 = vld [vmem:[%s4199_s16 + $0x268] sm:$0x7]  ;;  %v4559_v4 = vsel %vm8484_vm2, %v4476_v30, 0  ;;  %v419_v31 = vrot.slane %v418_v60, 4  ;;  %v471_v0 = vsel %vm8486_vm0, %v4490_v38, -inf  ;;  %v8668_v50 = vmax.f32 %v4232_v6, %v4244_v10  ;;  %p3886_p13 = scmp.ne.s32.totalorder %s7476_s10, %s3885_s8  ;;  %p3893_p8 = scmp.lt.s32.totalorder %s3891_s25, %s3885_s8 }
  0x8f   : > { %8665 = vst [vmem:[#allocation97_spill] sm:$0xff] %v4554_v62  ;;  %8666 = vst [vmem:[#allocation98_spill] sm:$0xff] %v4559_v4  ;;  %v8669_v41 = vmax.f32 %v4235_v7, %v4247_v11  ;;  %v480_v30 = vsel %vm8486_vm0, %v4504_v49, -inf  ;;  %v489_v4 = vsel %vm8486_vm0, %v4507_v45, -inf  ;;  %v454_v53 = vmax.f32 %v8670_v26, %v453_v57 }
  0x90   : > { %v436_v34 = vmax.f32 %v8668_v50, %v435_v59  ;;  %v8671_v38 = vmax.f32 %v4253_v13, %v4265_v17  ;;  %v498_v50 = vsel %vm8486_vm0, %v4518_v27, -inf  ;;  %v516_v45 = vsel %vm8486_vm0, %v4531_v63, -inf  ;;  %v4612_v27 = vld [vmem:[%s4199_s16 + $0x270] sm:$0x7]  ;;  %v8694_v13 = vld [vmem:[#allocation46_spill] sm:$0xff]  ;;  %p3887_p12 = pnand %p3886_p13, %p9636_p2  ;;  %p3894_p9 = por %p3893_p8, %p3892_p7 }
  0x91   : > { %v445_v8 = vmax.f32 %v8669_v41, %v444_v52  ;;  %v507_v41 = vsel %vm8486_vm0, %v4521_v35, -inf  ;;  %v8672_v52 = vmax.f32 %v4256_v14, %v4268_v18  ;;  %v525_v57 = vsel %vm8486_vm0, %v4541_v22, -inf  ;;  %8678 = vst [vmem:[#allocation101_spill] sm:$0xff] %v4612_v27 }
  0x92   : > { %v463_v59 = vmax.f32 %v8671_v38, %v462_v25  ;;  %v534_v26 = vsel %vm8486_vm0, %v4554_v62, -inf  ;;  %v4598_v25 = vsel %vm8483_vm3, %v4493_v40, 0  ;;  %v4603_v38 = vsel %vm8482_vm4, %v4510_v48, 0  ;;  %v4615_v62 = vld [vmem:[%s4199_s16 + $0x278] sm:$0x7]  ;;  %v8682_v48 = vld [vmem:[#allocation33_spill] sm:$0xff]  ;;  %p3888_p5 = pneg %p3887_p12 }
  0x93   : > { %v472_v49 = vmax.f32 %v8672_v52, %v471_v0  ;;  %8673 = vst [vmem:[#allocation99_spill] sm:$0xff] %v4598_v25  ;;  %8674 = vst [vmem:[#allocation100_spill] sm:$0xff] %v4603_v38  ;;  %v8675_v0 = vld [vmem:[#allocation30_spill] sm:$0xff]  ;;  %v8677_v22 = vmax.f32 %v4274_v20, %v4286_v24  ;;  %v428_v18 = vrot.slane %v427_v23, 4  ;;  %v437_v40 = vrot.slane %v436_v34, 4  ;;  %v8680_v25 = vld [vmem:[#allocation36_spill] sm:$0xff] }
  0x94   : > { %v8676_v52 = vmax.f32 %v4259_v15, %v8675_v0  ;;  %8679 = vst [vmem:[#allocation102_spill] sm:$0xff] %v4615_v62  ;;  %v8681_v17 = vmax.f32 %v4277_v21, %v8680_v25  ;;  %v8683_v38 = vld [vmem:[#allocation37_spill] sm:$0xff]  ;;  %v420_v0 = vmax.f32 %v418_v60, %v419_v31  ;;  %v8689_v20 = vmax.f32 %v4301_v29, %v4313_v33  ;;  %p3895_p11 = pnand %p3894_p9, %p3888_p5 }
  0x95   : > { %v490_v35 = vmax.f32 %v8677_v22, %v489_v4  ;;  %v8684_v11 = vmax.f32 %v8682_v48, %v8683_v38  ;;  %v8688_v4 = vmax.f32 %v4298_v28, %v4310_v32  ;;  %v446_v14 = vrot.slane %v445_v8, 4  ;;  %v8691_v29 = vld [vmem:[#allocation45_spill] sm:$0xff]  ;;  %v8693_v48 = vld [vmem:[#allocation42_spill] sm:$0xff] }
  0x96   : > { %v481_v63 = vmax.f32 %v8676_v52, %v480_v30  ;;  %v499_v16 = vmax.f32 %v8681_v17, %v498_v50  ;;  %v8685_v30 = vld [vmem:[#allocation34_spill] sm:$0xff]  ;;  %v535_v15 = vmax.f32 %v8689_v20, %v534_v26  ;;  %v455_v25 = vrot.slane %v454_v53, 4 }
  0x97   : > { %v508_v10 = vmax.f32 %v8684_v11, %v507_v41  ;;  %v8686_v52 = vld [vmem:[#allocation38_spill] sm:$0xff]  ;;  %v526_v22 = vmax.f32 %v8688_v4, %v525_v57  ;;  %v464_v17 = vrot.slane %v463_v59, 4  ;;  %v473_v50 = vrot.slane %v472_v49, 4 }
  0x98   : > { %v8687_v9 = vmax.f32 %v8685_v30, %v8686_v52  ;;  %v482_v21 = vrot.slane %v481_v63, 4  ;;  %v491_v38 = vrot.slane %v490_v35, 4  ;;  %v543_v11 = vsel %vm8486_vm0, %v4612_v27, -inf  ;;  %v8690_v52 = vld [vmem:[#allocation41_spill] sm:$0xff] }
  0x99   : > { %v429_v31 = vmax.f32 %v427_v23, %v428_v18  ;;  %v500_v60 = vrot.slane %v499_v16, 4  ;;  %v509_v41 = vrot.slane %v508_v10, 4  ;;  %v421_v57 = vrot.slane %v420_v0, 2 }
  0x9a   : > { %v517_v24 = vmax.f32 %v8687_v9, %v516_v45  ;;  %v552_v9 = vsel %vm8486_vm0, %v4615_v62, -inf  ;;  %v438_v45 = vmax.f32 %v436_v34, %v437_v40  ;;  %v527_v33 = vrot.slane %v526_v22, 4 }
  0x9b   : > { %v536_v20 = vrot.slane %v535_v15, 4  ;;  %v447_v26 = vmax.f32 %v445_v8, %v446_v14  ;;  %v456_v32 = vmax.f32 %v454_v53, %v455_v25  ;;  %v8692_v28 = vmax.f32 %v8690_v52, %v8691_v29 }
  0x9c   : > { %v518_v4 = vrot.slane %v517_v24, 4  ;;  %v8695_v27 = vmax.f32 %v8693_v48, %v8694_v13  ;;  %v465_v7 = vmax.f32 %v463_v59, %v464_v17  ;;  %v474_v62 = vmax.f32 %v472_v49, %v473_v50 }
  0x9d   : > { %v544_v30 = vmax.f32 %v8692_v28, %v543_v11  ;;  %v483_v18 = vmax.f32 %v481_v63, %v482_v21  ;;  %v492_v23 = vmax.f32 %v490_v35, %v491_v38  ;;  %v430_v34 = vrot.slane %v429_v31, 2 }
  0x9e   : > { %v553_v12 = vmax.f32 %v8695_v27, %v552_v9  ;;  %v439_v40 = vrot.slane %v438_v45, 2  ;;  %v501_v6 = vmax.f32 %v499_v16, %v500_v60  ;;  %v510_v5 = vmax.f32 %v508_v10, %v509_v41 }
  0x9f   : > { %v422_v19 = vmax.f32 %v420_v0, %v421_v57  ;;  %v519_v51 = vmax.f32 %v517_v24, %v518_v4  ;;  %v528_v8 = vmax.f32 %v526_v22, %v527_v33  ;;  %v537_v14 = vmax.f32 %v535_v15, %v536_v20 }
  0xa0   : > { %v448_v53 = vrot.slane %v447_v26, 2  ;;  %v457_v25 = vrot.slane %v456_v32, 2  ;;  %v545_v29 = vrot.slane %v544_v30, 4  ;;  %v554_v28 = vrot.slane %v553_v12, 4 }
  0xa1   : > { %v466_v11 = vrot.slane %v465_v7, 2  ;;  %v475_v52 = vrot.slane %v474_v62, 2  ;;  %v484_v13 = vrot.slane %v483_v18, 2  ;;  %v493_v27 = vrot.slane %v492_v23, 2 }
  0xa2   : > { %v431_v59 = vmax.f32 %v429_v31, %v430_v34  ;;  %v440_v49 = vmax.f32 %v438_v45, %v439_v40  ;;  %v502_v21 = vrot.slane %v501_v6, 2  ;;  %v511_v35 = vrot.slane %v510_v5, 2  ;;  %v4645_v40 = vld [vmem:[%s4199_s16 + $0x280] sm:$0x7] }
  0xa3   : > { %v423_v63 = vrot.slane %v422_v19, 1  ;;  %v520_v38 = vrot.slane %v519_v51, 2  ;;  %v529_v16 = vrot.slane %v528_v8, 2  ;;  %v538_v10 = vrot.slane %v537_v14, 2  ;;  %8696 = vst [vmem:[#allocation103_spill] sm:$0xff] %v4645_v40 }
  0xa4   : > { %v449_v0 = vmax.f32 %v447_v26, %v448_v53  ;;  %v458_v24 = vmax.f32 %v456_v32, %v457_v25  ;;  %v546_v15 = vmax.f32 %v544_v30, %v545_v29  ;;  %v555_v33 = vmax.f32 %v553_v12, %v554_v28  ;;  %v4657_v53 = vld [vmem:[%s4199_s16 + $0x290] sm:$0x7]  ;;  %v4660_v25 = vld [vmem:[%s4199_s16 + $0x298] sm:$0x7] }
  0xa5   : > { %v467_v22 = vmax.f32 %v465_v7, %v466_v11  ;;  %v476_v17 = vmax.f32 %v474_v62, %v475_v52  ;;  %v485_v50 = vmax.f32 %v483_v18, %v484_v13  ;;  %v494_v9 = vmax.f32 %v492_v23, %v493_v27  ;;  %v4652_v52 = vld [vmem:[%s4199_s16 + $0x288] sm:$0x7]  ;;  %8698 = vst [vmem:[#allocation105_spill] sm:$0xff] %v4657_v53 }
  0xa6   : > { %v432_v60 = vrot.slane %v431_v59, 1  ;;  %v441_v41 = vrot.slane %v440_v49, 1  ;;  %v503_v57 = vmax.f32 %v501_v6, %v502_v21  ;;  %v512_v31 = vmax.f32 %v510_v5, %v511_v35  ;;  %8697 = vst [vmem:[#allocation104_spill] sm:$0xff] %v4652_v52  ;;  %8699 = vst [vmem:[#allocation106_spill] sm:$0xff] %v4660_v25  ;;  %v4670_v21 = vld [vmem:[%s4199_s16 + $0x2a8] sm:$0x7] }
  0xa7   : > { %v4642_v45 = vmax.f32 %v422_v19, %v423_v63  ;;  %v521_v4 = vmax.f32 %v519_v51, %v520_v38  ;;  %v530_v20 = vmax.f32 %v528_v8, %v529_v16  ;;  %v539_v34 = vmax.f32 %v537_v14, %v538_v10  ;;  %8701 = vst [vmem:[#allocation108_spill] sm:$0xff] %v4670_v21  ;;  %v4673_v35 = vld [vmem:[%s4199_s16 + $0x2b0] sm:$0x7] }
  0xa8   : > { %v450_v26 = vrot.slane %v449_v0, 1  ;;  %v459_v32 = vrot.slane %v458_v24, 1  ;;  %v547_v12 = vrot.slane %v546_v15, 2  ;;  %v556_v7 = vrot.slane %v555_v33, 2  ;;  %8702 = vst [vmem:[#allocation109_spill] sm:$0xff] %v4673_v35 }
  0xa9   : > { %v468_v13 = vrot.slane %v467_v22, 1  ;;  %v477_v29 = vrot.slane %v476_v17, 1  ;;  %v486_v62 = vrot.slane %v485_v50, 1  ;;  %v495_v30 = vrot.slane %v494_v9, 1 }
  0xaa   : > { %v4647_v5 = vmax.f32 %v431_v59, %v432_v60  ;;  %v4649_v6 = vmax.f32 %v440_v49, %v441_v41  ;;  %v504_v19 = vrot.slane %v503_v57, 1  ;;  %v513_v51 = vrot.slane %v512_v31, 1  ;;  %v4667_v49 = vld [vmem:[%s4199_s16 + $0x2a0] sm:$0x7] }
  0xab   : > { %v522_v18 = vrot.slane %v521_v4, 1  ;;  %v531_v23 = vrot.slane %v530_v20, 1  ;;  %v540_v8 = vrot.slane %v539_v34, 1  ;;  %v561_v14 = vsel %vm8486_vm0, %v4645_v40, -inf  ;;  %8700 = vst [vmem:[#allocation107_spill] sm:$0xff] %v4667_v49  ;;  %v8721_v40 = vld [vmem:[#allocation56_spill] sm:$0xff] }
  0xac   : > { %v4662_v28 = vmax.f32 %v449_v0, %v450_v26  ;;  %v4664_v11 = vmax.f32 %v458_v24, %v459_v32  ;;  %v548_v27 = vmax.f32 %v546_v15, %v547_v12  ;;  %v557_v59 = vmax.f32 %v555_v33, %v556_v7  ;;  %v4684_v0 = vld [vmem:[%s4199_s16 + $0x2b8] sm:$0x7]  ;;  %v4687_v24 = vld [vmem:[%s4199_s16 + $0x2c0] sm:$0x7] }
  0xad   : > { %v4675_v63 = vmax.f32 %v467_v22, %v468_v13  ;;  %v4677_v38 = vmax.f32 %v476_v17, %v477_v29  ;;  %v4679_v16 = vmax.f32 %v485_v50, %v486_v62  ;;  %v4681_v10 = vmax.f32 %v494_v9, %v495_v30  ;;  %8703 = vst [vmem:[#allocation110_spill] sm:$0xff] %v4684_v0  ;;  %v4699_v50 = vld [vmem:[%s4199_s16 + $0x2c8] sm:$0x7]  ;;  %v4702_v9 = vld [vmem:[%s4199_s16 + $0x2d0] sm:$0x7] }
  0xae   : > { %8704 = vst [vmem:[#allocation111_spill] sm:$0xff] %v4687_v24  ;;  %v4689_v15 = vmax.f32 %v503_v57, %v504_v19  ;;  %v4691_v33 = vmax.f32 %v512_v31, %v513_v51  ;;  %v8705_v22 = vmax.f32 %v4322_v36, %v4331_v39  ;;  %v570_v17 = vsel %vm8486_vm0, %v4652_v52, -inf  ;;  %8706 = vst [vmem:[#allocation112_spill] sm:$0xff] %v4699_v50  ;;  %v4713_v31 = vld [vmem:[%s4199_s16 + $0x2d8] sm:$0x7] }
  0xaf   : > { %8707 = vst [vmem:[#allocation113_spill] sm:$0xff] %v4702_v9  ;;  %v4704_v41 = vmax.f32 %v521_v4, %v522_v18  ;;  %v4706_v26 = vmax.f32 %v530_v20, %v531_v23  ;;  %v4708_v32 = vmax.f32 %v539_v34, %v540_v8  ;;  %v579_v57 = vsel %vm8486_vm0, %v4657_v53, -inf  ;;  %8708 = vst [vmem:[#allocation114_spill] sm:$0xff] %v4713_v31  ;;  %v4720_v29 = vld [vmem:[%s4199_s16 + $0x2e0] sm:$0x7]  ;;  %v8712_v23 = vld [vmem:[#allocation49_spill] sm:$0xff] }
  0xb0   : > { %v562_v60 = vmax.f32 %v8705_v22, %v561_v14  ;;  %v549_v12 = vrot.slane %v548_v27, 1  ;;  %v558_v7 = vrot.slane %v557_v59, 1  ;;  %v588_v13 = vsel %vm8486_vm0, %v4660_v25, -inf  ;;  %8709 = vst [vmem:[#allocation115_spill] sm:$0xff] %v4720_v29  ;;  %v8710_v20 = vld [vmem:[#allocation51_spill] sm:$0xff]  ;;  %v8713_v8 = vld [vmem:[#allocation52_spill] sm:$0xff] }
  0xb1   : > { %v597_v4 = vsel %vm8486_vm0, %v4667_v49, -inf  ;;  %v8711_v34 = vmax.f32 %v4325_v37, %v8710_v20  ;;  %v606_v30 = vsel %vm8486_vm0, %v4670_v21, -inf  ;;  %v615_v19 = vsel %vm8486_vm0, %v4673_v35, -inf  ;;  %v4742_v21 = vld [vmem:[%s4199_s16 + $0x2f0] sm:$0x7] }
  0xb2   : > { %v624_v51 = vsel %vm8486_vm0, %v4684_v0, -inf  ;;  %v563_v18 = vrot.slane %v562_v60, 4  ;;  %v8714_v14 = vmax.f32 %v8712_v23, %v8713_v8  ;;  %v633_v49 = vsel %vm8486_vm0, %v4687_v24, -inf  ;;  %8716 = vst [vmem:[#allocation117_spill] sm:$0xff] %v4742_v21  ;;  %v8722_v8 = vld [vmem:[#allocation60_spill] sm:$0xff] }
  0xb3   : > { %v571_v62 = vmax.f32 %v8711_v34, %v570_v17  ;;  %v642_v17 = vsel %vm8486_vm0, %v4699_v50, -inf  ;;  %v4739_v34 = vld [vmem:[%s4199_s16 + $0x2e8] sm:$0x7]  ;;  %v8717_v35 = vmax.f32 %v4340_v42, %v4352_v46  ;;  %v8718_v25 = vmax.f32 %v4343_v43, %v4355_v47  ;;  %v8719_v50 = vld [vmem:[#allocation59_spill] sm:$0xff] }
  0xb4   : > { %v580_v22 = vmax.f32 %v8714_v14, %v579_v57  ;;  %8715 = vst [vmem:[#allocation116_spill] sm:$0xff] %v4739_v34  ;;  %v651_v57 = vsel %vm8486_vm0, %v4702_v9, -inf  ;;  %v660_v14 = vsel %vm8486_vm0, %v4713_v31, -inf  ;;  %v8720_v24 = vmax.f32 %v4346_v44, %v8719_v50  ;;  %v8725_v31 = vld [vmem:[#allocation66_spill] sm:$0xff] }
  0xb5   : > { %v589_v0 = vmax.f32 %v8717_v35, %v588_v13  ;;  %v598_v53 = vmax.f32 %v8718_v25, %v597_v4  ;;  %v8723_v20 = vmax.f32 %v8721_v40, %v8722_v8  ;;  %v8724_v35 = vmax.f32 %v4372_v54, %v4384_v58  ;;  %v8730_v58 = vld [vmem:[#allocation71_spill] sm:$0xff] }
  0xb6   : > { %v607_v52 = vmax.f32 %v8720_v24, %v606_v30  ;;  %v669_v25 = vsel %vm8486_vm0, %v4720_v29, -inf  ;;  %v4765_v4 = vmax.f32 %v548_v27, %v549_v12  ;;  %v4767_v9 = vmax.f32 %v557_v59, %v558_v7 }
  0xb7   : > { %v616_v39 = vmax.f32 %v8723_v20, %v615_v19  ;;  %v625_v13 = vmax.f32 %v8724_v35, %v624_v51  ;;  %v8726_v47 = vmax.f32 %v4375_v55, %v8725_v31  ;;  %v8727_v24 = vmax.f32 %v4378_v56, %v4407_v3  ;;  %v4776_v20 = vld [vmem:[%s4199_s16 + $0x2f8] sm:$0x7]  ;;  %v8729_v19 = vld [vmem:[#allocation64_spill] sm:$0xff]  ;;  %s7474_s16 = scalar_lea.hbm %s8211_s4, %s7409_s7 }
  0xb8   : > { %8728 = vst [vmem:[#allocation118_spill] sm:$0xff] %v4776_v20  ;;  %v8731_v51 = vmax.f32 %v8729_v19, %v8730_v58  ;;  %v8732_v27 = vmax.f32 %v4401_v1, %v4413_v61  ;;  %v678_v59 = vsel %vm8486_vm0, %v4739_v34, -inf  ;;  %v581_v7 = vrot.slane %v580_v22, 4  ;;  %v8735_v61 = vld [vmem:[#allocation73_spill] sm:$0xff]  ;;  %v8738_v34 = vld [vmem:[#allocation74_spill] sm:$0xff] }
  0xb9   : > { %v634_v50 = vmax.f32 %v8726_v47, %v633_v49  ;;  %v643_v30 = vmax.f32 %v8727_v24, %v642_v17  ;;  %v687_v47 = vsel %vm8486_vm0, %v4742_v21, -inf  ;;  %v572_v49 = vrot.slane %v571_v62, 4  ;;  %v8733_v17 = vld [vmem:[#allocation75_spill] sm:$0xff]  ;;  %v8739_v1 = vld [vmem:[#allocation77_spill] sm:$0xff] }
  0xba   : > { %v652_v35 = vmax.f32 %v8731_v51, %v651_v57  ;;  %v661_v12 = vmax.f32 %v8732_v27, %v660_v14  ;;  %v590_v29 = vrot.slane %v589_v0, 4  ;;  %v8734_v24 = vmax.f32 %v4404_v2, %v8733_v17  ;;  %v8736_v14 = vld [vmem:[#allocation76_spill] sm:$0xff] }
  0xbb   : > { %v599_v31 = vrot.slane %v598_v53, 4  ;;  %v608_v58 = vrot.slane %v607_v52, 4  ;;  %v617_v57 = vrot.slane %v616_v39, 4  ;;  %v626_v51 = vrot.slane %v625_v13, 4 }
  0xbc   : > { %v670_v3 = vmax.f32 %v8734_v24, %v669_v25  ;;  %v635_v8 = vrot.slane %v634_v50, 4  ;;  %v8737_v27 = vmax.f32 %v8735_v61, %v8736_v14  ;;  %v8740_v19 = vmax.f32 %v8738_v34, %v8739_v1  ;;  %v8741_v14 = vld [vmem:[#allocation78_spill] sm:$0xff] }
  0xbd   : > { %v696_v56 = vsel %vm8486_vm0, %v4776_v20, -inf  ;;  %v564_v55 = vmax.f32 %v562_v60, %v563_v18  ;;  %v644_v54 = vrot.slane %v643_v30, 4  ;;  %v653_v17 = vrot.slane %v652_v35, 4 }
  0xbe   : > { %v679_v46 = vmax.f32 %v8737_v27, %v678_v59  ;;  %v688_v21 = vmax.f32 %v8740_v19, %v687_v47  ;;  %v662_v25 = vrot.slane %v661_v12, 4  ;;  %v573_v24 = vmax.f32 %v571_v62, %v572_v49  ;;  %v8742_v59 = vld [vmem:[#allocation79_spill] sm:$0xff] }
  0xbf   : > { %v582_v2 = vmax.f32 %v580_v22, %v581_v7  ;;  %v591_v40 = vmax.f32 %v589_v0, %v590_v29  ;;  %v671_v44 = vrot.slane %v670_v3, 4  ;;  %v600_v43 = vmax.f32 %v598_v53, %v599_v31 }
  0xc0   : > { %v609_v42 = vmax.f32 %v607_v52, %v608_v58  ;;  %v618_v23 = vmax.f32 %v616_v39, %v617_v57  ;;  %v8743_v27 = vmax.f32 %v8741_v14, %v8742_v59  ;;  %v627_v1 = vmax.f32 %v625_v13, %v626_v51 }
  0xc1   : > { %v636_v19 = vmax.f32 %v634_v50, %v635_v8  ;;  %v680_v47 = vrot.slane %v679_v46, 4  ;;  %v689_v34 = vrot.slane %v688_v21, 4  ;;  %v565_v20 = vrot.slane %v564_v55, 2 }
  0xc2   : > { %v697_v61 = vmax.f32 %v8743_v27, %v696_v56  ;;  %v645_v60 = vmax.f32 %v643_v30, %v644_v54  ;;  %v654_v18 = vmax.f32 %v652_v35, %v653_v17  ;;  %v663_v37 = vmax.f32 %v661_v12, %v662_v25 }
  0xc3   : > { %v574_v36 = vrot.slane %v573_v24, 2  ;;  %v583_v62 = vrot.slane %v582_v2, 2  ;;  %v592_v22 = vrot.slane %v591_v40, 2  ;;  %v672_v0 = vmax.f32 %v670_v3, %v671_v44 }
  0xc4   : > { %v601_v29 = vrot.slane %v600_v43, 2  ;;  %v610_v53 = vrot.slane %v609_v42, 2  ;;  %v619_v58 = vrot.slane %v618_v23, 2  ;;  %v698_v39 = vrot.slane %v697_v61, 4 }
  0xc5   : > { %v628_v52 = vrot.slane %v627_v1, 2  ;;  %v637_v31 = vrot.slane %v636_v19, 2  ;;  %v681_v49 = vmax.f32 %v679_v46, %v680_v47  ;;  %v690_v56 = vmax.f32 %v688_v21, %v689_v34 }
  0xc6   : > { %v566_v13 = vmax.f32 %v564_v55, %v565_v20  ;;  %v646_v50 = vrot.slane %v645_v60, 2  ;;  %v655_v8 = vrot.slane %v654_v18, 2  ;;  %v664_v7 = vrot.slane %v663_v37, 2 }
  0xc7   : > { %v575_v57 = vmax.f32 %v573_v24, %v574_v36  ;;  %v584_v54 = vmax.f32 %v582_v2, %v583_v62  ;;  %v593_v30 = vmax.f32 %v591_v40, %v592_v22  ;;  %v673_v35 = vrot.slane %v672_v0, 2 }
  0xc8   : > { %v602_v12 = vmax.f32 %v600_v43, %v601_v29  ;;  %v611_v17 = vmax.f32 %v609_v42, %v610_v53  ;;  %v620_v51 = vmax.f32 %v618_v23, %v619_v58  ;;  %v699_v44 = vmax.f32 %v697_v61, %v698_v39 }
  0xc9   : > { %v629_v3 = vmax.f32 %v627_v1, %v628_v52  ;;  %v638_v25 = vmax.f32 %v636_v19, %v637_v31  ;;  %v682_v27 = vrot.slane %v681_v49, 2  ;;  %v691_v59 = vrot.slane %v690_v56, 2 }
  0xca   : > { %v567_v14 = vrot.slane %v566_v13, 1  ;;  %v647_v48 = vmax.f32 %v645_v60, %v646_v50  ;;  %v656_v46 = vmax.f32 %v654_v18, %v655_v8  ;;  %v665_v21 = vmax.f32 %v663_v37, %v664_v7  ;;  %v8744_v50 = vld [vmem:[#allocation15_spill] sm:$0xff] }
  0xcb   : > { %v576_v55 = vrot.slane %v575_v57, 1  ;;  %v585_v34 = vrot.slane %v584_v54, 1  ;;  %v594_v20 = vrot.slane %v593_v30, 1  ;;  %v674_v47 = vmax.f32 %v672_v0, %v673_v35 }
  0xcc   : > { %v603_v36 = vrot.slane %v602_v12, 1  ;;  %v612_v2 = vrot.slane %v611_v17, 1  ;;  %v621_v40 = vrot.slane %v620_v51, 1  ;;  %v700_v24 = vrot.slane %v699_v44, 2 }
  0xcd   : > { %v630_v43 = vrot.slane %v629_v3, 1  ;;  %v639_v42 = vrot.slane %v638_v25, 1  ;;  %v683_v23 = vmax.f32 %v681_v49, %v682_v27  ;;  %v692_v61 = vmax.f32 %v690_v56, %v691_v59  ;;  %v8756_v27 = vld [vmem:[#allocation25_spill] sm:$0xff] }
  0xce   : > { %v4802_v1 = vmax.f32 %v566_v13, %v567_v14  ;;  %v648_v19 = vrot.slane %v647_v48, 1  ;;  %v657_v62 = vrot.slane %v656_v46, 1  ;;  %v666_v22 = vrot.slane %v665_v21, 1 }
  0xcf   : > { %v4804_v60 = vmax.f32 %v575_v57, %v576_v55  ;;  %v4806_v37 = vmax.f32 %v584_v54, %v585_v34  ;;  %v4808_v18 = vmax.f32 %v593_v30, %v594_v20  ;;  %v675_v0 = vrot.slane %v674_v47, 1  ;;  %v8746_v57 = vld [vmem:[#allocation16_spill] sm:$0xff]  ;;  %v8748_v30 = vld [vmem:[#allocation17_spill] sm:$0xff]  ;;  %v8758_v34 = vld [vmem:[#allocation26_spill] sm:$0xff] }
  0xd0   : > { %v4810_v29 = vmax.f32 %v602_v12, %v603_v36  ;;  %v4812_v53 = vmax.f32 %v611_v17, %v612_v2  ;;  %v4814_v58 = vmax.f32 %v620_v51, %v621_v40  ;;  %v701_v39 = vmax.f32 %v699_v44, %v700_v24  ;;  %v8752_v51 = vld [vmem:[#allocation23_spill] sm:$0xff]  ;;  %v8762_v2 = vld [vmem:[#allocation32_spill] sm:$0xff]  ;;  %v8764_v24 = vld [vmem:[#allocation33_spill] sm:$0xff] }
  0xd1   : > { %v4816_v59 = vmax.f32 %v629_v3, %v630_v43  ;;  %v4818_v14 = vmax.f32 %v638_v25, %v639_v42  ;;  %v684_v52 = vrot.slane %v683_v23, 1  ;;  %v693_v31 = vrot.slane %v692_v61, 1  ;;  %v8754_v3 = vld [vmem:[#allocation24_spill] sm:$0xff]  ;;  %v8766_v42 = vld [vmem:[#allocation34_spill] sm:$0xff] }
  0xd2   : > { %v4820_v49 = vmax.f32 %v647_v48, %v648_v19  ;;  %v4822_v56 = vmax.f32 %v656_v46, %v657_v62  ;;  %v4824_v13 = vmax.f32 %v665_v21, %v666_v22  ;;  %v4828_v8 = vsub.f32 %v8744_v50, %v4642_v45  ;;  %v8750_v48 = vld [vmem:[#allocation18_spill] sm:$0xff]  ;;  %v8770_v62 = vld [vmem:[#allocation40_spill] sm:$0xff] }
  0xd3   : > { %v4830_v7 = vmax.f32 %v674_v47, %v675_v0  ;;  %v4834_v54 = vsub.f32 %v8746_v57, %v4647_v5  ;;  %v4838_v35 = vsub.f32 %v8748_v30, %v4649_v6  ;;  %v4842_v12 = vsub.f32 %v8750_v48, %v4662_v28  ;;  %v8760_v47 = vld [vmem:[#allocation31_spill] sm:$0xff]  ;;  %v8772_v0 = vld [vmem:[#allocation41_spill] sm:$0xff] }
  0xd4   : > { %8745 = vst [vmem:[#allocation15_spill] sm:$0xff] %v4828_v8  ;;  %v702_v17 = vrot.slane %v701_v39, 1  ;;  %v4846_v44 = vsub.f32 %v8752_v51, %v4664_v11  ;;  %v4850_v25 = vsub.f32 %v8754_v3, %v4675_v63  ;;  %v4854_v46 = vsub.f32 %v8756_v27, %v4677_v38  ;;  %v8776_v48 = vld [vmem:[#allocation47_spill] sm:$0xff]  ;;  %v8778_v3 = vld [vmem:[#allocation48_spill] sm:$0xff] }
  0xd5   : > { %8747 = vst [vmem:[#allocation16_spill] sm:$0xff] %v4834_v54  ;;  %8749 = vst [vmem:[#allocation17_spill] sm:$0xff] %v4838_v35  ;;  %v4856_v21 = vmax.f32 %v683_v23, %v684_v52  ;;  %v4858_v55 = vmax.f32 %v692_v61, %v693_v31  ;;  %v4862_v20 = vsub.f32 %v8758_v34, %v4679_v16  ;;  %v8768_v61 = vld [vmem:[#allocation39_spill] sm:$0xff]  ;;  %v8774_v31 = vld [vmem:[#allocation42_spill] sm:$0xff]  ;;  %v800_v57 = vmul.f32 1.442695, %v4828_v8 }
  0xd6   : > { %8751 = vst [vmem:[#allocation18_spill] sm:$0xff] %v4842_v12  ;;  %8753 = vst [vmem:[#allocation23_spill] sm:$0xff] %v4846_v44  ;;  %v4866_v36 = vsub.f32 %v8760_v47, %v4681_v10  ;;  %v4870_v40 = vsub.f32 %v8762_v2, %v4689_v15  ;;  %v4874_v43 = vsub.f32 %v8764_v24, %v4691_v33  ;;  %v802_v34 = vmul.f32 1.442695, %v4834_v54  ;;  %v8780_v47 = vld [vmem:[#allocation49_spill] sm:$0xff]  ;;  %v8792_v54 = vld [vmem:[#allocation62_spill] sm:$0xff] }
  0xd7   : > { %8755 = vst [vmem:[#allocation24_spill] sm:$0xff] %v4850_v25  ;;  %8757 = vst [vmem:[#allocation25_spill] sm:$0xff] %v4854_v46  ;;  %v4878_v23 = vsub.f32 %v8766_v42, %v4704_v41  ;;  %v4882_v19 = vsub.f32 %v8768_v61, %v4706_v26  ;;  %v4886_v22 = vsub.f32 %v8770_v62, %v4708_v32  ;;  %v8782_v24 = vld [vmem:[#allocation53_spill] sm:$0xff]  ;;  %v804_v61 = vmul.f32 1.442695, %v4838_v35  ;;  %v8786_v62 = vld [vmem:[#allocation55_spill] sm:$0xff] }
  0xd8   : > { %8759 = vst [vmem:[#allocation26_spill] sm:$0xff] %v4862_v20  ;;  %8761 = vst [vmem:[#allocation31_spill] sm:$0xff] %v4866_v36  ;;  %v4890_v52 = vsub.f32 %v8772_v0, %v4765_v4  ;;  %v4894_v50 = vsub.f32 %v8774_v31, %v4767_v9  ;;  %v4897_v30 = vmax.f32 %v701_v39, %v702_v17  ;;  %v8784_v39 = vld [vmem:[#allocation54_spill] sm:$0xff]  ;;  %v8788_v31 = vld [vmem:[#allocation56_spill] sm:$0xff]  ;;  %3505 = vpow2.f32 %v800_v57 }
  0xd9   : > { %8763 = vst [vmem:[#allocation32_spill] sm:$0xff] %v4870_v40  ;;  %8765 = vst [vmem:[#allocation33_spill] sm:$0xff] %v4874_v43  ;;  %v4901_v51 = vsub.f32 %v8776_v48, %v4802_v1  ;;  %v4905_v27 = vsub.f32 %v8778_v3, %v4804_v60  ;;  %v4910_v2 = vsub.f32 %v8780_v47, %v4806_v37  ;;  %v8790_v3 = vld [vmem:[#allocation61_spill] sm:$0xff]  ;;  %v8794_v35 = vld [vmem:[#allocation63_spill] sm:$0xff]  ;;  %3507 = vpow2.f32 %v802_v34 }
  0xda   : > { %8767 = vst [vmem:[#allocation34_spill] sm:$0xff] %v4878_v23  ;;  %8769 = vst [vmem:[#allocation39_spill] sm:$0xff] %v4882_v19  ;;  %v4914_v42 = vsub.f32 %v8782_v24, %v4808_v18  ;;  %v4918_v17 = vsub.f32 %v8784_v39, %v4810_v29  ;;  %v4923_v0 = vsub.f32 %v8786_v62, %v4812_v53  ;;  %v806_v24 = vmul.f32 1.442695, %v4842_v12 }
  0xdb   : > { %8771 = vst [vmem:[#allocation40_spill] sm:$0xff] %v4886_v22  ;;  %8773 = vst [vmem:[#allocation41_spill] sm:$0xff] %v4890_v52  ;;  %v4927_v48 = vsub.f32 %v8788_v31, %v4814_v58  ;;  %v4931_v47 = vsub.f32 %v8790_v3, %v4816_v59  ;;  %v4936_v39 = vsub.f32 %v8792_v54, %v4818_v14  ;;  %v808_v62 = vmul.f32 1.442695, %v4846_v44  ;;  %v8796_v31 = vld [vmem:[#allocation64_spill] sm:$0xff]  ;;  %v8800_v54 = vld [vmem:[#allocation69_spill] sm:$0xff] }
  0xdc   : > { %8775 = vst [vmem:[#allocation42_spill] sm:$0xff] %v4894_v50  ;;  %8777 = vst [vmem:[#allocation47_spill] sm:$0xff] %v4901_v51  ;;  %v4940_v8 = vsub.f32 %v8794_v35, %v4820_v49  ;;  %v8798_v3 = vld [vmem:[#allocation68_spill] sm:$0xff]  ;;  %v810_v12 = vmul.f32 1.442695, %v4850_v25  ;;  %v8802_v35 = vld [vmem:[#allocation73_spill] sm:$0xff]  ;;  %3509 = vpow2.f32 %v804_v61 }
  0xdd   : > { %8779 = vst [vmem:[#allocation48_spill] sm:$0xff] %v4905_v27  ;;  %8781 = vst [vmem:[#allocation49_spill] sm:$0xff] %v4910_v2  ;;  %v4958_v57 = vsub.f32 %v8802_v35, %v4856_v21  ;;  %v812_v44 = vmul.f32 1.442695, %v4854_v46  ;;  %3511 = vpow2.f32 %v806_v24  ;;  %v814_v25 = vmul.f32 1.442695, %v4862_v20 }
  0xde   : > { %8783 = vst [vmem:[#allocation53_spill] sm:$0xff] %v4914_v42  ;;  %8785 = vst [vmem:[#allocation54_spill] sm:$0xff] %v4918_v17  ;;  %v8810_v35 = vld [vmem:[#allocation20_spill] sm:$0xff]  ;;  %3513 = vpow2.f32 %v808_v62  ;;  %v816_v46 = vmul.f32 1.442695, %v4866_v36 }
  0xdf   : > { %8787 = vst [vmem:[#allocation55_spill] sm:$0xff] %v4923_v0  ;;  %8789 = vst [vmem:[#allocation56_spill] sm:$0xff] %v4927_v48  ;;  %v4945_v48 = vsub.f32 %v8796_v31, %v4822_v56  ;;  %v8804_v31 = vld [vmem:[#allocation74_spill] sm:$0xff]  ;;  %v4976_v61 = vsub.f32 %v8810_v35, %v4647_v5  ;;  %3515 = vpow2.f32 %v810_v12  ;;  %v818_v20 = vmul.f32 1.442695, %v4870_v40  ;;  %v8818_v35 = vld [vmem:[#allocation28_spill] sm:$0xff] }
  0xe0   : > { %8791 = vst [vmem:[#allocation61_spill] sm:$0xff] %v4931_v47  ;;  %8793 = vst [vmem:[#allocation62_spill] sm:$0xff] %v4936_v39  ;;  %v4949_v47 = vsub.f32 %v8798_v3, %v4824_v13  ;;  %v4954_v39 = vsub.f32 %v8800_v54, %v4830_v7  ;;  %v8806_v3 = vld [vmem:[#allocation78_spill] sm:$0xff]  ;;  %v8808_v54 = vld [vmem:[#allocation19_spill] sm:$0xff]  ;;  %v4994_v62 = vsub.f32 %v8818_v35, %v4675_v63  ;;  %3517 = vpow2.f32 %v812_v44 }
  0xe1   : > { %8795 = vst [vmem:[#allocation63_spill] sm:$0xff] %v4940_v8  ;;  %8797 = vst [vmem:[#allocation64_spill] sm:$0xff] %v4945_v48  ;;  %v4963_v48 = vsub.f32 %v8804_v31, %v4858_v55  ;;  %v4967_v34 = vsub.f32 %v8806_v3, %v4897_v30  ;;  %v8812_v31 = vld [vmem:[#allocation21_spill] sm:$0xff]  ;;  %v8814_v3 = vld [vmem:[#allocation22_spill] sm:$0xff]  ;;  %v820_v36 = vmul.f32 1.442695, %v4874_v43  ;;  %3519 = vpow2.f32 %v814_v25 }
  0xe2   : > { %8799 = vst [vmem:[#allocation68_spill] sm:$0xff] %v4949_v47  ;;  %8801 = vst [vmem:[#allocation69_spill] sm:$0xff] %v4954_v39  ;;  %v4972_v39 = vsub.f32 %v8808_v54, %v4642_v45  ;;  %v4985_v24 = vsub.f32 %v8814_v3, %v4662_v28  ;;  %v8816_v54 = vld [vmem:[#allocation27_spill] sm:$0xff]  ;;  %v8822_v3 = vld [vmem:[#allocation30_spill] sm:$0xff]  ;;  %v822_v40 = vmul.f32 1.442695, %v4878_v23  ;;  %3521 = vpow2.f32 %v816_v46 }
  0xe3   : > { %8803 = vst [vmem:[#allocation73_spill] sm:$0xff] %v4958_v57  ;;  %8805 = vst [vmem:[#allocation74_spill] sm:$0xff] %v4963_v48  ;;  %v4981_v48 = vsub.f32 %v8812_v31, %v4649_v6  ;;  %v8820_v31 = vld [vmem:[#allocation29_spill] sm:$0xff]  ;;  %v5003_v12 = vsub.f32 %v8822_v3, %v4679_v16  ;;  %v8826_v35 = vld [vmem:[#allocation36_spill] sm:$0xff]  ;;  %v824_v43 = vmul.f32 1.442695, %v4882_v19  ;;  %3523 = vpow2.f32 %v818_v20 }
  0xe4   : > { %8807 = vst [vmem:[#allocation78_spill] sm:$0xff] %v4967_v34  ;;  %8809 = vst [vmem:[#allocation19_spill] sm:$0xff] %v4972_v39  ;;  %v4990_v39 = vsub.f32 %v8816_v54, %v4664_v11  ;;  %v8824_v54 = vld [vmem:[#allocation35_spill] sm:$0xff]  ;;  %v5012_v44 = vsub.f32 %v8826_v35, %v4689_v15  ;;  %v8830_v3 = vld [vmem:[#allocation38_spill] sm:$0xff]  ;;  %v826_v23 = vmul.f32 1.442695, %v4886_v22  ;;  %3525 = vpow2.f32 %v820_v36 }
  0xe5   : > { %8811 = vst [vmem:[#allocation20_spill] sm:$0xff] %v4976_v61  ;;  %8813 = vst [vmem:[#allocation21_spill] sm:$0xff] %v4981_v48  ;;  %v4999_v48 = vsub.f32 %v8820_v31, %v4677_v38  ;;  %v8828_v31 = vld [vmem:[#allocation37_spill] sm:$0xff]  ;;  %v5021_v25 = vsub.f32 %v8830_v3, %v4704_v41  ;;  %v8835_v46 = vld [vmem:[#allocation44_spill] sm:$0xff]  ;;  %3527 = vpow2.f32 %v822_v40 }
  0xe6   : > { %8815 = vst [vmem:[#allocation22_spill] sm:$0xff] %v4985_v24  ;;  %8817 = vst [vmem:[#allocation27_spill] sm:$0xff] %v4990_v39  ;;  %v5008_v39 = vsub.f32 %v8824_v54, %v4681_v10  ;;  %v5024_v54 = vpop.eup %3505  ;;  %v5032_v19 = vsub.f32 %v8835_v46, %v4708_v32  ;;  %v8838_v3 = vld [vmem:[#allocation45_spill] sm:$0xff]  ;;  %v8840_v22 = vld [vmem:[#allocation46_spill] sm:$0xff]  ;;  %3529 = vpow2.f32 %v824_v43 }
  0xe7   : > { %8819 = vst [vmem:[#allocation28_spill] sm:$0xff] %v4994_v62  ;;  %8821 = vst [vmem:[#allocation29_spill] sm:$0xff] %v4999_v48  ;;  %v5017_v48 = vsub.f32 %v8828_v31, %v4691_v33  ;;  %v828_v31 = vmul.f32 1.442695, %v4890_v52  ;;  %v5039_v20 = vsub.f32 %v8838_v3, %v4765_v4  ;;  %v8843_v46 = vld [vmem:[#allocation50_spill] sm:$0xff]  ;;  %v8845_v52 = vld [vmem:[#allocation51_spill] sm:$0xff]  ;;  %3531 = vpow2.f32 %v826_v23 }
  0xe8   : > { %8823 = vst [vmem:[#allocation30_spill] sm:$0xff] %v5003_v12  ;;  %8825 = vst [vmem:[#allocation35_spill] sm:$0xff] %v5008_v39  ;;  %v8833_v39 = vld [vmem:[#allocation43_spill] sm:$0xff]  ;;  %v5050_v36 = vsub.f32 %v8843_v46, %v4802_v1  ;;  %v832_v3 = vmul.f32 1.442695, %v4901_v51 }
  0xe9   : > { %8827 = vst [vmem:[#allocation36_spill] sm:$0xff] %v5012_v44  ;;  %8829 = vst [vmem:[#allocation37_spill] sm:$0xff] %v5017_v48  ;;  %v5028_v35 = vsub.f32 %v8833_v39, %v4706_v26  ;;  %v5035_v48 = vpop.eup %3507  ;;  %v830_v39 = vmul.f32 1.442695, %v4894_v50  ;;  %v8850_v50 = vld [vmem:[#allocation57_spill] sm:$0xff]  ;;  %v8855_v51 = vld [vmem:[#allocation59_spill] sm:$0xff]  ;;  %3533 = vpow2.f32 %v828_v31 }
  0xea   : > { %8831 = vst [vmem:[#allocation38_spill] sm:$0xff] %v5021_v25  ;;  %8832 = vst [vmem:[#allocation119_spill] sm:$0xff] %v5024_v54  ;;  %v5043_v54 = vsub.f32 %v8840_v22, %v4767_v9  ;;  %v8848_v22 = vld [vmem:[#allocation52_spill] sm:$0xff]  ;;  %v834_v46 = vmul.f32 1.442695, %v4905_v27  ;;  %v8860_v27 = vld [vmem:[#allocation65_spill] sm:$0xff] }
  0xeb   : > { %8834 = vst [vmem:[#allocation43_spill] sm:$0xff] %v5028_v35  ;;  %8836 = vst [vmem:[#allocation44_spill] sm:$0xff] %v5032_v19  ;;  %v5046_v35 = vpop.eup %3509  ;;  %v5061_v40 = vsub.f32 %v8848_v22, %v4806_v37  ;;  %v836_v22 = vmul.f32 1.442695, %v4910_v2  ;;  %3535 = vpow2.f32 %v830_v39  ;;  %v8865_v2 = vld [vmem:[#allocation70_spill] sm:$0xff] }
  0xec   : > { %8837 = vst [vmem:[#allocation120_spill] sm:$0xff] %v5035_v48  ;;  %8839 = vst [vmem:[#allocation45_spill] sm:$0xff] %v5039_v20  ;;  %v5054_v48 = vsub.f32 %v8845_v52, %v4804_v60  ;;  %v5057_v20 = vpop.eup %3511  ;;  %v8853_v52 = vld [vmem:[#allocation58_spill] sm:$0xff]  ;;  %3537 = vpow2.f32 %v832_v3 }
  0xed   : > { %8841 = vst [vmem:[#allocation46_spill] sm:$0xff] %v5043_v54  ;;  %8842 = vst [vmem:[#allocation121_spill] sm:$0xff] %v5046_v35  ;;  %v5065_v35 = vsub.f32 %v8850_v50, %v4808_v18  ;;  %v5072_v43 = vsub.f32 %v8853_v52, %v4810_v29  ;;  %v8858_v50 = vld [vmem:[#allocation60_spill] sm:$0xff]  ;;  %v838_v52 = vmul.f32 1.442695, %v4914_v42  ;;  %3539 = vpow2.f32 %v834_v46 }
  0xee   : > { %8844 = vst [vmem:[#allocation50_spill] sm:$0xff] %v5050_v36  ;;  %8846 = vst [vmem:[#allocation51_spill] sm:$0xff] %v5054_v48  ;;  %v5068_v36 = vpop.eup %3513  ;;  %v5083_v23 = vsub.f32 %v8858_v50, %v4814_v58  ;;  %v840_v50 = vmul.f32 1.442695, %v4918_v17  ;;  %v8870_v42 = vld [vmem:[#allocation72_spill] sm:$0xff]  ;;  %3541 = vpow2.f32 %v836_v22 }
  0xef   : > { %8847 = vst [vmem:[#allocation122_spill] sm:$0xff] %v5057_v20  ;;  %8849 = vst [vmem:[#allocation52_spill] sm:$0xff] %v5061_v40  ;;  %v5076_v20 = vsub.f32 %v8855_v51, %v4812_v53  ;;  %v5079_v40 = vpop.eup %3515  ;;  %v8863_v51 = vld [vmem:[#allocation66_spill] sm:$0xff]  ;;  %v8875_v17 = vld [vmem:[#allocation76_spill] sm:$0xff]  ;;  %3543 = vpow2.f32 %v838_v52 }
  0xf0   : > { %8851 = vst [vmem:[#allocation57_spill] sm:$0xff] %v5065_v35  ;;  %8852 = vst [vmem:[#allocation123_spill] sm:$0xff] %v5068_v36  ;;  %v5087_v36 = vsub.f32 %v8860_v27, %v4816_v59  ;;  %v5094_v31 = vsub.f32 %v8863_v51, %v4818_v14  ;;  %v8868_v27 = vld [vmem:[#allocation71_spill] sm:$0xff]  ;;  %v842_v51 = vmul.f32 1.442695, %v4923_v0  ;;  %3545 = vpow2.f32 %v840_v50 }
  0xf1   : > { %8854 = vst [vmem:[#allocation58_spill] sm:$0xff] %v5072_v43  ;;  %8856 = vst [vmem:[#allocation59_spill] sm:$0xff] %v5076_v20  ;;  %v5090_v43 = vpop.eup %3517  ;;  %v5105_v39 = vsub.f32 %v8868_v27, %v4822_v56  ;;  %v8877_v27 = vld [vmem:[#allocation56_spill] sm:$0xff]  ;;  %v8881_v0 = vld [vmem:[#allocation79_spill] sm:$0xff] }
  0xf2   : > { %8857 = vst [vmem:[#allocation124_spill] sm:$0xff] %v5079_v40  ;;  %8859 = vst [vmem:[#allocation60_spill] sm:$0xff] %v5083_v23  ;;  %v5098_v40 = vsub.f32 %v8865_v2, %v4820_v49  ;;  %v5101_v23 = vpop.eup %3519  ;;  %v8873_v2 = vld [vmem:[#allocation75_spill] sm:$0xff]  ;;  %3547 = vpow2.f32 %v842_v51 }
  0xf3   : > { %8861 = vst [vmem:[#allocation65_spill] sm:$0xff] %v5087_v36  ;;  %8862 = vst [vmem:[#allocation125_spill] sm:$0xff] %v5090_v43  ;;  %v5109_v43 = vsub.f32 %v8870_v42, %v4824_v13  ;;  %v5116_v3 = vsub.f32 %v8873_v2, %v4830_v7  ;;  %v8879_v42 = vld [vmem:[#allocation77_spill] sm:$0xff] }
  0xf4   : > { %8864 = vst [vmem:[#allocation66_spill] sm:$0xff] %v5094_v31  ;;  %8866 = vst [vmem:[#allocation70_spill] sm:$0xff] %v5098_v40  ;;  %v5112_v31 = vpop.eup %3521  ;;  %v5127_v46 = vsub.f32 %v8879_v42, %v4858_v55  ;;  %v8883_v2 = vld [vmem:[#allocation61_spill] sm:$0xff]  ;;  %v8889_v42 = vld [vmem:[#allocation62_spill] sm:$0xff] }
  0xf5   : > { %8867 = vst [vmem:[#allocation126_spill] sm:$0xff] %v5101_v23  ;;  %8869 = vst [vmem:[#allocation71_spill] sm:$0xff] %v5105_v39  ;;  %v5120_v23 = vsub.f32 %v8875_v17, %v4856_v21  ;;  %v844_v39 = vmul.f32 1.442695, %v8877_v27  ;;  %v5123_v40 = vpop.eup %3523  ;;  %v8885_v17 = vld [vmem:[#allocation67_spill] sm:$0xff]  ;;  %v8887_v27 = vld [vmem:[#allocation80_spill] sm:$0xff] }
  0xf6   : > { %8871 = vst [vmem:[#allocation72_spill] sm:$0xff] %v5109_v43  ;;  %8872 = vst [vmem:[#allocation127_spill] sm:$0xff] %v5112_v31  ;;  %v5131_v31 = vsub.f32 %v8881_v0, %v4897_v30  ;;  %v5134_v43 = vpop.eup %3525  ;;  %v5138_v22 = vsub.f32 %v8885_v17, %v4642_v45  ;;  %v8891_v0 = vld [vmem:[#allocation81_spill] sm:$0xff]  ;;  %v850_v45 = vmul.f32 1.442695, %v4940_v8 }
  0xf7   : > { %8874 = vst [vmem:[#allocation75_spill] sm:$0xff] %v5116_v3  ;;  %8876 = vst [vmem:[#allocation76_spill] sm:$0xff] %v5120_v23  ;;  %v846_v3 = vmul.f32 1.442695, %v8883_v2  ;;  %v5145_v23 = vpop.eup %3527  ;;  %v5149_v52 = vsub.f32 %v8891_v0, %v4649_v6  ;;  %v8893_v2 = vld [vmem:[#allocation83_spill] sm:$0xff]  ;;  %3549 = vpow2.f32 %v844_v39  ;;  %v8899_v6 = vld [vmem:[#allocation64_spill] sm:$0xff] }
  0xf8   : > { %8878 = vst [vmem:[#allocation128_spill] sm:$0xff] %v5123_v40  ;;  %8880 = vst [vmem:[#allocation77_spill] sm:$0xff] %v5127_v46  ;;  %v5142_v40 = vsub.f32 %v8887_v27, %v4647_v5  ;;  %v848_v46 = vmul.f32 1.442695, %v8889_v42  ;;  %v5156_v17 = vpop.eup %3529  ;;  %v8895_v5 = vld [vmem:[#allocation84_spill] sm:$0xff]  ;;  %v8897_v27 = vld [vmem:[#allocation86_spill] sm:$0xff] }
  0xf9   : > { %8882 = vst [vmem:[#allocation79_spill] sm:$0xff] %v5131_v31  ;;  %8884 = vst [vmem:[#allocation129_spill] sm:$0xff] %v5134_v43  ;;  %v5153_v43 = vsub.f32 %v8893_v2, %v4662_v28  ;;  %v5160_v50 = vsub.f32 %v8895_v5, %v4664_v11  ;;  %v5164_v42 = vsub.f32 %v8897_v27, %v4675_v63  ;;  %v852_v0 = vmul.f32 1.442695, %v8899_v6  ;;  %v8901_v28 = vld [vmem:[#allocation87_spill] sm:$0xff]  ;;  %v8903_v2 = vld [vmem:[#allocation89_spill] sm:$0xff] }
  0xfa   : > { %8886 = vst [vmem:[#allocation67_spill] sm:$0xff] %v5138_v22  ;;  %8888 = vst [vmem:[#allocation80_spill] sm:$0xff] %v5142_v40  ;;  %v5171_v51 = vsub.f32 %v8901_v28, %v4677_v38  ;;  %v5175_v8 = vsub.f32 %v8903_v2, %v4679_v16  ;;  %3551 = vpow2.f32 %v846_v3  ;;  %v854_v11 = vmul.f32 1.442695, %v4949_v47  ;;  %v8905_v63 = vld [vmem:[#allocation90_spill] sm:$0xff]  ;;  %v8907_v27 = vld [vmem:[#allocation92_spill] sm:$0xff] }
  0xfb   : > { %8890 = vst [vmem:[#allocation130_spill] sm:$0xff] %v5145_v23  ;;  %8892 = vst [vmem:[#allocation81_spill] sm:$0xff] %v5149_v52  ;;  %v5167_v23 = vpop.eup %3531  ;;  %v5182_v39 = vsub.f32 %v8905_v63, %v4681_v10  ;;  %v5186_v6 = vsub.f32 %v8907_v27, %v4689_v15  ;;  %3553 = vpow2.f32 %v848_v46  ;;  %v8909_v38 = vld [vmem:[#allocation69_spill] sm:$0xff]  ;;  %v8913_v2 = vld [vmem:[#allocation94_spill] sm:$0xff]  ;;  %v858_v10 = vmul.f32 1.442695, %v4958_v57 }
  0xfc   : > { %8894 = vst [vmem:[#allocation83_spill] sm:$0xff] %v5153_v43  ;;  %8896 = vst [vmem:[#allocation84_spill] sm:$0xff] %v5160_v50  ;;  %v5178_v5 = vpop.eup %3533  ;;  %v856_v28 = vmul.f32 1.442695, %v8909_v38  ;;  %v8911_v16 = vld [vmem:[#allocation93_spill] sm:$0xff]  ;;  %v5197_v47 = vsub.f32 %v8913_v2, %v4704_v41  ;;  %3555 = vpow2.f32 %v850_v45  ;;  %v8916_v15 = vld [vmem:[#allocation95_spill] sm:$0xff] }
  0xfd   : > { %8898 = vst [vmem:[#allocation86_spill] sm:$0xff] %v5164_v42  ;;  %8900 = vst [vmem:[#allocation131_spill] sm:$0xff] %v5167_v23  ;;  %v5189_v23 = vpop.eup %3535  ;;  %v5193_v3 = vsub.f32 %v8911_v16, %v4691_v33  ;;  %v5204_v46 = vsub.f32 %v8916_v15, %v4706_v26  ;;  %v8918_v27 = vld [vmem:[#allocation97_spill] sm:$0xff]  ;;  %3557 = vpow2.f32 %v852_v0  ;;  %v8920_v33 = vld [vmem:[#allocation74_spill] sm:$0xff]  ;;  %v862_v26 = vmul.f32 1.442695, %v4967_v34 }
  0xfe   : > { %8902 = vst [vmem:[#allocation87_spill] sm:$0xff] %v5171_v51  ;;  %8904 = vst [vmem:[#allocation89_spill] sm:$0xff] %v5175_v8  ;;  %v5200_v63 = vpop.eup %3537  ;;  %v5208_v38 = vsub.f32 %v8918_v27, %v4708_v32  ;;  %v860_v16 = vmul.f32 1.442695, %v8920_v33  ;;  %v8922_v41 = vld [vmem:[#allocation101_spill] sm:$0xff]  ;;  %v8924_v2 = vld [vmem:[#allocation102_spill] sm:$0xff]  ;;  %3559 = vpow2.f32 %v854_v11 }
  0xff   : > { %8906 = vst [vmem:[#allocation90_spill] sm:$0xff] %v5182_v39  ;;  %8908 = vst [vmem:[#allocation92_spill] sm:$0xff] %v5186_v6  ;;  %v5215_v45 = vsub.f32 %v8922_v41, %v4765_v4  ;;  %v5219_v57 = vsub.f32 %v8924_v2, %v4767_v9  ;;  %v8927_v32 = vld [vmem:[#allocation103_spill] sm:$0xff]  ;;  %v8929_v27 = vld [vmem:[#allocation104_spill] sm:$0xff]  ;;  %3561 = vpow2.f32 %v856_v28 }
 0x100   : > { %8910 = vst [vmem:[#allocation132_spill] sm:$0xff] %v5189_v23  ;;  %8912 = vst [vmem:[#allocation93_spill] sm:$0xff] %v5193_v3  ;;  %v5211_v23 = vpop.eup %3539  ;;  %v5226_v0 = vsub.f32 %v8927_v32, %v4802_v1  ;;  %v5230_v33 = vsub.f32 %v8929_v27, %v4804_v60  ;;  %v8931_v4 = vld [vmem:[#allocation19_spill] sm:$0xff]  ;;  %v8933_v9 = vld [vmem:[#allocation105_spill] sm:$0xff]  ;;  %3563 = vpow2.f32 %v858_v10  ;;  %v866_v1 = vmul.f32 1.442695, %v4976_v61 }
 0x101   : > { %8914 = vst [vmem:[#allocation94_spill] sm:$0xff] %v5197_v47  ;;  %8915 = vst [vmem:[#allocation133_spill] sm:$0xff] %v5200_v63  ;;  %v5222_v15 = vpop.eup %3541  ;;  %v864_v41 = vmul.f32 1.442695, %v8931_v4  ;;  %v5237_v11 = vsub.f32 %v8933_v9, %v4806_v37  ;;  %v8935_v2 = vld [vmem:[#allocation106_spill] sm:$0xff]  ;;  %v8938_v60 = vld [vmem:[#allocation107_spill] sm:$0xff]  ;;  %3565 = vpow2.f32 %v860_v16 }
 0x102   : > { %8917 = vst [vmem:[#allocation95_spill] sm:$0xff] %v5204_v46  ;;  %8919 = vst [vmem:[#allocation97_spill] sm:$0xff] %v5208_v38  ;;  %v5241_v34 = vsub.f32 %v8935_v2, %v4808_v18  ;;  %v5248_v28 = vsub.f32 %v8938_v60, %v4810_v29  ;;  %v8940_v27 = vld [vmem:[#allocation108_spill] sm:$0xff]  ;;  %v8942_v37 = vld [vmem:[#allocation21_spill] sm:$0xff]  ;;  %3567 = vpow2.f32 %v862_v26  ;;  %v870_v29 = vmul.f32 1.442695, %v4985_v24 }
 0x103   : > { %8921 = vst [vmem:[#allocation134_spill] sm:$0xff] %v5211_v23  ;;  %8923 = vst [vmem:[#allocation101_spill] sm:$0xff] %v5215_v45  ;;  %v5233_v23 = vpop.eup %3543  ;;  %v5252_v4 = vsub.f32 %v8940_v27, %v4812_v53  ;;  %v868_v9 = vmul.f32 1.442695, %v8942_v37  ;;  %v8944_v18 = vld [vmem:[#allocation109_spill] sm:$0xff]  ;;  %v8946_v2 = vld [vmem:[#allocation110_spill] sm:$0xff]  ;;  %3569 = vpow2.f32 %v864_v41 }
 0x104   : > { %8925 = vst [vmem:[#allocation102_spill] sm:$0xff] %v5219_v57  ;;  %8926 = vst [vmem:[#allocation135_spill] sm:$0xff] %v5222_v15  ;;  %v5244_v32 = vpop.eup %3545  ;;  %v5259_v10 = vsub.f32 %v8944_v18, %v4814_v58  ;;  %v5263_v61 = vsub.f32 %v8946_v2, %v4816_v59  ;;  %v8949_v53 = vld [vmem:[#allocation111_spill] sm:$0xff]  ;;  %v8951_v27 = vld [vmem:[#allocation112_spill] sm:$0xff]  ;;  %3571 = vpow2.f32 %v866_v1  ;;  %v5377_v63 = vmul.f32 1.442695, %v5149_v52 }
 0x105   : > { %8928 = vst [vmem:[#allocation103_spill] sm:$0xff] %v5226_v0  ;;  %8930 = vst [vmem:[#allocation104_spill] sm:$0xff] %v5230_v33  ;;  %v5270_v16 = vsub.f32 %v8949_v53, %v4818_v14  ;;  %v5274_v37 = vsub.f32 %v8951_v27, %v4820_v49  ;;  %v8953_v58 = vld [vmem:[#allocation27_spill] sm:$0xff]  ;;  %v8955_v59 = vld [vmem:[#allocation113_spill] sm:$0xff]  ;;  %v874_v14 = vmul.f32 1.442695, %v4994_v62  ;;  %3573 = vpow2.f32 %v868_v9 }
 0x106   : > { %8932 = vst [vmem:[#allocation136_spill] sm:$0xff] %v5233_v23  ;;  %8934 = vst [vmem:[#allocation105_spill] sm:$0xff] %v5237_v11  ;;  %v5255_v23 = vpop.eup %3547  ;;  %v872_v18 = vmul.f32 1.442695, %v8953_v58  ;;  %v5281_v26 = vsub.f32 %v8955_v59, %v4822_v56  ;;  %v8957_v2 = vld [vmem:[#allocation114_spill] sm:$0xff]  ;;  %v8960_v49 = vld [vmem:[#allocation115_spill] sm:$0xff]  ;;  %3575 = vpow2.f32 %v870_v29 }
 0x107   : > { %8936 = vst [vmem:[#allocation106_spill] sm:$0xff] %v5241_v34  ;;  %8937 = vst [vmem:[#allocation137_spill] sm:$0xff] %v5244_v32  ;;  %v5266_v60 = vpop.eup %3549  ;;  %v5285_v24 = vsub.f32 %v8957_v2, %v4824_v13  ;;  %v5292_v41 = vsub.f32 %v8960_v49, %v4830_v7  ;;  %v8962_v27 = vld [vmem:[#allocation116_spill] sm:$0xff]  ;;  %v8964_v56 = vld [vmem:[#allocation29_spill] sm:$0xff]  ;;  %v878_v7 = vmul.f32 1.442695, %v5003_v12 }
 0x108   : > { %8939 = vst [vmem:[#allocation107_spill] sm:$0xff] %v5248_v28  ;;  %8941 = vst [vmem:[#allocation108_spill] sm:$0xff] %v5252_v4  ;;  %v5296_v58 = vsub.f32 %v8962_v27, %v4856_v21  ;;  %v876_v59 = vmul.f32 1.442695, %v8964_v56  ;;  %v8966_v13 = vld [vmem:[#allocation117_spill] sm:$0xff]  ;;  %v8968_v2 = vld [vmem:[#allocation118_spill] sm:$0xff]  ;;  %3577 = vpow2.f32 %v872_v18 }
 0x109   : > { %8943 = vst [vmem:[#allocation138_spill] sm:$0xff] %v5255_v23  ;;  %8945 = vst [vmem:[#allocation109_spill] sm:$0xff] %v5259_v10  ;;  %v5277_v23 = vpop.eup %3551  ;;  %v5303_v1 = vsub.f32 %v8966_v13, %v4858_v55  ;;  %v5307_v62 = vsub.f32 %v8968_v2, %v4897_v30  ;;  %v8971_v21 = vld [vmem:[#allocation35_spill] sm:$0xff]  ;;  %v882_v27 = vmul.f32 1.442695, %v5012_v44  ;;  %v8972_v56 = vld [vmem:[#allocation37_spill] sm:$0xff]  ;;  %3579 = vpow2.f32 %v874_v14 }
 0x10a   : > { %8947 = vst [vmem:[#allocation110_spill] sm:$0xff] %v5263_v61  ;;  %8948 = vst [vmem:[#allocation139_spill] sm:$0xff] %v5266_v60  ;;  %v5288_v53 = vpop.eup %3553  ;;  %v880_v9 = vmul.f32 1.442695, %v8971_v21  ;;  %v886_v55 = vmul.f32 1.442695, %v5021_v25  ;;  %3581 = vpow2.f32 %v876_v59 }
 0x10b   : > { %8950 = vst [vmem:[#allocation111_spill] sm:$0xff] %v5270_v16  ;;  %8952 = vst [vmem:[#allocation112_spill] sm:$0xff] %v5274_v37  ;;  %v8974_v13 = vld [vmem:[#allocation43_spill] sm:$0xff]  ;;  %v890_v29 = vmul.f32 1.442695, %v5032_v19  ;;  %v8976_v12 = vld [vmem:[#allocation45_spill] sm:$0xff]  ;;  %3583 = vpow2.f32 %v878_v7 }
 0x10c   : > { %8954 = vst [vmem:[#allocation140_spill] sm:$0xff] %v5277_v23  ;;  %8956 = vst [vmem:[#allocation113_spill] sm:$0xff] %v5281_v26  ;;  %v5299_v23 = vpop.eup %3555  ;;  %v888_v30 = vmul.f32 1.442695, %v8974_v13  ;;  %v892_v18 = vmul.f32 1.442695, %v8976_v12  ;;  %3585 = vpow2.f32 %v880_v9 }
 0x10d   : > { %8958 = vst [vmem:[#allocation114_spill] sm:$0xff] %v5285_v24  ;;  %8959 = vst [vmem:[#allocation141_spill] sm:$0xff] %v5288_v53  ;;  %v5310_v49 = vpop.eup %3557  ;;  %v894_v21 = vmul.f32 1.442695, %v5043_v54  ;;  %v898_v14 = vmul.f32 1.442695, %v5054_v48  ;;  %3587 = vpow2.f32 %v882_v27 }
 0x10e   : > { %8961 = vst [vmem:[#allocation115_spill] sm:$0xff] %v5292_v41  ;;  %8963 = vst [vmem:[#allocation116_spill] sm:$0xff] %v5296_v58  ;;  %v5315_v53 = vpop.eup %3559  ;;  %v902_v13 = vmul.f32 1.442695, %v5065_v35  ;;  %v8981_v19 = vld [vmem:[#allocation58_spill] sm:$0xff] }
 0x10f   : > { %8965 = vst [vmem:[#allocation142_spill] sm:$0xff] %v5299_v23  ;;  %8967 = vst [vmem:[#allocation117_spill] sm:$0xff] %v5303_v1  ;;  %v884_v23 = vmul.f32 1.442695, %v8972_v56  ;;  %v5320_v2 = vpop.eup %3561  ;;  %v8979_v56 = vld [vmem:[#allocation52_spill] sm:$0xff]  ;;  %v8984_v48 = vld [vmem:[#allocation66_spill] sm:$0xff] }
 0x110   : > { %8969 = vst [vmem:[#allocation118_spill] sm:$0xff] %v5307_v62  ;;  %8970 = vst [vmem:[#allocation143_spill] sm:$0xff] %v5310_v49  ;;  %v8977_v49 = vld [vmem:[#allocation50_spill] sm:$0xff]  ;;  %v5325_v60 = vpop.eup %3563  ;;  %v900_v25 = vmul.f32 1.442695, %v8979_v56 }
 0x111   : > { %8973 = vst [vmem:[#allocation144_spill] sm:$0xff] %v5315_v53  ;;  %8975 = vst [vmem:[#allocation145_spill] sm:$0xff] %v5320_v2  ;;  %v896_v44 = vmul.f32 1.442695, %v8977_v49  ;;  %v5330_v53 = vpop.eup %3565  ;;  %v904_v59 = vmul.f32 1.442695, %v8981_v19  ;;  %3589 = vpow2.f32 %v884_v23 }
 0x112   : > { %8978 = vst [vmem:[#allocation146_spill] sm:$0xff] %v5325_v60  ;;  %8980 = vst [vmem:[#allocation147_spill] sm:$0xff] %v5330_v53  ;;  %v906_v12 = vmul.f32 1.442695, %v5076_v20  ;;  %v8982_v2 = vld [vmem:[#allocation60_spill] sm:$0xff]  ;;  %v5337_v49 = vpop.eup %3567  ;;  %v8985_v35 = vld [vmem:[#allocation70_spill] sm:$0xff]  ;;  %3591 = vpow2.f32 %v886_v55 }
 0x113   : > { %v5335_v54 = vmul.f32 1.442695, %v8982_v2  ;;  %8983 = vst [vmem:[#allocation148_spill] sm:$0xff] %v5337_v49  ;;  %v5340_v7 = vmul.f32 1.442695, %v5087_v36  ;;  %v5348_v9 = vpop.eup %3569  ;;  %v8986_v19 = vld [vmem:[#allocation71_spill] sm:$0xff]  ;;  %3593 = vpow2.f32 %v888_v30 }
 0x114   : > { %v5343_v56 = vmul.f32 1.442695, %v8984_v48  ;;  %v5346_v60 = vmul.f32 1.442695, %v8985_v35  ;;  %v5351_v20 = vmul.f32 1.442695, %v8986_v19  ;;  %v5359_v36 = vpop.eup %3571  ;;  %3595 = vpow2.f32 %v890_v29 }
 0x115   : > { %v8987_v2 = vld [vmem:[#allocation72_spill] sm:$0xff]  ;;  %v8988_v49 = vld [vmem:[#allocation75_spill] sm:$0xff]  ;;  %v8990_v35 = vld [vmem:[#allocation77_spill] sm:$0xff]  ;;  %v5368_v23 = vmul.f32 1.442695, %v5131_v31  ;;  %v5370_v19 = vpop.eup %3573  ;;  %3597 = vpow2.f32 %v892_v18 }
 0x116   : > { %v5354_v53 = vmul.f32 1.442695, %v8987_v2  ;;  %v5357_v27 = vmul.f32 1.442695, %v8988_v49  ;;  %v8989_v48 = vld [vmem:[#allocation76_spill] sm:$0xff]  ;;  %v5379_v55 = vpop.eup %3575  ;;  %3599 = vpow2.f32 %v894_v21 }
 0x117   : > { %v5362_v32 = vmul.f32 1.442695, %v8989_v48  ;;  %v5365_v15 = vmul.f32 1.442695, %v8990_v35  ;;  %v928_v2 = vmul.f32 1.442695, %v5138_v22  ;;  %v5390_v30 = vpop.eup %3577  ;;  %v1280_v22 = vlaneseq }
 0x118   : > { %v5374_v49 = vmul.f32 1.442695, %v5142_v40  ;;  %v5382_v35 = vmul.f32 1.442695, %v5153_v43  ;;  %v5385_v31 = vmul.f32 1.442695, %v5160_v50  ;;  %v5398_v29 = vpop.eup %3579  ;;  %3601 = vpow2.f32 %v896_v44 }
 0x119   : > { %v5388_v48 = vmul.f32 1.442695, %v5164_v42  ;;  %v5393_v40 = vmul.f32 1.442695, %v5171_v51  ;;  %v5396_v52 = vmul.f32 1.442695, %v5175_v8  ;;  %v5409_v18 = vpop.eup %3581  ;;  %3603 = vpow2.f32 %v898_v14 }
 0x11a   : > { %v5401_v43 = vmul.f32 1.442695, %v5182_v39  ;;  %v5404_v50 = vmul.f32 1.442695, %v5186_v6  ;;  %v5407_v42 = vmul.f32 1.442695, %v5193_v3  ;;  %v5420_v39 = vpop.eup %3583  ;;  %3605 = vpow2.f32 %v900_v25 }
 0x11b   : > { %v5412_v51 = vmul.f32 1.442695, %v5197_v47  ;;  %v5415_v8 = vmul.f32 1.442695, %v5204_v46  ;;  %v5418_v21 = vmul.f32 1.442695, %v5208_v38  ;;  %v5431_v47 = vpop.eup %3585  ;;  %3607 = vpow2.f32 %v902_v13 }
 0x11c   : > { %v5423_v6 = vmul.f32 1.442695, %v5215_v45  ;;  %v5426_v3 = vmul.f32 1.442695, %v5219_v57  ;;  %v5429_v44 = vmul.f32 1.442695, %v5226_v0  ;;  %v5441_v14 = vpop.eup %3587  ;;  %3609 = vpow2.f32 %v904_v59 }
 0x11d   : > { %8991 = vst [vmem:[#allocation149_spill] sm:$0xff] %v5418_v21  ;;  %v5434_v46 = vmul.f32 1.442695, %v5230_v33  ;;  %v5437_v38 = vmul.f32 1.442695, %v5237_v11  ;;  %v5439_v21 = vshrl.u32 %v1280_v22, 7  ;;  %v5452_v25 = vpop.eup %3589  ;;  %3611 = vpow2.f32 %v906_v12 }
 0x11e   : > { %v5444_v57 = vmul.f32 1.442695, %v5241_v34  ;;  %v5447_v0 = vmul.f32 1.442695, %v5248_v28  ;;  %v5450_v45 = vmul.f32 1.442695, %v5252_v4  ;;  %v5463_v34 = vpop.eup %3591  ;;  %3613 = vpow2.f32 %v5335_v54 }
 0x11f   : > { %8992 = vst [vmem:[#allocation150_spill] sm:$0xff] %v5439_v21  ;;  %v5455_v11 = vmul.f32 1.442695, %v5259_v10  ;;  %v5458_v22 = vmul.f32 1.442695, %v5263_v61  ;;  %v5474_v10 = vpop.eup %3593  ;;  %v5484_v12 = vsub.s32 0, %v5439_v21  ;;  %3615 = vpow2.f32 %v5340_v7 }
 0x120   : > { %v5461_v13 = vmul.f32 1.442695, %v5270_v16  ;;  %v5466_v28 = vmul.f32 1.442695, %v5274_v37  ;;  %v5469_v4 = vmul.f32 1.442695, %v5281_v26  ;;  %v5486_v37 = vpop.eup %3595  ;;  %3617 = vpow2.f32 %v928_v2 }
 0x121   : > { %8993 = vst [vmem:[#allocation151_spill] sm:$0xff] %v5458_v22  ;;  %v5472_v59 = vmul.f32 1.442695, %v5285_v24  ;;  %v5478_v61 = vmul.f32 1.442695, %v5292_v41  ;;  %v5490_v24 = vsub.s32 1, %v5439_v21  ;;  %v5498_v41 = vpop.eup %3597  ;;  %3619 = vpow2.f32 %v5343_v56 }
 0x122   : > { %8994 = vst [vmem:[#allocation152_spill] sm:$0xff] %v5461_v13  ;;  %8995 = vst [vmem:[#allocation153_spill] sm:$0xff] %v5466_v28  ;;  %v5481_v16 = vmul.f32 1.442695, %v5296_v58  ;;  %v5493_v26 = vsub.s32 2, %v5439_v21  ;;  %v5496_v54 = vsub.s32 3, %v5439_v21  ;;  %3621 = vpow2.f32 %v5374_v49 }
 0x123   : > { %8996 = vst [vmem:[#allocation154_spill] sm:$0xff] %v5469_v4  ;;  %8997 = vst [vmem:[#allocation155_spill] sm:$0xff] %v5472_v59  ;;  %v5501_v58 = vmul.f32 1.442695, %v5303_v1  ;;  %v5504_v33 = vsub.s32 4, %v5439_v21  ;;  %v5507_v7 = vsub.s32 5, %v5439_v21  ;;  %3623 = vpow2.f32 %v5346_v60 }
 0x124   : > { %8998 = vst [vmem:[#allocation156_spill] sm:$0xff] %v5478_v61  ;;  %8999 = vst [vmem:[#allocation157_spill] sm:$0xff] %v5481_v16  ;;  %v5509_v16 = vpop.eup %3599  ;;  %v5513_v61 = vmul.f32 1.442695, %v5307_v62  ;;  %v5516_v59 = vadd.s32 8, %v5439_v21  ;;  %v5519_v2 = vsub.s32 6, %v5439_v21  ;;  %3625 = vpow2.f32 %v5377_v63 }
 0x125   : > { %9000 = vst [vmem:[#allocation158_spill] sm:$0xff] %v5501_v58  ;;  %v5521_v1 = vpop.eup %3601  ;;  %v5525_v58 = vadd.s32 16, %v5439_v21  ;;  %v9004_v4 = vld [vmem:[#allocation96_spill] sm:$0xff]  ;;  %v5532_v56 = vsub.s32 7, %v5439_v21  ;;  %3627 = vpow2.f32 %v5351_v20 }
 0x126   : > { %9001 = vst [vmem:[#allocation159_spill] sm:$0xff] %v5513_v61  ;;  %9002 = vst [vmem:[#allocation160_spill] sm:$0xff] %v5516_v59  ;;  %v5529_v28 = vrot.slane %v9004_v4, %v5484_v12  ;;  %v5534_v62 = vpop.eup %3603  ;;  %v5539_v59 = vrot.slane %v9004_v4, %v5490_v24  ;;  %v5543_v49 = vrot.slane %v9004_v4, %v5493_v26  ;;  %3629 = vpow2.f32 %v5382_v35 }
 0x127   : > { %9003 = vst [vmem:[#allocation161_spill] sm:$0xff] %v5525_v58  ;;  %v5547_v58 = vrot.slane %v9004_v4, %v5496_v54  ;;  %v5554_v21 = vrot.slane %v9004_v4, %v5504_v33  ;;  %v5558_v60 = vrot.slane %v9004_v4, %v5507_v7  ;;  %3631 = vpow2.f32 %v5354_v53  ;;  %v9023_v53 = vld [vmem:[#allocation99_spill] sm:$0xff] }
 0x128   : > { %9005 = vst [vmem:[#allocation96_spill] sm:$0xff] %v5529_v28  ;;  %9006 = vst [vmem:[#allocation162_spill] sm:$0xff] %v5539_v59  ;;  %v5549_v28 = vpop.eup %3605  ;;  %v9011_v59 = vld [vmem:[#allocation98_spill] sm:$0xff]  ;;  %3633 = vpow2.f32 %v5357_v27  ;;  %v5616_v13 = vrot.slane %v9023_v53, %v5484_v12  ;;  %v5629_v27 = vrot.slane %v9023_v53, %v5493_v26 }
 0x129   : > { %9007 = vst [vmem:[#allocation163_spill] sm:$0xff] %v5543_v49  ;;  %9008 = vst [vmem:[#allocation164_spill] sm:$0xff] %v5547_v58  ;;  %v5562_v61 = vrot.slane %v9011_v59, %v5484_v12  ;;  %v5564_v49 = vpop.eup %3607  ;;  %v5569_v58 = vrot.slane %v9004_v4, %v5519_v2  ;;  %v5573_v63 = vrot.slane %v9011_v59, %v5490_v24  ;;  %3635 = vpow2.f32 %v5385_v31 }
 0x12a   : > { %9009 = vst [vmem:[#allocation165_spill] sm:$0xff] %v5554_v21  ;;  %9010 = vst [vmem:[#allocation166_spill] sm:$0xff] %v5558_v60  ;;  %v5577_v21 = vrot.slane %v9011_v59, %v5493_v26  ;;  %v5579_v60 = vpop.eup %3609  ;;  %v5588_v20 = vrot.slane %v9011_v59, %v5496_v54  ;;  %v5603_v35 = vrot.slane %v9011_v59, %v5519_v2  ;;  %3637 = vpow2.f32 %v5362_v32 }
 0x12b   : > { %9012 = vst [vmem:[#allocation98_spill] sm:$0xff] %v5562_v61  ;;  %9013 = vst [vmem:[#allocation167_spill] sm:$0xff] %v5569_v58  ;;  %v5584_v61 = vrot.slane %v9004_v4, %v5532_v56  ;;  %v5592_v58 = vrot.slane %v9011_v59, %v5504_v33  ;;  %v5607_v4 = vrot.slane %v9011_v59, %v5532_v56  ;;  %3639 = vpow2.f32 %v5365_v15  ;;  %v9036_v15 = vld [vmem:[#allocation100_spill] sm:$0xff] }
 0x12c   : > { %9014 = vst [vmem:[#allocation168_spill] sm:$0xff] %v5573_v63  ;;  %9015 = vst [vmem:[#allocation169_spill] sm:$0xff] %v5577_v21  ;;  %v5594_v63 = vpop.eup %3611  ;;  %v5599_v21 = vrot.slane %v9011_v59, %v5507_v7  ;;  %v9026_v59 = vld [vmem:[#allocation120_spill] sm:$0xff]  ;;  %v5640_v31 = vrot.slane %v9023_v53, %v5504_v33  ;;  %v5653_v32 = vrot.slane %v9023_v53, %v5519_v2  ;;  %3641 = vpow2.f32 %v5368_v23 }
 0x12d   : > { %9016 = vst [vmem:[#allocation170_spill] sm:$0xff] %v5584_v61  ;;  %9017 = vst [vmem:[#allocation171_spill] sm:$0xff] %v5588_v20  ;;  %v5609_v20 = vpop.eup %3613  ;;  %v5666_v22 = vrot.slane %v9036_v15, %v5484_v12  ;;  %3643 = vpow2.f32 %v5388_v48  ;;  %v5691_v48 = vrot.slane %v9036_v15, %v5496_v54 }
 0x12e   : > { %9018 = vst [vmem:[#allocation172_spill] sm:$0xff] %v5592_v58  ;;  %9019 = vst [vmem:[#allocation173_spill] sm:$0xff] %v5599_v21  ;;  %v9022_v58 = vld [vmem:[#allocation119_spill] sm:$0xff]  ;;  %v5620_v21 = vrot.slane %v9023_v53, %v5490_v24  ;;  %3645 = vpow2.f32 %v5393_v40  ;;  %v5701_v40 = vrot.slane %v9036_v15, %v5507_v7 }
 0x12f   : > { %9020 = vst [vmem:[#allocation174_spill] sm:$0xff] %v5603_v35  ;;  %9021 = vst [vmem:[#allocation175_spill] sm:$0xff] %v5607_v4  ;;  %v992_v61 = vadd.f32 %v5348_v9, %v9022_v58  ;;  %v5622_v35 = vpop.eup %3615  ;;  %v1001_v4 = vadd.f32 %v5359_v36, %v9026_v59  ;;  %v5633_v58 = vrot.slane %v9023_v53, %v5496_v54  ;;  %3647 = vpow2.f32 %v5396_v52 }
 0x130   : > { %9024 = vst [vmem:[#allocation119_spill] sm:$0xff] %v5616_v13  ;;  %9025 = vst [vmem:[#allocation99_spill] sm:$0xff] %v5620_v21  ;;  %v3618_v9 = vpop.eup %3617  ;;  %v9029_v13 = vld [vmem:[#allocation121_spill] sm:$0xff]  ;;  %v5644_v36 = vrot.slane %v9023_v53, %v5507_v7  ;;  %3649 = vpow2.f32 %v5401_v43  ;;  %v5714_v52 = vrot.slane %v9036_v15, %v5532_v56 }
 0x131   : > { %9027 = vst [vmem:[#allocation120_spill] sm:$0xff] %v5629_v27  ;;  %9028 = vst [vmem:[#allocation176_spill] sm:$0xff] %v5633_v58  ;;  %v1010_v21 = vadd.f32 %v5370_v19, %v9029_v13  ;;  %v5646_v59 = vpop.eup %3619  ;;  %v9032_v27 = vld [vmem:[#allocation122_spill] sm:$0xff]  ;;  %v5657_v19 = vrot.slane %v9023_v53, %v5532_v56  ;;  %v993_v53 = vsel %vm8486_vm0, %v3618_v9, 0.0  ;;  %v5695_v9 = vrot.slane %v9036_v15, %v5504_v33 }
 0x132   : > { %9030 = vst [vmem:[#allocation121_spill] sm:$0xff] %v5640_v31  ;;  %9031 = vst [vmem:[#allocation177_spill] sm:$0xff] %v5644_v36  ;;  %v1019_v58 = vadd.f32 %v5379_v55, %v9032_v27  ;;  %v3622_v13 = vpop.eup %3621  ;;  %v9035_v31 = vld [vmem:[#allocation123_spill] sm:$0xff]  ;;  %v5670_v55 = vrot.slane %v9036_v15, %v5490_v24  ;;  %v994_v54 = vadd.f32 %v993_v53, %v992_v61  ;;  %3651 = vpow2.f32 %v5404_v50  ;;  %v9050_v53 = vld [vmem:[#allocation129_spill] sm:$0xff] }
 0x133   : > { %9033 = vst [vmem:[#allocation122_spill] sm:$0xff] %v5653_v32  ;;  %9034 = vst [vmem:[#allocation178_spill] sm:$0xff] %v5657_v19  ;;  %v5662_v36 = vadd.f32 %v5390_v30, %v9035_v31  ;;  %v5672_v27 = vpop.eup %3623  ;;  %v9039_v19 = vld [vmem:[#allocation124_spill] sm:$0xff]  ;;  %v5682_v30 = vrot.slane %v9036_v15, %v5493_v26  ;;  %v9041_v31 = vld [vmem:[#allocation125_spill] sm:$0xff]  ;;  %v1002_v26 = vsel %vm8486_vm0, %v3622_v13, 0.0  ;;  %3653 = vpow2.f32 %v5407_v42 }
 0x134   : > { %9037 = vst [vmem:[#allocation123_spill] sm:$0xff] %v5666_v22  ;;  %9038 = vst [vmem:[#allocation100_spill] sm:$0xff] %v5670_v55  ;;  %v5678_v23 = vadd.f32 %v5398_v29, %v9039_v19  ;;  %v3626_v12 = vpop.eup %3625  ;;  %v5687_v24 = vadd.f32 %v5409_v18, %v9041_v31  ;;  %v5705_v18 = vrot.slane %v9036_v15, %v5519_v2  ;;  %v9046_v31 = vld [vmem:[#allocation126_spill] sm:$0xff]  ;;  %3655 = vpow2.f32 %v5412_v51 }
 0x135   : > { %9040 = vst [vmem:[#allocation124_spill] sm:$0xff] %v5682_v30  ;;  %9042 = vst [vmem:[#allocation125_spill] sm:$0xff] %v5691_v48  ;;  %v3628_v29 = vpop.eup %3627  ;;  %v5710_v33 = vadd.f32 %v5420_v39, %v9046_v31  ;;  %v1011_v7 = vsel %vm8486_vm0, %v3626_v12, 0.0  ;;  %v1003_v39 = vadd.f32 %v1002_v26, %v1001_v4  ;;  %v5729_v56 = vadd.f32 %v5452_v25, %v9050_v53  ;;  %v9051_v15 = vld [vmem:[#allocation130_spill] sm:$0xff] }
 0x136   : > { %9043 = vst [vmem:[#allocation179_spill] sm:$0xff] %v5695_v9  ;;  %9044 = vst [vmem:[#allocation180_spill] sm:$0xff] %v5701_v40  ;;  %v3630_v19 = vpop.eup %3629  ;;  %v9048_v40 = vld [vmem:[#allocation127_spill] sm:$0xff]  ;;  %v5733_v50 = vadd.f32 %v5463_v34, %v9051_v15  ;;  %3657 = vpow2.f32 %v5415_v8  ;;  %v995_v25 = vrot.slane %v994_v54, 4  ;;  %v1012_v26 = vadd.f32 %v1011_v7, %v1010_v21 }
 0x137   : > { %9045 = vst [vmem:[#allocation181_spill] sm:$0xff] %v5705_v18  ;;  %9047 = vst [vmem:[#allocation126_spill] sm:$0xff] %v5714_v52  ;;  %v3632_v13 = vpop.eup %3631  ;;  %v5720_v2 = vadd.f32 %v5431_v47, %v9048_v40  ;;  %v9049_v18 = vld [vmem:[#allocation128_spill] sm:$0xff]  ;;  %v1020_v47 = vsel %vm8486_vm0, %v3630_v19, 0.0  ;;  %v9052_v40 = vld [vmem:[#allocation131_spill] sm:$0xff]  ;;  %v5748_v34 = vadd.f32 %v5498_v41, %v5178_v5  ;;  %v1004_v41 = vrot.slane %v1003_v39, 4 }
 0x138   : > { %v5724_v61 = vadd.f32 %v5441_v14, %v9049_v18  ;;  %v3634_v43 = vpop.eup %3633  ;;  %v5739_v14 = vadd.f32 %v5474_v10, %v5156_v17  ;;  %v5743_v42 = vadd.f32 %v5486_v37, %v9052_v40  ;;  %v9053_v18 = vld [vmem:[#allocation132_spill] sm:$0xff]  ;;  %v9054_v17 = vld [vmem:[#allocation133_spill] sm:$0xff]  ;;  %v9055_v37 = vld [vmem:[#allocation134_spill] sm:$0xff]  ;;  %v1021_v53 = vadd.f32 %v1020_v47, %v1019_v58 }
 0x139   : > { %v3636_v12 = vpop.eup %3635  ;;  %v5752_v19 = vadd.f32 %v5509_v16, %v9053_v18  ;;  %v5756_v10 = vadd.f32 %v5521_v1, %v9054_v17  ;;  %v5760_v31 = vadd.f32 %v5534_v62, %v9055_v37  ;;  %v9056_v8 = vld [vmem:[#allocation135_spill] sm:$0xff]  ;;  %v9057_v5 = vld [vmem:[#allocation149_spill] sm:$0xff]  ;;  %v9058_v40 = vld [vmem:[#allocation136_spill] sm:$0xff]  ;;  %v1013_v47 = vrot.slane %v1012_v26, 4 }
 0x13a   : > { %v3638_v4 = vpop.eup %3637  ;;  %v5764_v21 = vadd.f32 %v5549_v28, %v9056_v8  ;;  %3659 = vpow2.f32 %v9057_v5  ;;  %v1029_v16 = vsel %vm8486_vm0, %v3636_v12, 0.0  ;;  %v5770_v1 = vadd.f32 %v5564_v49, %v9058_v40  ;;  %v9059_v18 = vld [vmem:[#allocation137_spill] sm:$0xff]  ;;  %v9060_v17 = vld [vmem:[#allocation138_spill] sm:$0xff]  ;;  %v9061_v37 = vld [vmem:[#allocation139_spill] sm:$0xff] }
 0x13b   : > { %v3640_v51 = vpop.eup %3639  ;;  %v5774_v62 = vadd.f32 %v5579_v60, %v9059_v18  ;;  %v5778_v28 = vadd.f32 %v5594_v63, %v9060_v17  ;;  %v5782_v8 = vadd.f32 %v5609_v20, %v9061_v37  ;;  %3661 = vpow2.f32 %v5423_v6  ;;  %v9062_v5 = vld [vmem:[#allocation140_spill] sm:$0xff]  ;;  %v9063_v63 = vld [vmem:[#allocation141_spill] sm:$0xff]  ;;  %v9064_v20 = vld [vmem:[#allocation142_spill] sm:$0xff] }
 0x13c   : > { %v3642_v7 = vpop.eup %3641  ;;  %v996_v12 = vadd.f32 %v995_v25, %v994_v54  ;;  %v5787_v49 = vadd.f32 %v5622_v35, %v9062_v5  ;;  %3663 = vpow2.f32 %v5426_v3  ;;  %v1030_v60 = vadd.f32 %v1029_v16, %v5662_v36  ;;  %v9065_v35 = vld [vmem:[#allocation143_spill] sm:$0xff]  ;;  %v9066_v3 = vld [vmem:[#allocation144_spill] sm:$0xff] }
 0x13d   : > { %v3644_v15 = vpop.eup %3643  ;;  %v5793_v18 = vadd.f32 %v5646_v59, %v9063_v63  ;;  %v5797_v17 = vadd.f32 %v5672_v27, %v9064_v20  ;;  %3665 = vpow2.f32 %v5429_v44  ;;  %v1005_v54 = vadd.f32 %v1004_v41, %v1003_v39  ;;  %v9067_v59 = vld [vmem:[#allocation145_spill] sm:$0xff]  ;;  %v9068_v63 = vld [vmem:[#allocation146_spill] sm:$0xff] }
 0x13e   : > { %v3646_v58 = vpop.eup %3645  ;;  %v1022_v25 = vrot.slane %v1021_v53, 4  ;;  %v5801_v37 = vadd.f32 %v3628_v29, %v9065_v35  ;;  %3667 = vpow2.f32 %v5434_v46  ;;  %v5805_v36 = vadd.f32 %v3632_v13, %v9066_v3  ;;  %v9069_v35 = vld [vmem:[#allocation147_spill] sm:$0xff]  ;;  %v9070_v3 = vld [vmem:[#allocation148_spill] sm:$0xff] }
 0x13f   : > { %v3648_v40 = vpop.eup %3647  ;;  %v5808_v16 = vadd.f32 %v3634_v43, %v9067_v59  ;;  %v5811_v27 = vadd.f32 %v3638_v4, %v9068_v63  ;;  %3669 = vpow2.f32 %v5437_v38  ;;  %v997_v44 = vrot.slane %v996_v12, 2 }
 0x140   : > { %v3650_v6 = vpop.eup %3649  ;;  %v1014_v39 = vadd.f32 %v1013_v47, %v1012_v26  ;;  %v1038_v29 = vsel %vm8486_vm0, %v3644_v15, 0.0  ;;  %3671 = vpow2.f32 %v5444_v57  ;;  %v1031_v46 = vrot.slane %v1030_v60, 4 }
 0x141   : > { %v3652_v5 = vpop.eup %3651  ;;  %v5817_v13 = vadd.f32 %v3640_v51, %v9069_v35  ;;  %v5820_v43 = vadd.f32 %v3642_v7, %v9070_v3  ;;  %v1006_v4 = vrot.slane %v1005_v54, 2  ;;  %v1023_v63 = vadd.f32 %v1022_v25, %v1021_v53 }
 0x142   : > { %v3654_v20 = vpop.eup %3653  ;;  %v1047_v52 = vsel %vm8486_vm0, %v3646_v58, 0.0  ;;  %v1056_v38 = vsel %vm8486_vm0, %v3648_v40, 0.0  ;;  %v1039_v26 = vadd.f32 %v1038_v29, %v5678_v23  ;;  %v1065_v15 = vsel %vm8486_vm0, %v3650_v6, 0.0 }
 0x143   : > { %v3656_v41 = vpop.eup %3655  ;;  %v1074_v57 = vsel %vm8486_vm0, %v3652_v5, 0.0  ;;  %v1083_v47 = vsel %vm8486_vm0, %v3654_v20, 0.0  ;;  %3673 = vpow2.f32 %v5447_v0  ;;  %v998_v7 = vadd.f32 %v997_v44, %v996_v12 }
 0x144   : > { %v3658_v59 = vpop.eup %3657  ;;  %v1015_v35 = vrot.slane %v1014_v39, 2  ;;  %v1092_v3 = vsel %vm8486_vm0, %v3656_v41, 0.0  ;;  %v1032_v53 = vadd.f32 %v1031_v46, %v1030_v60  ;;  %v1048_v58 = vadd.f32 %v1047_v52, %v5687_v24 }
 0x145   : > { %v3660_v51 = vpop.eup %3659  ;;  %v1057_v40 = vadd.f32 %v1056_v38, %v5710_v33  ;;  %v1101_v23 = vsel %vm8486_vm0, %v3658_v59, 0.0  ;;  %3675 = vpow2.f32 %v5450_v45  ;;  %v1066_v6 = vadd.f32 %v1065_v15, %v5720_v2 }
 0x146   : > { %v3662_v25 = vpop.eup %3661  ;;  %v1075_v5 = vadd.f32 %v1074_v57, %v5724_v61  ;;  %v1084_v0 = vadd.f32 %v1083_v47, %v5729_v56  ;;  %v1007_v20 = vadd.f32 %v1006_v4, %v1005_v54  ;;  %v1024_v44 = vrot.slane %v1023_v63, 2 }
 0x147   : > { %v3664_v12 = vpop.eup %3663  ;;  %v1093_v60 = vadd.f32 %v1092_v3, %v5733_v50  ;;  %v1110_v24 = vsel %vm8486_vm0, %v3660_v51, 0.0  ;;  %3677 = vpow2.f32 %v5455_v11  ;;  %v999_v33 = vrot.slane %v998_v7, 1  ;;  %v9071_v11 = vld [vmem:[#allocation151_spill] sm:$0xff]  ;;  %v9072_v51 = vld [vmem:[#allocation152_spill] sm:$0xff] }
 0x148   : > { %v5839_v52 = vpop.eup %3665  ;;  %v1040_v29 = vrot.slane %v1039_v26, 4  ;;  %v1102_v45 = vadd.f32 %v1101_v23, %v5739_v14  ;;  %v1016_v61 = vadd.f32 %v1015_v35, %v1014_v39  ;;  %v1049_v41 = vrot.slane %v1048_v58, 4 }
 0x149   : > { %v5843_v2 = vpop.eup %3667  ;;  %v1058_v56 = vrot.slane %v1057_v40, 4  ;;  %v1111_v54 = vadd.f32 %v1110_v24, %v5743_v42  ;;  %v1033_v50 = vrot.slane %v1032_v53, 2  ;;  %v1067_v59 = vrot.slane %v1066_v6, 4 }
 0x14a   : > { %v5846_v46 = vpop.eup %3669  ;;  %v1076_v4 = vrot.slane %v1075_v5, 4  ;;  %v1085_v38 = vrot.slane %v1084_v0, 4  ;;  %3679 = vpow2.f32 %v9071_v11  ;;  %v1008_v57 = vrot.slane %v1007_v20, 1  ;;  %v9074_v11 = vld [vmem:[#allocation153_spill] sm:$0xff] }
 0x14b   : > { %v5848_v15 = vpop.eup %3671  ;;  %v1025_v47 = vadd.f32 %v1024_v44, %v1023_v63  ;;  %v1094_v14 = vrot.slane %v1093_v60, 4  ;;  %3681 = vpow2.f32 %v9072_v51  ;;  %v1041_v39 = vadd.f32 %v1040_v29, %v1039_v26 }
 0x14c   : > { %v1103_v35 = vrot.slane %v1102_v45, 4  ;;  %v1112_v3 = vrot.slane %v1111_v54, 4  ;;  %v5852_v23 = vadd.f32 %v999_v33, %v998_v7  ;;  %v1017_v42 = vrot.slane %v1016_v61, 1 }
 0x14d   : > { %v1050_v24 = vadd.f32 %v1049_v41, %v1048_v58  ;;  %v1059_v9 = vadd.f32 %v1058_v56, %v1057_v40  ;;  %v5854_v48 = vpop.eup %3673  ;;  %v1034_v30 = vadd.f32 %v1033_v50, %v1032_v53  ;;  %v1068_v55 = vadd.f32 %v1067_v59, %v1066_v6  ;;  %v9076_v40 = vld [vmem:[#allocation154_spill] sm:$0xff]  ;;  %v9078_v50 = vld [vmem:[#allocation155_spill] sm:$0xff] }
 0x14e   : > { %9073 = vst [vmem:[#allocation127_spill] sm:$0xff] %v5852_v23  ;;  %v1077_v22 = vadd.f32 %v1076_v4, %v1075_v5  ;;  %v1086_v32 = vadd.f32 %v1085_v38, %v1084_v0  ;;  %3683 = vpow2.f32 %v9074_v11  ;;  %v5857_v63 = vadd.f32 %v1008_v57, %v1007_v20 }
 0x14f   : > { %v1026_v44 = vrot.slane %v1025_v47, 1  ;;  %v1095_v51 = vadd.f32 %v1094_v14, %v1093_v60  ;;  %v5859_v26 = vpop.eup %3675  ;;  %v1042_v29 = vrot.slane %v1041_v39, 2  ;;  %v1104_v7 = vadd.f32 %v1103_v35, %v1102_v45  ;;  %v9080_v14 = vld [vmem:[#allocation156_spill] sm:$0xff] }
 0x150   : > { %9075 = vst [vmem:[#allocation128_spill] sm:$0xff] %v5857_v63  ;;  %v1113_v33 = vadd.f32 %v1112_v3, %v1111_v54  ;;  %v1119_v58 = vsel %vm8486_vm0, %v3662_v25, 0.0  ;;  %3685 = vpow2.f32 %v9076_v40  ;;  %v1051_v41 = vrot.slane %v1050_v24, 2 }
 0x151   : > { %v1060_v53 = vrot.slane %v1059_v9, 2  ;;  %v1128_v6 = vsel %vm8486_vm0, %v3664_v12, 0.0  ;;  %v5864_v5 = vpop.eup %3677  ;;  %v5866_v0 = vadd.f32 %v1017_v42, %v1016_v61  ;;  %v1069_v20 = vrot.slane %v1068_v55, 2 }
 0x152   : > { %v1078_v56 = vrot.slane %v1077_v22, 2  ;;  %v1087_v60 = vrot.slane %v1086_v32, 2  ;;  %3687 = vpow2.f32 %v9078_v50  ;;  %v1035_v59 = vrot.slane %v1034_v30, 1 }
 0x153   : > { %9077 = vst [vmem:[#allocation129_spill] sm:$0xff] %v5866_v0  ;;  %v1096_v45 = vrot.slane %v1095_v51, 2  ;;  %v1120_v54 = vadd.f32 %v1119_v58, %v5748_v34  ;;  %v5870_v25 = vadd.f32 %v1026_v44, %v1025_v47  ;;  %v1105_v4 = vrot.slane %v1104_v7, 2  ;;  %v9081_v34 = vld [vmem:[#allocation157_spill] sm:$0xff] }
 0x154   : > { %v1114_v38 = vrot.slane %v1113_v33, 2  ;;  %v1129_v57 = vadd.f32 %v1128_v6, %v5752_v19  ;;  %v3680_v12 = vpop.eup %3679  ;;  %3689 = vpow2.f32 %v9080_v14  ;;  %v1043_v61 = vadd.f32 %v1042_v29, %v1041_v39 }
 0x155   : > { %9079 = vst [vmem:[#allocation130_spill] sm:$0xff] %v5870_v25  ;;  %v1052_v35 = vadd.f32 %v1051_v41, %v1050_v24  ;;  %v1061_v3 = vadd.f32 %v1060_v53, %v1059_v9  ;;  %v3682_v42 = vpop.eup %3681  ;;  %v1070_v11 = vadd.f32 %v1069_v20, %v1068_v55  ;;  %v1079_v40 = vadd.f32 %v1078_v56, %v1077_v22  ;;  %v9083_v24 = vld [vmem:[#allocation158_spill] sm:$0xff] }
 0x156   : > { %v1088_v50 = vadd.f32 %v1087_v60, %v1086_v32  ;;  %v1137_v0 = vsel %vm8486_vm0, %v5839_v52, 0.0  ;;  %3691 = vpow2.f32 %v9081_v34  ;;  %v5877_v47 = vadd.f32 %v1035_v59, %v1034_v30 }
 0x157   : > { %v1097_v44 = vadd.f32 %v1096_v45, %v1095_v51  ;;  %v1121_v58 = vrot.slane %v1120_v54, 4  ;;  %v1106_v19 = vadd.f32 %v1105_v4, %v1104_v7  ;;  %v1115_v6 = vadd.f32 %v1114_v38, %v1113_v33 }
 0x158   : > { %9082 = vst [vmem:[#allocation131_spill] sm:$0xff] %v5877_v47  ;;  %v1130_v25 = vrot.slane %v1129_v57, 4  ;;  %v1146_v39 = vsel %vm8486_vm0, %v5843_v2, 0.0  ;;  %v3684_v9 = vpop.eup %3683  ;;  %3693 = vpow2.f32 %v9083_v24  ;;  %v1044_v22 = vrot.slane %v1043_v61, 1  ;;  %v9084_v2 = vld [vmem:[#allocation159_spill] sm:$0xff] }
 0x159   : > { %v1053_v32 = vrot.slane %v1052_v35, 1  ;;  %v1138_v55 = vadd.f32 %v1137_v0, %v5756_v10  ;;  %v1062_v52 = vrot.slane %v1061_v3, 1  ;;  %v1071_v29 = vrot.slane %v1070_v11, 1 }
 0x15a   : > { %v1080_v41 = vrot.slane %v1079_v40, 1  ;;  %v1089_v30 = vrot.slane %v1088_v50, 1  ;;  %v3686_v53 = vpop.eup %3685  ;;  %v1098_v51 = vrot.slane %v1097_v44, 1  ;;  %v1122_v20 = vadd.f32 %v1121_v58, %v1120_v54 }
 0x15b   : > { %v1147_v7 = vadd.f32 %v1146_v39, %v5760_v31  ;;  %v1155_v33 = vsel %vm8486_vm0, %v5846_v46, 0.0  ;;  %3695 = vpow2.f32 %v9084_v2  ;;  %v1107_v56 = vrot.slane %v1106_v19, 1 }
 0x15c   : > { %v1116_v60 = vrot.slane %v1115_v6, 1  ;;  %v1131_v59 = vadd.f32 %v1130_v25, %v1129_v57  ;;  %v3688_v45 = vpop.eup %3687  ;;  %v5887_v4 = vadd.f32 %v1044_v22, %v1043_v61  ;;  %v5889_v10 = vadd.f32 %v1053_v32, %v1052_v35 }
 0x15d   : > { %v1139_v0 = vrot.slane %v1138_v55, 4  ;;  %v1164_v38 = vsel %vm8486_vm0, %v5848_v15, 0.0  ;;  %v5893_v54 = vadd.f32 %v1062_v52, %v1061_v3  ;;  %v5895_v31 = vadd.f32 %v1071_v29, %v1070_v11 }
 0x15e   : > { %9085 = vst [vmem:[#allocation132_spill] sm:$0xff] %v5887_v4  ;;  %9086 = vst [vmem:[#allocation133_spill] sm:$0xff] %v5889_v10  ;;  %v5897_v14 = vadd.f32 %v1080_v41, %v1079_v40  ;;  %v1156_v46 = vadd.f32 %v1155_v33, %v5764_v21  ;;  %v3690_v34 = vpop.eup %3689  ;;  %v5900_v58 = vadd.f32 %v1089_v30, %v1088_v50  ;;  %v1123_v57 = vrot.slane %v1122_v20, 2  ;;  %v9124_v4 = vld [vmem:[#allocation125_spill] sm:$0xff] }
 0x15f   : > { %9087 = vst [vmem:[#allocation134_spill] sm:$0xff] %v5893_v54  ;;  %9088 = vst [vmem:[#allocation135_spill] sm:$0xff] %v5895_v31  ;;  %v5902_v25 = vadd.f32 %v1098_v51, %v1097_v44  ;;  %v1148_v61 = vrot.slane %v1147_v7, 4  ;;  %v5904_v35 = vadd.f32 %v1107_v56, %v1106_v19  ;;  %v5906_v39 = vadd.f32 %v1116_v60, %v1115_v6  ;;  %v9130_v54 = vld [vmem:[#allocation180_spill] sm:$0xff]  ;;  %v9131_v10 = vld [vmem:[#allocation181_spill] sm:$0xff] }
 0x160   : > { %9089 = vst [vmem:[#allocation149_spill] sm:$0xff] %v5897_v14  ;;  %9090 = vst [vmem:[#allocation136_spill] sm:$0xff] %v5900_v58  ;;  %v1132_v15 = vrot.slane %v1131_v59, 2  ;;  %v1165_v3 = vadd.f32 %v1164_v38, %v5770_v1  ;;  %v3692_v11 = vpop.eup %3691  ;;  %v1140_v24 = vadd.f32 %v1139_v0, %v1138_v55  ;;  %v1173_v40 = vsel %vm8486_vm0, %v5854_v48, 0.0 }
 0x161   : > { %9091 = vst [vmem:[#allocation137_spill] sm:$0xff] %v5902_v25  ;;  %9092 = vst [vmem:[#allocation138_spill] sm:$0xff] %v5904_v35  ;;  %v1182_v21 = vsel %vm8486_vm0, %v5859_v26, 0.0  ;;  %v1191_v50 = vsel %vm8486_vm0, %v5864_v5, 0.0  ;;  %v1157_v44 = vrot.slane %v1156_v46, 4  ;;  %v1200_v19 = vsel %vm8486_vm0, %v3680_v12, 0.0 }
 0x162   : > { %9093 = vst [vmem:[#allocation139_spill] sm:$0xff] %v5906_v39  ;;  %v1209_v6 = vsel %vm8486_vm0, %v3682_v42, 0.0  ;;  %v1218_v22 = vsel %vm8486_vm0, %v3684_v9, 0.0  ;;  %v3694_v32 = vpop.eup %3693  ;;  %v1124_v1 = vadd.f32 %v1123_v57, %v1122_v20  ;;  %v1149_v52 = vadd.f32 %v1148_v61, %v1147_v7  ;;  %v9129_v39 = vld [vmem:[#allocation179_spill] sm:$0xff] }
 0x163   : > { %v1227_v55 = vsel %vm8486_vm0, %v3686_v53, 0.0  ;;  %v1236_v48 = vsel %vm8486_vm0, %v3688_v45, 0.0  ;;  %v1166_v29 = vrot.slane %v1165_v3, 4  ;;  %v1174_v26 = vadd.f32 %v1173_v40, %v5774_v62 }
 0x164   : > { %v1183_v41 = vadd.f32 %v1182_v21, %v5778_v28  ;;  %v1192_v5 = vadd.f32 %v1191_v50, %v5782_v8  ;;  %v1201_v12 = vadd.f32 %v1200_v19, %v5787_v49  ;;  %v1210_v42 = vadd.f32 %v1209_v6, %v5793_v18 }
 0x165   : > { %v1219_v9 = vadd.f32 %v1218_v22, %v5797_v17  ;;  %v1245_v30 = vsel %vm8486_vm0, %v3690_v34, 0.0  ;;  %v3696_v51 = vpop.eup %3695  ;;  %v1133_v20 = vadd.f32 %v1132_v15, %v1131_v59  ;;  %v1141_v53 = vrot.slane %v1140_v24, 2 }
 0x166   : > { %v1228_v7 = vadd.f32 %v1227_v55, %v5801_v37  ;;  %v1237_v33 = vadd.f32 %v1236_v48, %v5805_v36  ;;  %v1125_v62 = vrot.slane %v1124_v1, 1  ;;  %v1150_v2 = vrot.slane %v1149_v52, 2 }
 0x167   : > { %v1158_v28 = vadd.f32 %v1157_v44, %v1156_v46  ;;  %v1246_v8 = vadd.f32 %v1245_v30, %v5808_v16  ;;  %v1167_v56 = vadd.f32 %v1166_v29, %v1165_v3  ;;  %v1175_v49 = vrot.slane %v1174_v26, 4 }
 0x168   : > { %v1184_v60 = vrot.slane %v1183_v41, 4  ;;  %v1254_v18 = vsel %vm8486_vm0, %v3692_v11, 0.0  ;;  %v1193_v17 = vrot.slane %v1192_v5, 4  ;;  %v1202_v45 = vrot.slane %v1201_v12, 4 }
 0x169   : > { %v1211_v0 = vrot.slane %v1210_v42, 4  ;;  %v1220_v38 = vrot.slane %v1219_v9, 4  ;;  %v1134_v59 = vrot.slane %v1133_v20, 1  ;;  %v1229_v34 = vrot.slane %v1228_v7, 4 }
 0x16a   : > { %v1238_v57 = vrot.slane %v1237_v33, 4  ;;  %v1255_v37 = vadd.f32 %v1254_v18, %v5811_v27  ;;  %v5932_v36 = vadd.f32 %v1125_v62, %v1124_v1  ;;  %v5934_v61 = vadd.f32 %v1141_v53, %v1140_v24 }
 0x16b   : > { %v1159_v46 = vrot.slane %v1158_v28, 2  ;;  %v1247_v16 = vrot.slane %v1246_v8, 4  ;;  %v1176_v15 = vadd.f32 %v1175_v49, %v1174_v26  ;;  %v1185_v3 = vadd.f32 %v1184_v60, %v1183_v41 }
 0x16c   : > { %9094 = vst [vmem:[#allocation140_spill] sm:$0xff] %v5932_v36  ;;  %v1256_v40 = vrot.slane %v1255_v37, 4  ;;  %v1263_v11 = vsel %vm8486_vm0, %v3694_v32, 0.0  ;;  %v1194_v21 = vadd.f32 %v1193_v17, %v1192_v5  ;;  %v1203_v50 = vadd.f32 %v1202_v45, %v1201_v12  ;;  %v9119_v36 = vld [vmem:[#allocation122_spill] sm:$0xff] }
 0x16d   : > { %v1212_v44 = vadd.f32 %v1211_v0, %v1210_v42  ;;  %v1221_v19 = vadd.f32 %v1220_v38, %v1219_v9  ;;  %v1230_v6 = vadd.f32 %v1229_v34, %v1228_v7  ;;  %v1239_v22 = vadd.f32 %v1238_v57, %v1237_v33  ;;  %v9097_v38 = vld [vmem:[#allocation150_spill] sm:$0xff] }
 0x16e   : > { %v1264_v55 = vadd.f32 %v1263_v11, %v5817_v13  ;;  %v1272_v27 = vsel %vm8486_vm0, %v3696_v51, 0.0  ;;  %v5939_v1 = vadd.f32 %v1150_v2, %v1149_v52  ;;  %v1168_v24 = vrot.slane %v1167_v56, 2 }
 0x16f   : > { %v1248_v48 = vadd.f32 %v1247_v16, %v1246_v8  ;;  %v1257_v29 = vadd.f32 %v1256_v40, %v1255_v37  ;;  %v1177_v26 = vrot.slane %v1176_v15, 2  ;;  %v1186_v41 = vrot.slane %v1185_v3, 2  ;;  %v9101_v16 = vld [vmem:[#allocation165_spill] sm:$0xff]  ;;  %v9104_v40 = vld [vmem:[#allocation170_spill] sm:$0xff] }
 0x170   : > { %v1265_v30 = vrot.slane %v1264_v55, 4  ;;  %v1273_v32 = vadd.f32 %v1272_v27, %v5820_v43  ;;  %v1195_v5 = vrot.slane %v1194_v21, 2  ;;  %v1204_v12 = vrot.slane %v1203_v50, 2 }
 0x171   : > { %v1213_v42 = vrot.slane %v1212_v44, 2  ;;  %v1222_v9 = vrot.slane %v1221_v19, 2  ;;  %v1231_v53 = vrot.slane %v1230_v6, 2  ;;  %v1240_v7 = vrot.slane %v1239_v22, 2 }
 0x172   : > { %v1266_v33 = vadd.f32 %v1265_v30, %v1264_v55  ;;  %v1274_v13 = vrot.slane %v1273_v32, 4  ;;  %v5942_v62 = vadd.f32 %v1134_v59, %v1133_v20  ;;  %v5944_v52 = vadd.f32 %v1159_v46, %v1158_v28  ;;  %v9096_v20 = vld [vmem:[#allocation96_spill] sm:$0xff]  ;;  %v9098_v28 = vld [vmem:[#allocation162_spill] sm:$0xff]  ;;  %v9108_v55 = vld [vmem:[#allocation171_spill] sm:$0xff] }
 0x173   : > { %v1249_v51 = vrot.slane %v1248_v48, 2  ;;  %v1258_v2 = vrot.slane %v1257_v29, 2  ;;  %v5946_v8 = vadd.f32 %v1168_v24, %v1167_v56  ;;  %v5948_v49 = vadd.f32 %v1177_v26, %v1176_v15  ;;  %v9099_v56 = vld [vmem:[#allocation163_spill] sm:$0xff]  ;;  %v9100_v59 = vld [vmem:[#allocation164_spill] sm:$0xff]  ;;  %v9102_v15 = vld [vmem:[#allocation166_spill] sm:$0xff] }
 0x174   : > { %9095 = vst [vmem:[#allocation141_spill] sm:$0xff] %v5942_v62  ;;  %v1267_v60 = vrot.slane %v1266_v33, 2  ;;  %v1275_v43 = vadd.f32 %v1274_v13, %v1273_v32  ;;  %v5950_v18 = vadd.f32 %v1186_v41, %v1185_v3  ;;  %v5952_v17 = vadd.f32 %v1195_v5, %v1194_v21  ;;  %v9103_v3 = vld [vmem:[#allocation167_spill] sm:$0xff]  ;;  %v9109_v26 = vld [vmem:[#allocation172_spill] sm:$0xff]  ;;  %v9110_v41 = vld [vmem:[#allocation173_spill] sm:$0xff] }
 0x175   : > { %v5954_v45 = vadd.f32 %v1204_v12, %v1203_v50  ;;  %v5956_v0 = vadd.f32 %v1213_v42, %v1212_v44  ;;  %vm8487_vm5 = vcmp.eq.s32.totalorder %v9097_v38, %v9096_v20  ;;  %vm8488_vm6 = vcmp.eq.s32.totalorder %v9097_v38, %v9098_v28  ;;  %v9111_v30 = vld [vmem:[#allocation174_spill] sm:$0xff]  ;;  %v9112_v32 = vld [vmem:[#allocation175_spill] sm:$0xff]  ;;  %v9116_v13 = vld [vmem:[#allocation176_spill] sm:$0xff] }
 0x176   : > { %vm8492_vm7 = vcmp.eq.s32.totalorder %v9097_v38, %v9099_v56  ;;  %vm8490_vm8 = vcmp.eq.s32.totalorder %v9097_v38, %v9100_v59  ;;  %v5966_v34 = vadd.f32 %v1222_v9, %v1221_v19  ;;  %v5968_v57 = vadd.f32 %v1231_v53, %v1230_v6  ;;  %v9105_v19 = vld [vmem:[#allocation98_spill] sm:$0xff]  ;;  %v9106_v6 = vld [vmem:[#allocation168_spill] sm:$0xff]  ;;  %v9113_v53 = vld [vmem:[#allocation119_spill] sm:$0xff] }
 0x177   : > { %v5970_v37 = vadd.f32 %v1240_v7, %v1239_v22  ;;  %v1276_v46 = vrot.slane %v1275_v43, 2  ;;  %vm8489_vm9 = vcmp.eq.s32.totalorder %v9097_v38, %v9101_v16  ;;  %vm8491_vm10 = vcmp.eq.s32.totalorder %v9097_v38, %v9102_v15  ;;  %v9107_v22 = vld [vmem:[#allocation169_spill] sm:$0xff]  ;;  %v9114_v7 = vld [vmem:[#allocation99_spill] sm:$0xff] }
 0x178   : > { %vm8494_vm11 = vcmp.eq.s32.totalorder %v9097_v38, %v9103_v3  ;;  %vm8493_vm12 = vcmp.eq.s32.totalorder %v9097_v38, %v9104_v40  ;;  %v1143_v11 = vrot.slane %v5934_v61, 1  ;;  %v5981_v21 = vadd.f32 %v1249_v51, %v1248_v48  ;;  %v9118_v62 = vld [vmem:[#allocation177_spill] sm:$0xff] }
 0x179   : > { %v5983_v50 = vadd.f32 %v1258_v2, %v1257_v29  ;;  %v5985_v44 = vadd.f32 %v1267_v60, %v1266_v33  ;;  %vm8495_vm13 = vcmp.eq.s32.totalorder %v9097_v38, %v9105_v19  ;;  %v1152_v27 = vrot.slane %v5939_v1, 1  ;;  %v9115_v33 = vld [vmem:[#allocation120_spill] sm:$0xff] }
 0x17a   : > { %v1161_v24 = vrot.slane %v5944_v52, 1  ;;  %v1170_v48 = vrot.slane %v5946_v8, 1  ;;  %v1277_v29 = vadd.f32 %v1276_v46, %v1275_v43  ;;  %v1179_v5 = vrot.slane %v5948_v49, 1  ;;  %v9117_v46 = vld [vmem:[#allocation121_spill] sm:$0xff] }
 0x17b   : > { %v1188_v12 = vrot.slane %v5950_v18, 1  ;;  %v1197_v42 = vrot.slane %v5952_v17, 1  ;;  %v1206_v9 = vrot.slane %v5954_v45, 1  ;;  %v1215_v51 = vrot.slane %v5956_v0, 1 }
 0x17c   : > { %v1224_v2 = vrot.slane %v5966_v34, 1  ;;  %v1233_v60 = vrot.slane %v5968_v57, 1  ;;  %v1242_v43 = vrot.slane %v5970_v37, 1  ;;  %v1251_v35 = vrot.slane %v5981_v21, 1 }
 0x17d   : > { %v1260_v25 = vrot.slane %v5983_v50, 1  ;;  %v1269_v58 = vrot.slane %v5985_v44, 1  ;;  %v1278_v14 = vrot.slane %v1277_v29, 1  ;;  %v6042_v47 = vadd.f32 %v1143_v11, %v5934_v61  ;;  %v9132_v61 = vld [vmem:[#allocation126_spill] sm:$0xff] }
 0x17e   : > { %v6045_v63 = vadd.f32 %v1152_v27, %v5939_v1  ;;  %v6048_v23 = vadd.f32 %v1161_v24, %v5944_v52  ;;  %v6051_v31 = vadd.f32 %v1170_v48, %v5946_v8  ;;  %v6062_v1 = vadd.f32 %v1179_v5, %v5948_v49  ;;  %v9137_v27 = vld [vmem:[#allocation160_spill] sm:$0xff]  ;;  %v9150_v48 = vld [vmem:[#allocation23_spill] sm:$0xff] }
 0x17f   : > { %9125 = vst [vmem:[#allocation142_spill] sm:$0xff] %v6042_v47  ;;  %v6065_v52 = vadd.f32 %v1188_v12, %v5950_v18  ;;  %v6068_v8 = vadd.f32 %v1197_v42, %v5952_v17  ;;  %v6071_v11 = vadd.f32 %v1206_v9, %v5954_v45  ;;  %v6082_v49 = vadd.f32 %v1215_v51, %v5956_v0  ;;  %v9151_v5 = vld [vmem:[#allocation24_spill] sm:$0xff]  ;;  %v9152_v42 = vld [vmem:[#allocation25_spill] sm:$0xff]  ;;  %v9153_v51 = vld [vmem:[#allocation26_spill] sm:$0xff] }
 0x180   : > { %9126 = vst [vmem:[#allocation143_spill] sm:$0xff] %v6045_v63  ;;  %9127 = vst [vmem:[#allocation144_spill] sm:$0xff] %v6048_v23  ;;  %v6085_v18 = vadd.f32 %v1224_v2, %v5966_v34  ;;  %v6088_v17 = vadd.f32 %v1233_v60, %v5968_v57  ;;  %v6091_v45 = vadd.f32 %v1242_v43, %v5970_v37  ;;  %v6170_v12 = vsel %vm8491_vm10, %v9151_v5, 0.0  ;;  %v9154_v60 = vld [vmem:[#allocation178_spill] sm:$0xff]  ;;  %v9155_v43 = vld [vmem:[#allocation31_spill] sm:$0xff] }
 0x181   : > { %9128 = vst [vmem:[#allocation145_spill] sm:$0xff] %v6051_v31  ;;  %9133 = vst [vmem:[#allocation146_spill] sm:$0xff] %v6062_v1  ;;  %v6102_v0 = vadd.f32 %v1251_v35, %v5981_v21  ;;  %v6105_v34 = vadd.f32 %v1260_v25, %v5983_v50  ;;  %v6108_v57 = vadd.f32 %v1269_v58, %v5985_v44  ;;  %v9147_v25 = vld [vmem:[#allocation16_spill] sm:$0xff]  ;;  %v9148_v21 = vld [vmem:[#allocation17_spill] sm:$0xff]  ;;  %v6176_v9 = vsel %vm8494_vm11, %v9152_v42, 0.0 }
 0x182   : > { %9134 = vst [vmem:[#allocation147_spill] sm:$0xff] %v6065_v52  ;;  %9135 = vst [vmem:[#allocation148_spill] sm:$0xff] %v6068_v8  ;;  %v6110_v37 = vadd.f32 %v1278_v14, %v1277_v29  ;;  %vm8497_vm3 = vcmp.eq.s32.totalorder %v9137_v27, %v9106_v6  ;;  %vm8499_vm2 = vcmp.eq.s32.totalorder %v9137_v27, %v9107_v22  ;;  %v9146_v14 = vld [vmem:[#allocation15_spill] sm:$0xff]  ;;  %v6138_v35 = vsel %vm8488_vm6, %v9147_v25, 0.0  ;;  %v9149_v44 = vld [vmem:[#allocation18_spill] sm:$0xff] }
 0x183   : > { %9136 = vst [vmem:[#allocation151_spill] sm:$0xff] %v6071_v11  ;;  %9138 = vst [vmem:[#allocation152_spill] sm:$0xff] %v6082_v49  ;;  %vm8498_vm1 = vcmp.eq.s32.totalorder %v9137_v27, %v9108_v55  ;;  %vm8500_vm0 = vcmp.eq.s32.totalorder %v9137_v27, %v9109_v26  ;;  %vm8501_vm15 = vcmp.eq.s32.totalorder %v9137_v27, %v9110_v41  ;;  %v6132_v58 = vsel %vm8487_vm5, %v9146_v14, 0.0  ;;  %v9156_v25 = vld [vmem:[#allocation32_spill] sm:$0xff]  ;;  %v9160_v5 = vld [vmem:[#allocation34_spill] sm:$0xff] }
 0x184   : > { %9139 = vst [vmem:[#allocation153_spill] sm:$0xff] %v6085_v18  ;;  %9140 = vst [vmem:[#allocation154_spill] sm:$0xff] %v6088_v17  ;;  %v6144_v50 = vsel %vm8492_vm7, %v9148_v21, 0.0  ;;  %v6150_v24 = vsel %vm8490_vm8, %v9149_v44, 0.0  ;;  %vm1460_vm5 = vcmp.eq.s32.totalorder %v9137_v27, %v9113_v53  ;;  %vm1461_vm4 = vcmp.eq.s32.totalorder %v9137_v27, %v9114_v7  ;;  %v9158_v44 = vld [vmem:[#allocation33_spill] sm:$0xff]  ;;  %v9197_v1 = vld [vmem:[#allocation56_spill] sm:$0xff] }
 0x185   : > { %9141 = vst [vmem:[#allocation155_spill] sm:$0xff] %v6091_v45  ;;  %9142 = vst [vmem:[#allocation156_spill] sm:$0xff] %v6102_v0  ;;  %vm8505_vm6 = vcmp.eq.s32.totalorder %v9137_v27, %v9115_v33  ;;  %vm8502_vm14 = vcmp.eq.s32.totalorder %v9137_v27, %v9116_v13  ;;  %v6164_v29 = vsel %vm8489_vm9, %v9150_v48, 0.0  ;;  %v6182_v2 = vsel %vm8493_vm12, %v9153_v51, 0.0  ;;  %v9163_v51 = vld [vmem:[#allocation123_spill] sm:$0xff]  ;;  %v9175_v45 = vld [vmem:[#allocation42_spill] sm:$0xff] }
 0x186   : > { %9143 = vst [vmem:[#allocation157_spill] sm:$0xff] %v6105_v34  ;;  %9144 = vst [vmem:[#allocation158_spill] sm:$0xff] %v6108_v57  ;;  %vm8503_vm9 = vcmp.eq.s32.totalorder %v9137_v27, %v9117_v46  ;;  %v6196_v14 = vsel %vm8495_vm13, %v9155_v43, 0.0  ;;  %vm9157_vm12 = vcmp.eq.s32.totalorder %v9097_v38, %v9106_v6  ;;  %vm9159_vm11 = vcmp.eq.s32.totalorder %v9097_v38, %v9107_v22  ;;  %v9164_v43 = vld [vmem:[#allocation100_spill] sm:$0xff]  ;;  %v9172_v34 = vld [vmem:[#allocation41_spill] sm:$0xff] }
 0x187   : > { %9145 = vst [vmem:[#allocation159_spill] sm:$0xff] %v6110_v37  ;;  %v6202_v21 = vsel %vm9157_vm12, %v9156_v25, 0.0  ;;  %v6208_v48 = vsel %vm9159_vm11, %v9158_v44, 0.0  ;;  %vm9161_vm7 = vcmp.eq.s32.totalorder %v9097_v38, %v9108_v55  ;;  %v9165_v25 = vld [vmem:[#allocation124_spill] sm:$0xff]  ;;  %v9166_v44 = vld [vmem:[#allocation39_spill] sm:$0xff]  ;;  %vm9167_vm11 = vcmp.eq.s32.totalorder %v9097_v38, %v9109_v26  ;;  %v9184_v18 = vld [vmem:[#allocation49_spill] sm:$0xff] }
 0x188   : > { %v6214_v42 = vsel %vm9161_vm7, %v9160_v5, 0.0  ;;  %v6228_v37 = vsel %vm9167_vm11, %v9166_v44, 0.0  ;;  %v9169_v5 = vld [vmem:[#allocation40_spill] sm:$0xff]  ;;  %vm9170_vm7 = vcmp.eq.s32.totalorder %v9097_v38, %v9110_v41  ;;  %vm9173_vm10 = vcmp.eq.s32.totalorder %v9097_v38, %v9111_v30  ;;  %v9187_v11 = vld [vmem:[#allocation53_spill] sm:$0xff] }
 0x189   : > { %9162 = vst [vmem:[#allocation15_spill] sm:$0xff] %v6214_v42  ;;  %9168 = vst [vmem:[#allocation16_spill] sm:$0xff] %v6228_v37  ;;  %v6234_v57 = vsel %vm9170_vm7, %v9169_v5, 0.0  ;;  %v6240_v0 = vsel %vm9173_vm10, %v9172_v34, 0.0  ;;  %vm9176_vm8 = vcmp.eq.s32.totalorder %v9097_v38, %v9112_v32  ;;  %v9178_v34 = vld [vmem:[#allocation47_spill] sm:$0xff]  ;;  %vm9179_vm10 = vcmp.eq.s32.totalorder %v9097_v38, %v9113_v53  ;;  %v9200_v23 = vld [vmem:[#allocation61_spill] sm:$0xff] }
 0x18a   : > { %9171 = vst [vmem:[#allocation17_spill] sm:$0xff] %v6234_v57  ;;  %9174 = vst [vmem:[#allocation18_spill] sm:$0xff] %v6240_v0  ;;  %v6246_v17 = vsel %vm9176_vm8, %v9175_v45, 0.0  ;;  %v6260_v44 = vsel %vm9179_vm10, %v9178_v34, 0.0  ;;  %v9181_v45 = vld [vmem:[#allocation48_spill] sm:$0xff]  ;;  %vm9182_vm8 = vcmp.eq.s32.totalorder %v9097_v38, %v9114_v7  ;;  %vm9185_vm12 = vcmp.eq.s32.totalorder %v9097_v38, %v9115_v33  ;;  %v9190_v34 = vld [vmem:[#allocation161_spill] sm:$0xff] }
 0x18b   : > { %9177 = vst [vmem:[#allocation23_spill] sm:$0xff] %v6246_v17  ;;  %9180 = vst [vmem:[#allocation24_spill] sm:$0xff] %v6260_v44  ;;  %v6266_v5 = vsel %vm9182_vm8, %v9181_v45, 0.0  ;;  %v6272_v49 = vsel %vm9185_vm12, %v9184_v18, 0.0  ;;  %vm9188_vm13 = vcmp.eq.s32.totalorder %v9097_v38, %v9116_v13  ;;  %v9191_v18 = vld [vmem:[#allocation54_spill] sm:$0xff]  ;;  %vm9192_vm12 = vcmp.eq.s32.totalorder %v9097_v38, %v9117_v46  ;;  %v9209_v47 = vld [vmem:[#allocation64_spill] sm:$0xff] }
 0x18c   : > { %9183 = vst [vmem:[#allocation25_spill] sm:$0xff] %v6266_v5  ;;  %9186 = vst [vmem:[#allocation26_spill] sm:$0xff] %v6272_v49  ;;  %v6278_v8 = vsel %vm9188_vm13, %v9187_v11, 0.0  ;;  %v6292_v45 = vsel %vm9192_vm12, %v9191_v18, 0.0  ;;  %v9194_v11 = vld [vmem:[#allocation55_spill] sm:$0xff]  ;;  %vm9195_vm13 = vcmp.eq.s32.totalorder %v9097_v38, %v9118_v62  ;;  %vm9198_vm7 = vcmp.eq.s32.totalorder %v9097_v38, %v9119_v36  ;;  %v9246_v5 = vld [vmem:[#allocation37_spill] sm:$0xff] }
 0x18d   : > { %9189 = vst [vmem:[#allocation31_spill] sm:$0xff] %v6278_v8  ;;  %9193 = vst [vmem:[#allocation32_spill] sm:$0xff] %v6292_v45  ;;  %v6298_v52 = vsel %vm9195_vm13, %v9194_v11, 0.0  ;;  %v6304_v31 = vsel %vm9198_vm7, %v9197_v1, 0.0  ;;  %vm9201_vm11 = vcmp.eq.s32.totalorder %v9097_v38, %v9154_v60  ;;  %v9203_v1 = vld [vmem:[#allocation62_spill] sm:$0xff]  ;;  %vm9204_vm7 = vcmp.eq.s32.totalorder %v9097_v38, %v9163_v51  ;;  %v9254_v57 = vld [vmem:[#allocation45_spill] sm:$0xff] }
 0x18e   : > { %9196 = vst [vmem:[#allocation33_spill] sm:$0xff] %v6298_v52  ;;  %9199 = vst [vmem:[#allocation34_spill] sm:$0xff] %v6304_v31  ;;  %v6310_v63 = vsel %vm9201_vm11, %v9200_v23, 0.0  ;;  %v6324_v18 = vsel %vm9204_vm7, %v9203_v1, 0.0  ;;  %v9206_v23 = vld [vmem:[#allocation63_spill] sm:$0xff]  ;;  %vm9207_vm11 = vcmp.eq.s32.totalorder %v9097_v38, %v9164_v43  ;;  %vm9210_vm8 = vcmp.eq.s32.totalorder %v9097_v38, %v9165_v25  ;;  %v9212_v31 = vld [vmem:[#allocation68_spill] sm:$0xff] }
 0x18f   : > { %9202 = vst [vmem:[#allocation39_spill] sm:$0xff] %v6310_v63  ;;  %9205 = vst [vmem:[#allocation40_spill] sm:$0xff] %v6324_v18  ;;  %v6330_v11 = vsel %vm9207_vm11, %v9206_v23, 0.0  ;;  %v6336_v63 = vsel %vm9210_vm8, %v9209_v47, 0.0  ;;  %vm9213_vm10 = vcmp.eq.s32.totalorder %v9097_v38, %v9124_v4  ;;  %v9215_v47 = vld [vmem:[#allocation69_spill] sm:$0xff]  ;;  %vm9216_vm8 = vcmp.eq.s32.totalorder %v9097_v38, %v9129_v39  ;;  %v9241_v8 = vld [vmem:[#allocation30_spill] sm:$0xff] }
 0x190   : > { %9208 = vst [vmem:[#allocation41_spill] sm:$0xff] %v6330_v11  ;;  %9211 = vst [vmem:[#allocation42_spill] sm:$0xff] %v6336_v63  ;;  %v6342_v52 = vsel %vm9213_vm10, %v9212_v31, 0.0  ;;  %v6356_v1 = vsel %vm9216_vm8, %v9215_v47, 0.0  ;;  %v9218_v31 = vld [vmem:[#allocation73_spill] sm:$0xff]  ;;  %vm9219_vm10 = vcmp.eq.s32.totalorder %v9097_v38, %v9130_v54  ;;  %vm9222_vm13 = vcmp.eq.s32.totalorder %v9097_v38, %v9131_v10  ;;  %v9224_v11 = vld [vmem:[#allocation78_spill] sm:$0xff] }
 0x191   : > { %9214 = vst [vmem:[#allocation47_spill] sm:$0xff] %v6342_v52  ;;  %9217 = vst [vmem:[#allocation48_spill] sm:$0xff] %v6356_v1  ;;  %v6362_v23 = vsel %vm9219_vm10, %v9218_v31, 0.0  ;;  %v9221_v52 = vld [vmem:[#allocation74_spill] sm:$0xff]  ;;  %vm9225_vm12 = vcmp.eq.s32.totalorder %v9097_v38, %v9132_v61  ;;  %v9231_v38 = vld [vmem:[#allocation21_spill] sm:$0xff]  ;;  %vm9232_vm11 = vcmp.eq.s32.totalorder %v9137_v27, %v9099_v56  ;;  %vm9234_vm7 = vcmp.eq.s32.totalorder %v9137_v27, %v9100_v59 }
 0x192   : > { %9220 = vst [vmem:[#allocation49_spill] sm:$0xff] %v6362_v23  ;;  %v6368_v63 = vsel %vm9222_vm13, %v9221_v52, 0.0  ;;  %v6374_v18 = vsel %vm9225_vm12, %v9224_v11, 0.0  ;;  %v9227_v52 = vld [vmem:[#allocation19_spill] sm:$0xff]  ;;  %vm9228_vm13 = vcmp.eq.s32.totalorder %v9137_v27, %v9096_v20  ;;  %v9229_v11 = vld [vmem:[#allocation20_spill] sm:$0xff]  ;;  %vm9230_vm12 = vcmp.eq.s32.totalorder %v9137_v27, %v9098_v28  ;;  %v9239_v1 = vld [vmem:[#allocation29_spill] sm:$0xff] }
 0x193   : > { %9223 = vst [vmem:[#allocation53_spill] sm:$0xff] %v6368_v63  ;;  %9226 = vst [vmem:[#allocation54_spill] sm:$0xff] %v6374_v18  ;;  %v6388_v47 = vsel %vm9228_vm13, %v9227_v52, 0.0  ;;  %v6394_v31 = vsel %vm9230_vm12, %v9229_v11, 0.0  ;;  %v6400_v18 = vsel %vm9232_vm11, %v9231_v38, 0.0  ;;  %v9233_v63 = vld [vmem:[#allocation22_spill] sm:$0xff]  ;;  %vm9236_vm11 = vcmp.eq.s32.totalorder %v9137_v27, %v9101_v16 }
 0x194   : > { %v6406_v23 = vsel %vm9234_vm7, %v9233_v63, 0.0  ;;  %v9235_v38 = vld [vmem:[#allocation27_spill] sm:$0xff]  ;;  %v9237_v63 = vld [vmem:[#allocation28_spill] sm:$0xff]  ;;  %vm9238_vm7 = vcmp.eq.s32.totalorder %v9137_v27, %v9102_v15  ;;  %vm9240_vm10 = vcmp.eq.s32.totalorder %v9137_v27, %v9103_v3  ;;  %vm9242_vm8 = vcmp.eq.s32.totalorder %v9137_v27, %v9104_v40  ;;  %v9248_v17 = vld [vmem:[#allocation38_spill] sm:$0xff] }
 0x195   : > { %v6420_v52 = vsel %vm9236_vm11, %v9235_v38, 0.0  ;;  %v6426_v11 = vsel %vm9238_vm7, %v9237_v63, 0.0  ;;  %v6432_v45 = vsel %vm9240_vm10, %v9239_v1, 0.0  ;;  %v6438_v49 = vsel %vm9242_vm8, %v9241_v8, 0.0  ;;  %v9243_v1 = vld [vmem:[#allocation35_spill] sm:$0xff]  ;;  %v9245_v8 = vld [vmem:[#allocation36_spill] sm:$0xff] }
 0x196   : > { %vm1496_vm11 = vcmp.eq.s32.totalorder %v9190_v34, %v9117_v46  ;;  %vm1497_vm12 = vcmp.eq.s32.totalorder %v9190_v34, %v9118_v62  ;;  %vm1498_vm7 = vcmp.eq.s32.totalorder %v9190_v34, %v9119_v36  ;;  %vm9244_vm10 = vcmp.eq.s32.totalorder %v9137_v27, %v9105_v19 }
 0x197   : > { %v6452_v38 = vsel %vm9244_vm10, %v9243_v1, 0.0  ;;  %v6458_v63 = vsel %vm8497_vm3, %v9245_v8, 0.0  ;;  %v6464_v44 = vsel %vm8499_vm2, %v9246_v5, 0.0  ;;  %v6470_v0 = vsel %vm8498_vm1, %v9248_v17, 0.0  ;;  %v9250_v5 = vld [vmem:[#allocation43_spill] sm:$0xff]  ;;  %v9252_v17 = vld [vmem:[#allocation44_spill] sm:$0xff] }
 0x198   : > { %9247 = vst [vmem:[#allocation55_spill] sm:$0xff] %v6464_v44  ;;  %9249 = vst [vmem:[#allocation56_spill] sm:$0xff] %v6470_v0  ;;  %vm1500_vm8 = vcmp.eq.s32.totalorder %v9190_v34, %v9163_v51  ;;  %vm1501_vm10 = vcmp.eq.s32.totalorder %v9190_v34, %v9164_v43  ;;  %v6484_v1 = vsel %vm8500_vm0, %v9250_v5, 0.0  ;;  %v6490_v8 = vsel %vm8501_vm15, %v9252_v17, 0.0  ;;  %v9257_v0 = vld [vmem:[#allocation46_spill] sm:$0xff]  ;;  %v9304_v44 = vld [vmem:[#allocation80_spill] sm:$0xff] }
 0x199   : > { %9251 = vst [vmem:[#allocation61_spill] sm:$0xff] %v6484_v1  ;;  %9253 = vst [vmem:[#allocation62_spill] sm:$0xff] %v6490_v8  ;;  %vm9255_vm1 = vcmp.eq.s32.totalorder %v9137_v27, %v9111_v30  ;;  %vm9258_vm2 = vcmp.eq.s32.totalorder %v9137_v27, %v9112_v32  ;;  %vm1504_vm0 = vcmp.eq.s32.totalorder %v9190_v34, %v9129_v39  ;;  %v9266_v8 = vld [vmem:[#allocation57_spill] sm:$0xff] }
 0x19a   : > { %v6496_v37 = vsel %vm9255_vm1, %v9254_v57, 0.0  ;;  %v6502_v42 = vsel %vm9258_vm2, %v9257_v0, 0.0  ;;  %vm1505_vm13 = vcmp.eq.s32.totalorder %v9190_v34, %v9130_v54  ;;  %vm1506_vm15 = vcmp.eq.s32.totalorder %v9190_v34, %v9131_v10  ;;  %v9260_v57 = vld [vmem:[#allocation50_spill] sm:$0xff]  ;;  %v9262_v0 = vld [vmem:[#allocation51_spill] sm:$0xff] }
 0x19b   : > { %9256 = vst [vmem:[#allocation63_spill] sm:$0xff] %v6496_v37  ;;  %9259 = vst [vmem:[#allocation64_spill] sm:$0xff] %v6502_v42  ;;  %vm1507_vm3 = vcmp.eq.s32.totalorder %v9190_v34, %v9132_v61  ;;  %v6516_v5 = vsel %vm1460_vm5, %v9260_v57, 0.0  ;;  %v6522_v17 = vsel %vm1461_vm4, %v9262_v0, 0.0  ;;  %v9264_v42 = vld [vmem:[#allocation52_spill] sm:$0xff]  ;;  %v6534_v1 = vsel %vm8502_vm14, %v9266_v8, 0.0 }
 0x19c   : > { %9261 = vst [vmem:[#allocation68_spill] sm:$0xff] %v6516_v5  ;;  %9263 = vst [vmem:[#allocation69_spill] sm:$0xff] %v6522_v17  ;;  %v6528_v37 = vsel %vm8505_vm6, %v9264_v42, 0.0  ;;  %v9268_v57 = vld [vmem:[#allocation58_spill] sm:$0xff]  ;;  %v9270_v0 = vld [vmem:[#allocation59_spill] sm:$0xff]  ;;  %vm9271_vm1 = vcmp.eq.s32.totalorder %v9137_v27, %v9118_v62  ;;  %vm9274_vm2 = vcmp.eq.s32.totalorder %v9137_v27, %v9119_v36  ;;  %vm9277_vm14 = vcmp.eq.s32.totalorder %v9137_v27, %v9154_v60 }
 0x19d   : > { %9265 = vst [vmem:[#allocation73_spill] sm:$0xff] %v6528_v37  ;;  %9267 = vst [vmem:[#allocation74_spill] sm:$0xff] %v6534_v1  ;;  %v6540_v5 = vsel %vm8503_vm9, %v9268_v57, 0.0  ;;  %v6546_v17 = vsel %vm9271_vm1, %v9270_v0, 0.0  ;;  %v9273_v42 = vld [vmem:[#allocation60_spill] sm:$0xff]  ;;  %v9276_v8 = vld [vmem:[#allocation65_spill] sm:$0xff]  ;;  %vm9280_vm9 = vcmp.eq.s32.totalorder %v9137_v27, %v9163_v51  ;;  %vm9283_vm1 = vcmp.eq.s32.totalorder %v9137_v27, %v9164_v43 }
 0x19e   : > { %9269 = vst [vmem:[#allocation78_spill] sm:$0xff] %v6540_v5  ;;  %9272 = vst [vmem:[#allocation19_spill] sm:$0xff] %v6546_v17  ;;  %v6552_v37 = vsel %vm9274_vm2, %v9273_v42, 0.0  ;;  %v6558_v1 = vsel %vm9277_vm14, %v9276_v8, 0.0  ;;  %v9279_v57 = vld [vmem:[#allocation66_spill] sm:$0xff]  ;;  %v9285_v42 = vld [vmem:[#allocation71_spill] sm:$0xff]  ;;  %vm9286_vm2 = vcmp.eq.s32.totalorder %v9137_v27, %v9165_v25  ;;  %vm9289_vm14 = vcmp.eq.s32.totalorder %v9137_v27, %v9124_v4 }
 0x19f   : > { %9275 = vst [vmem:[#allocation20_spill] sm:$0xff] %v6552_v37  ;;  %9278 = vst [vmem:[#allocation21_spill] sm:$0xff] %v6558_v1  ;;  %v6564_v5 = vsel %vm9280_vm9, %v9279_v57, 0.0  ;;  %v9282_v0 = vld [vmem:[#allocation70_spill] sm:$0xff]  ;;  %v6576_v37 = vsel %vm9286_vm2, %v9285_v42, 0.0  ;;  %v9288_v8 = vld [vmem:[#allocation72_spill] sm:$0xff]  ;;  %vm9292_vm9 = vcmp.eq.s32.totalorder %v9137_v27, %v9129_v39  ;;  %vm9298_vm2 = vcmp.eq.s32.totalorder %v9137_v27, %v9131_v10 }
 0x1a0   : > { %9281 = vst [vmem:[#allocation22_spill] sm:$0xff] %v6564_v5  ;;  %v6570_v17 = vsel %vm9283_vm1, %v9282_v0, 0.0  ;;  %9287 = vst [vmem:[#allocation28_spill] sm:$0xff] %v6576_v37  ;;  %v6582_v1 = vsel %vm9289_vm14, %v9288_v8, 0.0  ;;  %v9291_v57 = vld [vmem:[#allocation75_spill] sm:$0xff]  ;;  %v9294_v0 = vld [vmem:[#allocation76_spill] sm:$0xff]  ;;  %vm9295_vm1 = vcmp.eq.s32.totalorder %v9137_v27, %v9130_v54  ;;  %vm9301_vm14 = vcmp.eq.s32.totalorder %v9137_v27, %v9132_v61 }
 0x1a1   : > { %9284 = vst [vmem:[#allocation27_spill] sm:$0xff] %v6570_v17  ;;  %9290 = vst [vmem:[#allocation29_spill] sm:$0xff] %v6582_v1  ;;  %v6588_v5 = vsel %vm9292_vm9, %v9291_v57, 0.0  ;;  %v6594_v17 = vsel %vm9295_vm1, %v9294_v0, 0.0  ;;  %v9297_v42 = vld [vmem:[#allocation77_spill] sm:$0xff]  ;;  %v9300_v8 = vld [vmem:[#allocation79_spill] sm:$0xff]  ;;  %vm9303_vm9 = vcmp.eq.s32.totalorder %v9190_v34, %v9096_v20  ;;  %vm9305_vm1 = vcmp.eq.s32.totalorder %v9190_v34, %v9098_v28 }
 0x1a2   : > { %9293 = vst [vmem:[#allocation30_spill] sm:$0xff] %v6588_v5  ;;  %9296 = vst [vmem:[#allocation35_spill] sm:$0xff] %v6594_v17  ;;  %v6600_v37 = vsel %vm9298_vm2, %v9297_v42, 0.0  ;;  %v6606_v1 = vsel %vm9301_vm14, %v9300_v8, 0.0  ;;  %v9302_v57 = vld [vmem:[#allocation67_spill] sm:$0xff]  ;;  %v1573_v0 = vsel %vm9305_vm1, %v9304_v44, 0.0  ;;  %vm9307_vm2 = vcmp.eq.s32.totalorder %v9190_v34, %v9099_v56 }
 0x1a3   : > { %9299 = vst [vmem:[#allocation36_spill] sm:$0xff] %v6600_v37  ;;  %v1572_v5 = vsel %vm9303_vm9, %v9302_v57, 0.0  ;;  %v9306_v17 = vld [vmem:[#allocation81_spill] sm:$0xff]  ;;  %v9308_v37 = vld [vmem:[#allocation83_spill] sm:$0xff]  ;;  %vm9309_vm14 = vcmp.eq.s32.totalorder %v9190_v34, %v9100_v59  ;;  %v9310_v27 = vld [vmem:[#allocation84_spill] sm:$0xff]  ;;  %vm9311_vm6 = vcmp.eq.s32.totalorder %v9190_v34, %v9101_v16  ;;  %vm9313_vm9 = vcmp.eq.s32.totalorder %v9190_v34, %v9102_v15 }
 0x1a4   : > { %v1574_v42 = vsel %vm9307_vm2, %v9306_v17, 0.0  ;;  %v1575_v8 = vsel %vm9309_vm14, %v9308_v37, 0.0  ;;  %v1576_v57 = vsel %vm9311_vm6, %v9310_v27, 0.0  ;;  %v9312_v20 = vld [vmem:[#allocation86_spill] sm:$0xff]  ;;  %v9314_v28 = vld [vmem:[#allocation87_spill] sm:$0xff]  ;;  %vm9315_vm1 = vcmp.eq.s32.totalorder %v9190_v34, %v9103_v3  ;;  %v9316_v56 = vld [vmem:[#allocation89_spill] sm:$0xff] }
 0x1a5   : > { %v1577_v44 = vsel %vm9313_vm9, %v9312_v20, 0.0  ;;  %v1578_v17 = vsel %vm9315_vm1, %v9314_v28, 0.0  ;;  %vm9317_vm2 = vcmp.eq.s32.totalorder %v9190_v34, %v9104_v40  ;;  %v9318_v59 = vld [vmem:[#allocation90_spill] sm:$0xff]  ;;  %vm9319_vm6 = vcmp.eq.s32.totalorder %v9190_v34, %v9105_v19  ;;  %v9320_v16 = vld [vmem:[#allocation92_spill] sm:$0xff]  ;;  %v9322_v3 = vld [vmem:[#allocation93_spill] sm:$0xff] }
 0x1a6   : > { %v6640_v37 = vsel %vm9317_vm2, %v9316_v56, 0.0  ;;  %v6646_v27 = vsel %vm9319_vm6, %v9318_v59, 0.0  ;;  %vm9321_vm14 = vcmp.eq.s32.totalorder %v9190_v34, %v9106_v6  ;;  %vm9323_vm9 = vcmp.eq.s32.totalorder %v9190_v34, %v9107_v22  ;;  %v9324_v56 = vld [vmem:[#allocation94_spill] sm:$0xff]  ;;  %v9326_v59 = vld [vmem:[#allocation95_spill] sm:$0xff] }
 0x1a7   : > { %v6652_v20 = vsel %vm9321_vm14, %v9320_v16, 0.0  ;;  %v6658_v28 = vsel %vm9323_vm9, %v9322_v3, 0.0  ;;  %vm9325_vm1 = vcmp.eq.s32.totalorder %v9190_v34, %v9108_v55  ;;  %vm9327_vm2 = vcmp.eq.s32.totalorder %v9190_v34, %v9109_v26  ;;  %v9328_v16 = vld [vmem:[#allocation97_spill] sm:$0xff] }
 0x1a8   : > { %v6664_v40 = vsel %vm9325_vm1, %v9324_v56, 0.0  ;;  %v6670_v19 = vsel %vm9327_vm2, %v9326_v59, 0.0  ;;  %vm9329_vm6 = vcmp.eq.s32.totalorder %v9190_v34, %v9110_v41  ;;  %v9330_v3 = vld [vmem:[#allocation101_spill] sm:$0xff]  ;;  %vm9331_vm14 = vcmp.eq.s32.totalorder %v9190_v34, %v9111_v30  ;;  %v9332_v56 = vld [vmem:[#allocation102_spill] sm:$0xff]  ;;  %v9334_v59 = vld [vmem:[#allocation103_spill] sm:$0xff] }
 0x1a9   : > { %v6676_v6 = vsel %vm9329_vm6, %v9328_v16, 0.0  ;;  %v6682_v22 = vsel %vm9331_vm14, %v9330_v3, 0.0  ;;  %vm9333_vm9 = vcmp.eq.s32.totalorder %v9190_v34, %v9112_v32  ;;  %vm9335_vm1 = vcmp.eq.s32.totalorder %v9190_v34, %v9113_v53  ;;  %v9336_v16 = vld [vmem:[#allocation104_spill] sm:$0xff]  ;;  %v9338_v3 = vld [vmem:[#allocation105_spill] sm:$0xff] }
 0x1aa   : > { %v6688_v55 = vsel %vm9333_vm9, %v9332_v56, 0.0  ;;  %v6694_v26 = vsel %vm9335_vm1, %v9334_v59, 0.0  ;;  %vm9337_vm2 = vcmp.eq.s32.totalorder %v9190_v34, %v9114_v7  ;;  %vm9339_vm6 = vcmp.eq.s32.totalorder %v9190_v34, %v9115_v33  ;;  %v9340_v56 = vld [vmem:[#allocation106_spill] sm:$0xff]  ;;  %v9342_v59 = vld [vmem:[#allocation107_spill] sm:$0xff] }
 0x1ab   : > { %v6700_v41 = vsel %vm9337_vm2, %v9336_v16, 0.0  ;;  %v6706_v30 = vsel %vm9339_vm6, %v9338_v3, 0.0  ;;  %vm9341_vm14 = vcmp.eq.s32.totalorder %v9190_v34, %v9116_v13  ;;  %v6718_v53 = vsel %vm1496_vm11, %v9342_v59, 0.0  ;;  %v9343_v16 = vld [vmem:[#allocation108_spill] sm:$0xff]  ;;  %v9344_v3 = vld [vmem:[#allocation109_spill] sm:$0xff]  ;;  %v9347_v59 = vld [vmem:[#allocation111_spill] sm:$0xff] }
 0x1ac   : > { %v6712_v32 = vsel %vm9341_vm14, %v9340_v56, 0.0  ;;  %v6724_v7 = vsel %vm1497_vm12, %v9343_v16, 0.0  ;;  %v6730_v33 = vsel %vm1498_vm7, %v9344_v3, 0.0  ;;  %v9345_v56 = vld [vmem:[#allocation110_spill] sm:$0xff]  ;;  %vm9346_vm9 = vcmp.eq.s32.totalorder %v9190_v34, %v9154_v60  ;;  %v9348_v16 = vld [vmem:[#allocation112_spill] sm:$0xff]  ;;  %v9349_v3 = vld [vmem:[#allocation113_spill] sm:$0xff] }
 0x1ad   : > { %v6736_v13 = vsel %vm9346_vm9, %v9345_v56, 0.0  ;;  %v6742_v46 = vsel %vm1500_vm8, %v9347_v59, 0.0  ;;  %v6748_v62 = vsel %vm1501_vm10, %v9348_v16, 0.0  ;;  %vm9350_vm1 = vcmp.eq.s32.totalorder %v9190_v34, %v9165_v25  ;;  %v9351_v56 = vld [vmem:[#allocation114_spill] sm:$0xff]  ;;  %v9353_v59 = vld [vmem:[#allocation115_spill] sm:$0xff]  ;;  %v9354_v16 = vld [vmem:[#allocation116_spill] sm:$0xff] }
 0x1ae   : > { %v6754_v36 = vsel %vm9350_vm1, %v9349_v3, 0.0  ;;  %vm9352_vm2 = vcmp.eq.s32.totalorder %v9190_v34, %v9124_v4  ;;  %v6766_v51 = vsel %vm1504_vm0, %v9353_v59, 0.0  ;;  %v6772_v43 = vsel %vm1505_vm13, %v9354_v16, 0.0  ;;  %v9355_v3 = vld [vmem:[#allocation117_spill] sm:$0xff] }
 0x1af   : > { %v6760_v60 = vsel %vm9352_vm2, %v9351_v56, 0.0  ;;  %v6778_v25 = vsel %vm1506_vm15, %v9355_v3, 0.0  ;;  %v9356_v56 = vld [vmem:[#allocation118_spill] sm:$0xff]  ;;  %v1604_v59 = vadd.f32 %v6388_v47, %v6132_v58  ;;  %vm9357_vm6 = vcmask 1042432  }
 0x1b0   : > { %v6784_v4 = vsel %vm1507_vm3, %v9356_v56, 0.0  ;;  %v1605_v39 = vsel %vm9357_vm6, %v1572_v5, 0.0  ;;  %v1613_v16 = vadd.f32 %v6394_v31, %v6138_v35  ;;  %vm9358_vm14 = vmmov %vm9357_vm6  ;;  %v1622_v3 = vadd.f32 %v6400_v18, %v6144_v50 }
 0x1b1   : > { %v1614_v54 = vsel %vm9358_vm14, %v1573_v0, 0.0  ;;  %vm9359_vm9 = vmmov %vm9357_vm6  ;;  %v1631_v34 = vadd.f32 %v6406_v23, %v6150_v24  ;;  %v1606_v61 = vadd.f32 %v1605_v39, %v1604_v59  ;;  %v1640_v58 = vadd.f32 %v6420_v52, %v6164_v29 }
 0x1b2   : > { %v1623_v10 = vsel %vm9359_vm9, %v1574_v42, 0.0  ;;  %vm9360_vm1 = vmmov %vm9357_vm6  ;;  %v1615_v15 = vadd.f32 %v1614_v54, %v1613_v16  ;;  %v1649_v5 = vadd.f32 %v6426_v11, %v6170_v12  ;;  %v1658_v24 = vadd.f32 %v6432_v45, %v6176_v9 }
 0x1b3   : > { %v1632_v56 = vsel %vm9360_vm1, %v1575_v8, 0.0  ;;  %vm9361_vm2 = vmmov %vm9360_vm1  ;;  %v1624_v35 = vadd.f32 %v1623_v10, %v1622_v3  ;;  %v1607_v18 = vrot.slane %v1606_v61, 4  ;;  %v1667_v11 = vadd.f32 %v6438_v49, %v6182_v2 }
 0x1b4   : > { %v1641_v47 = vsel %vm9361_vm2, %v1576_v57, 0.0  ;;  %v1633_v31 = vadd.f32 %v1632_v56, %v1631_v34  ;;  %vm9362_vm6 = vmmov %vm9360_vm1  ;;  %v1616_v0 = vrot.slane %v1615_v15, 4 }
 0x1b5   : > { %v1650_v50 = vsel %vm9362_vm6, %v1577_v44, 0.0  ;;  %v1642_v42 = vadd.f32 %v1641_v47, %v1640_v58  ;;  %v1625_v39 = vrot.slane %v1624_v35, 4  ;;  %vm9363_vm14 = vmmov %vm9360_vm1  ;;  %v1608_v52 = vadd.f32 %v1607_v18, %v1606_v61 }
 0x1b6   : > { %v1634_v54 = vrot.slane %v1633_v31, 4  ;;  %v1651_v23 = vadd.f32 %v1650_v50, %v1649_v5  ;;  %v1659_v29 = vsel %vm9363_vm14, %v1578_v17, 0.0  ;;  %v1617_v8 = vadd.f32 %v1616_v0, %v1615_v15  ;;  %vm9364_vm9 = vmmov %vm9360_vm1 }
 0x1b7   : > { %v1643_v10 = vrot.slane %v1642_v42, 4  ;;  %v1660_v34 = vadd.f32 %v1659_v29, %v1658_v24  ;;  %v1626_v57 = vadd.f32 %v1625_v39, %v1624_v35  ;;  %v1609_v44 = vrot.slane %v1608_v52, 2  ;;  %vm9365_vm2 = vmmov %vm9360_vm1 }
 0x1b8   : > { %v1635_v59 = vadd.f32 %v1634_v54, %v1633_v31  ;;  %v1652_v12 = vrot.slane %v1651_v23, 4  ;;  %v1618_v16 = vrot.slane %v1617_v8, 2  ;;  %v1668_v17 = vsel %vm9364_vm9, %v6640_v37, 0.0  ;;  %vm9367_vm6 = vmmov %vm9360_vm1 }
 0x1b9   : > { %v1644_v3 = vadd.f32 %v1643_v10, %v1642_v42  ;;  %v1661_v56 = vrot.slane %v1660_v34, 4  ;;  %v1627_v9 = vrot.slane %v1626_v57, 2  ;;  %v1610_v61 = vadd.f32 %v1609_v44, %v1608_v52  ;;  %vm9370_vm14 = vmmov %vm9360_vm1 }
 0x1ba   : > { %v1636_v45 = vrot.slane %v1635_v59, 2  ;;  %v1653_v58 = vadd.f32 %v1652_v12, %v1651_v23  ;;  %v1619_v15 = vadd.f32 %v1618_v16, %v1617_v8  ;;  %v1669_v18 = vadd.f32 %v1668_v17, %v1667_v11  ;;  %vm9373_vm9 = vmmov %vm9360_vm1 }
 0x1bb   : > { %v1645_v47 = vrot.slane %v1644_v3, 2  ;;  %v1662_v5 = vadd.f32 %v1661_v56, %v1660_v34  ;;  %v1628_v35 = vadd.f32 %v1627_v9, %v1626_v57  ;;  %v1611_v0 = vrot.slane %v1610_v61, 1 }
 0x1bc   : > { %v1637_v31 = vadd.f32 %v1636_v45, %v1635_v59  ;;  %v1654_v50 = vrot.slane %v1653_v58, 2  ;;  %v1620_v49 = vrot.slane %v1619_v15, 1  ;;  %v1670_v29 = vrot.slane %v1669_v18, 4 }
 0x1bd   : > { %v1646_v2 = vadd.f32 %v1645_v47, %v1644_v3  ;;  %v1663_v24 = vrot.slane %v1662_v5, 2  ;;  %v1629_v42 = vrot.slane %v1628_v35, 1  ;;  %v6811_v23 = vadd.f32 %v1611_v0, %v1610_v61  ;;  %v9366_v61 = vld [vmem:[#allocation55_spill] sm:$0xff] }
 0x1be   : > { %v1638_v39 = vrot.slane %v1637_v31, 1  ;;  %v1655_v54 = vadd.f32 %v1654_v50, %v1653_v58  ;;  %v6813_v10 = vadd.f32 %v1620_v49, %v1619_v15  ;;  %v1671_v59 = vadd.f32 %v1670_v29, %v1669_v18  ;;  %v9368_v47 = vld [vmem:[#allocation15_spill] sm:$0xff]  ;;  %v9372_v50 = vld [vmem:[#allocation61_spill] sm:$0xff] }
 0x1bf   : > { %v1647_v37 = vrot.slane %v1646_v2, 1  ;;  %v1664_v52 = vadd.f32 %v1663_v24, %v1662_v5  ;;  %v6815_v8 = vadd.f32 %v1629_v42, %v1628_v35  ;;  %v1676_v44 = vadd.f32 %v6452_v38, %v6196_v14  ;;  %v9369_v5 = vld [vmem:[#allocation56_spill] sm:$0xff]  ;;  %v9375_v24 = vld [vmem:[#allocation62_spill] sm:$0xff] }
 0x1c0   : > { %v6817_v34 = vadd.f32 %v1638_v39, %v1637_v31  ;;  %v1656_v57 = vrot.slane %v1655_v54, 1  ;;  %v1677_v16 = vsel %vm9360_vm1, %v6646_v27, 0.0  ;;  %v1672_v56 = vrot.slane %v1671_v59, 2 }
 0x1c1   : > { %v6819_v12 = vadd.f32 %v1647_v37, %v1646_v2  ;;  %v1665_v11 = vrot.slane %v1664_v52, 1  ;;  %v1685_v9 = vadd.f32 %v6458_v63, %v6202_v21  ;;  %v1686_v45 = vsel %vm9365_vm2, %v6652_v20, 0.0  ;;  %v9371_v20 = vld [vmem:[#allocation16_spill] sm:$0xff]  ;;  %vm9378_vm2 = vmmov %vm9360_vm1 }
 0x1c2   : > { %v6825_v3 = vadd.f32 %v1656_v57, %v1655_v54  ;;  %v1678_v17 = vadd.f32 %v1677_v16, %v1676_v44  ;;  %v1694_v15 = vadd.f32 %v9366_v61, %v6208_v48  ;;  %v1695_v14 = vsel %vm9367_vm6, %v6658_v28, 0.0  ;;  %v9374_v28 = vld [vmem:[#allocation17_spill] sm:$0xff]  ;;  %v9376_v16 = vld [vmem:[#allocation18_spill] sm:$0xff]  ;;  %vm9381_vm6 = vmmov %vm9360_vm1 }
 0x1c3   : > { %v6831_v58 = vadd.f32 %v1665_v11, %v1664_v52  ;;  %v1673_v38 = vadd.f32 %v1672_v56, %v1671_v59  ;;  %v1687_v27 = vadd.f32 %v1686_v45, %v1685_v9  ;;  %v1703_v35 = vadd.f32 %v9369_v5, %v9368_v47  ;;  %v9377_v56 = vld [vmem:[#allocation63_spill] sm:$0xff] }
 0x1c4   : > { %v1704_v21 = vsel %vm9370_vm14, %v6664_v40, 0.0  ;;  %v1679_v63 = vrot.slane %v1678_v17, 4  ;;  %v1696_v31 = vadd.f32 %v1695_v14, %v1694_v15  ;;  %v1712_v18 = vadd.f32 %v9372_v50, %v9371_v20  ;;  %vm9384_vm14 = vmmov %vm9360_vm1 }
 0x1c5   : > { %v1713_v0 = vsel %vm9373_vm9, %v6670_v19, 0.0  ;;  %v1674_v48 = vrot.slane %v1673_v38, 1  ;;  %v1688_v49 = vrot.slane %v1687_v27, 4  ;;  %v1705_v2 = vadd.f32 %v1704_v21, %v1703_v35  ;;  %v9379_v21 = vld [vmem:[#allocation23_spill] sm:$0xff]  ;;  %vm9387_vm9 = vmmov %vm9360_vm1 }
 0x1c6   : > { %v1721_v42 = vadd.f32 %v9375_v24, %v9374_v28  ;;  %v1680_v39 = vadd.f32 %v1679_v63, %v1678_v17  ;;  %v1697_v54 = vrot.slane %v1696_v31, 4  ;;  %v1714_v29 = vadd.f32 %v1713_v0, %v1712_v18  ;;  %v9380_v63 = vld [vmem:[#allocation64_spill] sm:$0xff] }
 0x1c7   : > { %v1722_v40 = vsel %vm9360_vm1, %v6676_v6, 0.0  ;;  %v6849_v37 = vadd.f32 %v1674_v48, %v1673_v38  ;;  %v1689_v52 = vadd.f32 %v1688_v49, %v1687_v27  ;;  %v1706_v57 = vrot.slane %v1705_v2, 4 }
 0x1c8   : > { %v1723_v59 = vadd.f32 %v1722_v40, %v1721_v42  ;;  %v1681_v11 = vrot.slane %v1680_v39, 2  ;;  %v1698_v44 = vadd.f32 %v1697_v54, %v1696_v31  ;;  %v1715_v19 = vrot.slane %v1714_v29, 4 }
 0x1c9   : > { %v1730_v9 = vadd.f32 %v9377_v56, %v9376_v16  ;;  %v1690_v45 = vrot.slane %v1689_v52, 2  ;;  %v1707_v61 = vadd.f32 %v1706_v57, %v1705_v2  ;;  %v1731_v17 = vsel %vm9378_vm2, %v6682_v22, 0.0  ;;  %vm9392_vm2 = vmmov %vm9360_vm1 }
 0x1ca   : > { %v1724_v15 = vrot.slane %v1723_v59, 4  ;;  %v1682_v14 = vadd.f32 %v1681_v11, %v1680_v39  ;;  %v1699_v47 = vrot.slane %v1698_v44, 2  ;;  %v1716_v6 = vadd.f32 %v1715_v19, %v1714_v29  ;;  %v9383_v19 = vld [vmem:[#allocation68_spill] sm:$0xff] }
 0x1cb   : > { %v1732_v38 = vadd.f32 %v1731_v17, %v1730_v9  ;;  %v1691_v5 = vadd.f32 %v1690_v45, %v1689_v52  ;;  %v1708_v27 = vrot.slane %v1707_v61, 2  ;;  %v1739_v31 = vadd.f32 %v9380_v63, %v9379_v21  ;;  %v9389_v21 = vld [vmem:[#allocation73_spill] sm:$0xff] }
 0x1cc   : > { %v1725_v35 = vadd.f32 %v1724_v15, %v1723_v59  ;;  %v1683_v20 = vrot.slane %v1682_v14, 1  ;;  %v1700_v50 = vadd.f32 %v1699_v47, %v1698_v44  ;;  %v1717_v18 = vrot.slane %v1716_v6, 2  ;;  %v9382_v44 = vld [vmem:[#allocation24_spill] sm:$0xff]  ;;  %v9386_v47 = vld [vmem:[#allocation69_spill] sm:$0xff] }
 0x1cd   : > { %v1733_v0 = vrot.slane %v1732_v38, 4  ;;  %v1692_v48 = vrot.slane %v1691_v5, 1  ;;  %v1709_v49 = vadd.f32 %v1708_v27, %v1707_v61  ;;  %v1740_v22 = vsel %vm9381_vm6, %v6688_v55, 0.0  ;;  %vm9395_vm6 = vmmov %vm9360_vm1 }
 0x1ce   : > { %v1726_v2 = vrot.slane %v1725_v35, 2  ;;  %v6859_v28 = vadd.f32 %v1683_v20, %v1682_v14  ;;  %v1701_v24 = vrot.slane %v1700_v50, 1  ;;  %v1718_v42 = vadd.f32 %v1717_v18, %v1716_v6  ;;  %v9385_v14 = vld [vmem:[#allocation25_spill] sm:$0xff] }
 0x1cf   : > { %v1734_v39 = vadd.f32 %v1733_v0, %v1732_v38  ;;  %v6861_v54 = vadd.f32 %v1692_v48, %v1691_v5  ;;  %v1710_v29 = vrot.slane %v1709_v49, 1  ;;  %v1741_v52 = vadd.f32 %v1740_v22, %v1739_v31  ;;  %v9390_v48 = vld [vmem:[#allocation31_spill] sm:$0xff] }
 0x1d0   : > { %v1727_v40 = vadd.f32 %v1726_v2, %v1725_v35  ;;  %v6863_v57 = vadd.f32 %v1701_v24, %v1700_v50  ;;  %v1719_v59 = vrot.slane %v1718_v42, 1  ;;  %v1748_v16 = vadd.f32 %v9383_v19, %v9382_v44  ;;  %v9388_v35 = vld [vmem:[#allocation26_spill] sm:$0xff] }
 0x1d1   : > { %v1735_v11 = vrot.slane %v1734_v39, 2  ;;  %v6867_v56 = vadd.f32 %v1710_v29, %v1709_v49  ;;  %v1742_v9 = vrot.slane %v1741_v52, 4  ;;  %v1749_v45 = vsel %vm9384_vm14, %v6694_v26, 0.0  ;;  %v9391_v49 = vld [vmem:[#allocation74_spill] sm:$0xff]  ;;  %vm9398_vm14 = vmmov %vm9360_vm1 }
 0x1d2   : > { %v1728_v55 = vrot.slane %v1727_v40, 1  ;;  %v6871_v61 = vadd.f32 %v1719_v59, %v1718_v42  ;;  %v1750_v17 = vadd.f32 %v1749_v45, %v1748_v16  ;;  %v1757_v6 = vadd.f32 %v9386_v47, %v9385_v14  ;;  %v9394_v29 = vld [vmem:[#allocation78_spill] sm:$0xff] }
 0x1d3   : > { %v1736_v15 = vadd.f32 %v1735_v11, %v1734_v39  ;;  %v1743_v5 = vadd.f32 %v1742_v9, %v1741_v52  ;;  %v1758_v27 = vsel %vm9387_vm9, %v6700_v41, 0.0  ;;  %v1766_v63 = vadd.f32 %v9389_v21, %v9388_v35  ;;  %v9393_v39 = vld [vmem:[#allocation32_spill] sm:$0xff]  ;;  %v9397_v9 = vld [vmem:[#allocation19_spill] sm:$0xff]  ;;  %vm9401_vm9 = vmmov %vm9360_vm1 }
 0x1d4   : > { %v6875_v38 = vadd.f32 %v1728_v55, %v1727_v40  ;;  %v1751_v20 = vrot.slane %v1750_v17, 4  ;;  %v1759_v50 = vadd.f32 %v1758_v27, %v1757_v6  ;;  %v1767_v26 = vsel %vm9360_vm1, %v6706_v30, 0.0  ;;  %v9396_v55 = vld [vmem:[#allocation33_spill] sm:$0xff] }
 0x1d5   : > { %v1737_v31 = vrot.slane %v1736_v15, 1  ;;  %v1744_v18 = vrot.slane %v1743_v5, 2  ;;  %v1768_v0 = vadd.f32 %v1767_v26, %v1766_v63  ;;  %v1775_v2 = vadd.f32 %v9391_v49, %v9390_v48  ;;  %v9399_v63 = vld [vmem:[#allocation34_spill] sm:$0xff] }
 0x1d6   : > { %v1776_v22 = vsel %vm9392_vm2, %v6712_v32, 0.0  ;;  %v1752_v41 = vadd.f32 %v1751_v20, %v1750_v17  ;;  %v1760_v42 = vrot.slane %v1759_v50, 4  ;;  %v1784_v40 = vadd.f32 %v9394_v29, %v9393_v39  ;;  %vm9406_vm2 = vmmov %vm9360_vm1 }
 0x1d7   : > { %v6887_v24 = vadd.f32 %v1737_v31, %v1736_v15  ;;  %v1745_v52 = vadd.f32 %v1744_v18, %v1743_v5  ;;  %v1769_v59 = vrot.slane %v1768_v0, 4  ;;  %v1777_v11 = vadd.f32 %v1776_v22, %v1775_v2  ;;  %v9400_v31 = vld [vmem:[#allocation20_spill] sm:$0xff]  ;;  %v9402_v2 = vld [vmem:[#allocation39_spill] sm:$0xff]  ;;  %v9403_v22 = vld [vmem:[#allocation21_spill] sm:$0xff] }
 0x1d8   : > { %v1785_v30 = vsel %vm9395_vm6, %v6718_v53, 0.0  ;;  %v1753_v44 = vrot.slane %v1752_v41, 2  ;;  %v1761_v19 = vadd.f32 %v1760_v42, %v1759_v50  ;;  %v1793_v45 = vadd.f32 %v9397_v9, %v9396_v55  ;;  %vm9409_vm6 = vmmov %vm9360_vm1 }
 0x1d9   : > { %v1786_v16 = vadd.f32 %v1785_v30, %v1784_v40  ;;  %v1746_v32 = vrot.slane %v1745_v52, 1  ;;  %v1770_v15 = vadd.f32 %v1769_v59, %v1768_v0  ;;  %v1778_v14 = vrot.slane %v1777_v11, 4 }
 0x1da   : > { %v1794_v17 = vsel %vm9398_vm14, %v6724_v7, 0.0  ;;  %v1754_v47 = vadd.f32 %v1753_v44, %v1752_v41  ;;  %v1762_v6 = vrot.slane %v1761_v19, 2  ;;  %v1802_v20 = vadd.f32 %v9400_v31, %v9399_v63  ;;  %v9408_v63 = vld [vmem:[#allocation27_spill] sm:$0xff]  ;;  %vm9412_vm14 = vmmov %vm9360_vm1 }
 0x1db   : > { %v1787_v5 = vrot.slane %v1786_v16, 4  ;;  %v1795_v27 = vadd.f32 %v1794_v17, %v1793_v45  ;;  %v6897_v35 = vadd.f32 %v1746_v32, %v1745_v52  ;;  %v1771_v21 = vrot.slane %v1770_v15, 2  ;;  %v9404_v32 = vld [vmem:[#allocation40_spill] sm:$0xff] }
 0x1dc   : > { %v1779_v53 = vadd.f32 %v1778_v14, %v1777_v11  ;;  %v1755_v50 = vrot.slane %v1754_v47, 1  ;;  %v1763_v26 = vadd.f32 %v1762_v6, %v1761_v19  ;;  %v1803_v7 = vsel %vm9401_vm9, %v6730_v33, 0.0  ;;  %vm9415_vm9 = vmmov %vm9360_vm1 }
 0x1dd   : > { %v1788_v18 = vadd.f32 %v1787_v5, %v1786_v16  ;;  %v1796_v48 = vrot.slane %v1795_v27, 4  ;;  %v1772_v0 = vadd.f32 %v1771_v21, %v1770_v15  ;;  %v1811_v41 = vadd.f32 %v9403_v22, %v9402_v2  ;;  %v9405_v15 = vld [vmem:[#allocation22_spill] sm:$0xff]  ;;  %v9411_v2 = vld [vmem:[#allocation28_spill] sm:$0xff] }
 0x1de   : > { %v1780_v49 = vrot.slane %v1779_v53, 2  ;;  %v6905_v42 = vadd.f32 %v1755_v50, %v1754_v47  ;;  %v1764_v39 = vrot.slane %v1763_v26, 1  ;;  %v1804_v11 = vadd.f32 %v1803_v7, %v1802_v20  ;;  %v9410_v7 = vld [vmem:[#allocation42_spill] sm:$0xff] }
 0x1df   : > { %v1789_v29 = vrot.slane %v1788_v18, 2  ;;  %v1797_v40 = vadd.f32 %v1796_v48, %v1795_v27  ;;  %v1773_v52 = vrot.slane %v1772_v0, 1  ;;  %v1812_v30 = vsel %vm9360_vm1, %v6736_v13, 0.0 }
 0x1e0   : > { %v1781_v59 = vadd.f32 %v1780_v49, %v1779_v53  ;;  %v6909_v44 = vadd.f32 %v1764_v39, %v1763_v26  ;;  %v1813_v55 = vadd.f32 %v1812_v30, %v1811_v41  ;;  %v1805_v45 = vrot.slane %v1804_v11, 4  ;;  %v9407_v53 = vld [vmem:[#allocation41_spill] sm:$0xff] }
 0x1e1   : > { %v1790_v19 = vadd.f32 %v1789_v29, %v1788_v18  ;;  %v1798_v16 = vrot.slane %v1797_v40, 2  ;;  %v6911_v33 = vadd.f32 %v1773_v52, %v1772_v0  ;;  %v1820_v14 = vadd.f32 %v9405_v15, %v9404_v32  ;;  %v9413_v29 = vld [vmem:[#allocation47_spill] sm:$0xff] }
 0x1e2   : > { %v1782_v9 = vrot.slane %v1781_v59, 1  ;;  %v1814_v6 = vrot.slane %v1813_v55, 4  ;;  %v1821_v5 = vsel %vm9406_vm2, %v6742_v46, 0.0  ;;  %v1806_v13 = vadd.f32 %v1805_v45, %v1804_v11  ;;  %vm9420_vm2 = vmmov %vm9360_vm1 }
 0x1e3   : > { %v1791_v17 = vrot.slane %v1790_v19, 1  ;;  %v1799_v47 = vadd.f32 %v1798_v16, %v1797_v40  ;;  %v1822_v21 = vadd.f32 %v1821_v5, %v1820_v14  ;;  %v1829_v31 = vadd.f32 %v9408_v63, %v9407_v53  ;;  %v9414_v40 = vld [vmem:[#allocation29_spill] sm:$0xff] }
 0x1e4   : > { %v6917_v27 = vadd.f32 %v1782_v9, %v1781_v59  ;;  %v1815_v26 = vadd.f32 %v1814_v6, %v1813_v55  ;;  %v1830_v18 = vsel %vm9409_vm6, %v6748_v62, 0.0  ;;  %v1807_v48 = vrot.slane %v1806_v13, 2  ;;  %v9416_v55 = vld [vmem:[#allocation48_spill] sm:$0xff]  ;;  %v9417_v9 = vld [vmem:[#allocation30_spill] sm:$0xff]  ;;  %vm9423_vm6 = vmmov %vm9360_vm1 }
 0x1e5   : > { %v6921_v20 = vadd.f32 %v1791_v17, %v1790_v19  ;;  %v1800_v50 = vrot.slane %v1799_v47, 1  ;;  %v1823_v0 = vrot.slane %v1822_v21, 4  ;;  %v1831_v49 = vadd.f32 %v1830_v18, %v1829_v31 }
 0x1e6   : > { %v1838_v46 = vadd.f32 %v9411_v2, %v9410_v7  ;;  %v1816_v41 = vrot.slane %v1815_v26, 2  ;;  %v1839_v39 = vsel %vm9412_vm14, %v6754_v36, 0.0  ;;  %v1847_v52 = vadd.f32 %v9414_v40, %v9413_v29  ;;  %v9422_v29 = vld [vmem:[#allocation36_spill] sm:$0xff]  ;;  %vm9425_vm14 = vmmov %vm9360_vm1 }
 0x1e7   : > { %v6927_v22 = vadd.f32 %v1800_v50, %v1799_v47  ;;  %v1808_v59 = vadd.f32 %v1807_v48, %v1806_v13  ;;  %v1824_v11 = vadd.f32 %v1823_v0, %v1822_v21  ;;  %v1832_v30 = vrot.slane %v1831_v49, 4  ;;  %v9418_v13 = vld [vmem:[#allocation49_spill] sm:$0xff]  ;;  %v9419_v21 = vld [vmem:[#allocation35_spill] sm:$0xff] }
 0x1e8   : > { %v1840_v19 = vadd.f32 %v1839_v39, %v1838_v46  ;;  %v1817_v62 = vadd.f32 %v1816_v41, %v1815_v26  ;;  %v1848_v16 = vsel %vm9415_vm9, %v6760_v60, 0.0  ;;  %v1856_v45 = vadd.f32 %v9417_v9, %v9416_v55  ;;  %v9421_v39 = vld [vmem:[#allocation53_spill] sm:$0xff]  ;;  %v9424_v55 = vld [vmem:[#allocation54_spill] sm:$0xff] }
 0x1e9   : > { %v1857_v32 = vsel %vm9360_vm1, %v6766_v51, 0.0  ;;  %v1809_v15 = vrot.slane %v1808_v59, 1  ;;  %v1825_v14 = vrot.slane %v1824_v11, 2  ;;  %v1833_v36 = vadd.f32 %v1832_v30, %v1831_v49 }
 0x1ea   : > { %v1841_v17 = vrot.slane %v1840_v19, 4  ;;  %v1818_v47 = vrot.slane %v1817_v62, 1  ;;  %v1849_v6 = vadd.f32 %v1848_v16, %v1847_v52  ;;  %v1858_v5 = vadd.f32 %v1857_v32, %v1856_v45 }
 0x1eb   : > { %v1865_v53 = vadd.f32 %v9419_v21, %v9418_v13  ;;  %v6941_v63 = vadd.f32 %v1809_v15, %v1808_v59  ;;  %v1826_v31 = vadd.f32 %v1825_v14, %v1824_v11  ;;  %v1834_v60 = vrot.slane %v1833_v36, 2  ;;  %v9426_v21 = vld [vmem:[#allocation127_spill] sm:$0xff] }
 0x1ec   : > { %v1842_v50 = vadd.f32 %v1841_v17, %v1840_v19  ;;  %v6943_v26 = vadd.f32 %v1818_v47, %v1817_v62  ;;  %v1850_v18 = vrot.slane %v1849_v6, 4  ;;  %v1859_v48 = vrot.slane %v1858_v5, 4 }
 0x1ed   : > { %v1866_v51 = vsel %vm9420_vm2, %v6772_v43, 0.0  ;;  %v1827_v0 = vrot.slane %v1826_v31, 1  ;;  %v1835_v49 = vadd.f32 %v1834_v60, %v1833_v36  ;;  %v1874_v40 = vadd.f32 %v9422_v29, %v9421_v39  ;;  %v6959_v36 = vpop.permute.xlu0 %1894  ;;  %v9432_v29 = vld [vmem:[#allocation129_spill] sm:$0xff] }
 0x1ee   : > { %v1843_v7 = vrot.slane %v1842_v50, 2  ;;  %v1867_v2 = vadd.f32 %v1866_v51, %v1865_v53  ;;  %v1851_v46 = vadd.f32 %v1850_v18, %v1849_v6  ;;  %v1860_v41 = vadd.f32 %v1859_v48, %v1858_v5  ;;  %v9427_v18 = vld [vmem:[#allocation128_spill] sm:$0xff]  ;;  %v9428_v51 = vld [vmem:[#allocation150_spill] sm:$0xff] }
 0x1ef   : > { %v1875_v52 = vsel %vm9423_vm6, %v6778_v25, 0.0  ;;  %v6951_v59 = vadd.f32 %v1827_v0, %v1826_v31  ;;  %v1836_v11 = vrot.slane %v1835_v49, 1  ;;  %v1883_v9 = vadd.f32 %v6606_v1, %v9424_v55  ;;  %v9429_v0 = vld [vmem:[#allocation96_spill] sm:$0xff] }
 0x1f0   : > { %v1844_v30 = vadd.f32 %v1843_v7, %v1842_v50  ;;  %v1868_v19 = vrot.slane %v1867_v2, 4  ;;  %v1852_v62 = vrot.slane %v1851_v46, 2  ;;  %v1861_v16 = vrot.slane %v1860_v41, 2 }
 0x1f1   : > { %v1876_v43 = vadd.f32 %v1875_v52, %v1874_v40  ;;  %v6955_v45 = vadd.f32 %v1836_v11, %v1835_v49  ;;  %v1884_v14 = vsel %vm9425_vm14, %v6784_v4, 0.0  ;;  %3697 = vlog2.f32 %v9426_v21  ;;  %v9433_v52 = vld [vmem:[#allocation162_spill] sm:$0xff]  ;;  %v9449_v21 = vld [vmem:[#allocation133_spill] sm:$0xff] }
 0x1f2   : > { %v1845_v32 = vrot.slane %v1844_v30, 1  ;;  %v1869_v15 = vadd.f32 %v1868_v19, %v1867_v2  ;;  %v1853_v25 = vadd.f32 %v1852_v62, %v1851_v46  ;;  %v1862_v17 = vadd.f32 %v1861_v16, %v1860_v41  ;;  %v9436_v62 = vld [vmem:[#allocation130_spill] sm:$0xff]  ;;  %v9437_v16 = vld [vmem:[#allocation163_spill] sm:$0xff] }
 0x1f3   : > { %v1877_v47 = vrot.slane %v1876_v43, 4  ;;  %v1885_v6 = vadd.f32 %v1884_v14, %v1883_v9  ;;  %3699 = vlog2.f32 %v9427_v18  ;;  %v4023_v48 = vmov 1966171168   ;;  %v9440_v9 = vld [vmem:[#allocation131_spill] sm:$0xff] }
 0x1f4   : > { %v6961_v5 = vadd.f32 %v1845_v32, %v1844_v30  ;;  %v1870_v13 = vrot.slane %v1869_v15, 2  ;;  %v1854_v53 = vrot.slane %v1853_v25, 1  ;;  %v1863_v1 = vrot.slane %v1862_v17, 1 }
 0x1f5   : > { %v1878_v31 = vadd.f32 %v1877_v47, %v1876_v43  ;;  %v1886_v60 = vrot.slane %v1885_v6, 4  ;;  %v2520_v4 = vunpack.c.l.s4 %v4023_v48  ;;  %vm9430_vm9 = vcmp.eq.s32.totalorder %v9428_v51, %v9429_v0  ;;  %v9445_v47 = vld [vmem:[#allocation132_spill] sm:$0xff] }
 0x1f6   : > { %v1871_v50 = vadd.f32 %v1870_v13, %v1869_v15  ;;  %v6969_v49 = vsel %vm9430_vm9, %v6959_v36, 0.0  ;;  %v6971_v7 = vadd.f32 %v1854_v53, %v1853_v25  ;;  %v6973_v2 = vadd.f32 %v1863_v1, %v1862_v17  ;;  %v9442_v15 = vld [vmem:[#allocation164_spill] sm:$0xff]  ;;  %v9450_v53 = vld [vmem:[#allocation166_spill] sm:$0xff] }
 0x1f7   : > { %9431 = vst [vmem:[#allocation37_spill] sm:$0xff] %v6969_v49  ;;  %v1879_v46 = vrot.slane %v1878_v31, 2  ;;  %v1887_v41 = vadd.f32 %v1886_v60, %v1885_v6  ;;  %3701 = vlog2.f32 %v9432_v29  ;;  %v2521_v40 = vunpack.c.0.s8 %v2520_v4  ;;  %v9446_v6 = vld [vmem:[#allocation165_spill] sm:$0xff] }
 0x1f8   : > { %v1872_v39 = vrot.slane %v1871_v50, 1  ;;  %vm9434_vm1 = vcmp.eq.s32.totalorder %v9428_v51, %v9433_v52  ;;  %3703 = vlog2.f32 %v9436_v62  ;;  %vm9438_vm2 = vcmp.eq.s32.totalorder %v9428_v51, %v9437_v16 }
 0x1f9   : > { %v6980_v11 = vsel %vm9434_vm1, %v6959_v36, 0.0  ;;  %v1880_v30 = vadd.f32 %v1879_v46, %v1878_v31  ;;  %v1888_v19 = vrot.slane %v1887_v41, 2  ;;  %v6987_v43 = vsel %vm9438_vm2, %v6959_v36, 0.0  ;;  %v9453_v31 = vld [vmem:[#allocation167_spill] sm:$0xff]  ;;  %v9459_v46 = vld [vmem:[#allocation134_spill] sm:$0xff] }
 0x1fa   : > { %9435 = vst [vmem:[#allocation38_spill] sm:$0xff] %v6980_v11  ;;  %9439 = vst [vmem:[#allocation43_spill] sm:$0xff] %v6987_v43  ;;  %v6989_v55 = vadd.f32 %v1872_v39, %v1871_v50  ;;  %3705 = vlog2.f32 %v9440_v9  ;;  %v6993_v32 = vsub.s32 %v2521_v40, %v9428_v51  ;;  %vm9443_vm6 = vcmp.eq.s32.totalorder %v9428_v51, %v9442_v15  ;;  %v9456_v50 = vld [vmem:[#allocation170_spill] sm:$0xff]  ;;  %v9463_v40 = vld [vmem:[#allocation135_spill] sm:$0xff] }
 0x1fb   : > { %v6999_v14 = vsel %vm9443_vm6, %v6959_v36, 0.0  ;;  %v1881_v25 = vrot.slane %v1880_v30, 1  ;;  %v1889_v17 = vadd.f32 %v1888_v19, %v1887_v41  ;;  %3707 = vlog2.f32 %v9445_v47  ;;  %v9460_v41 = vld [vmem:[#allocation98_spill] sm:$0xff]  ;;  %v3698_v29 = vpop.eup %3697  ;;  %v9464_v19 = vld [vmem:[#allocation168_spill] sm:$0xff]  ;;  %v9493_v43 = vld [vmem:[#allocation99_spill] sm:$0xff] }
 0x1fc   : > { %9441 = vst [vmem:[#allocation44_spill] sm:$0xff] %v6993_v32  ;;  %9444 = vst [vmem:[#allocation45_spill] sm:$0xff] %v6999_v14  ;;  %vm9447_vm14 = vcmp.eq.s32.totalorder %v9428_v51, %v9446_v6  ;;  %3709 = vlog2.f32 %v9449_v21  ;;  %vm9451_vm9 = vcmp.eq.s32.totalorder %v9428_v51, %v9450_v53  ;;  %vm9454_vm1 = vcmp.eq.s32.totalorder %v9428_v51, %v9453_v31  ;;  %v9502_v11 = vld [vmem:[#allocation139_spill] sm:$0xff] }
 0x1fd   : > { %v7006_v13 = vsel %vm9447_vm14, %v6959_v36, 0.0  ;;  %v7013_v1 = vsel %vm9451_vm9, %v6959_v36, 0.0  ;;  %v7019_v60 = vsel %vm9454_vm1, %v6959_v36, 0.0  ;;  %vm9457_vm2 = vcmp.eq.s32.totalorder %v9428_v51, %v9456_v50 }
 0x1fe   : > { %9448 = vst [vmem:[#allocation46_spill] sm:$0xff] %v7006_v13  ;;  %9452 = vst [vmem:[#allocation50_spill] sm:$0xff] %v7013_v1  ;;  %v7025_v18 = vsel %vm9457_vm2, %v6959_v36, 0.0  ;;  %v7027_v48 = vadd.f32 %v1881_v25, %v1880_v30  ;;  %v1890_v4 = vrot.slane %v1889_v17, 1  ;;  %3711 = vlog2.f32 %v9459_v46  ;;  %v9467_v30 = vld [vmem:[#allocation169_spill] sm:$0xff]  ;;  %v9470_v25 = vld [vmem:[#allocation171_spill] sm:$0xff] }
 0x1ff   : > { %9455 = vst [vmem:[#allocation51_spill] sm:$0xff] %v7019_v60  ;;  %9458 = vst [vmem:[#allocation52_spill] sm:$0xff] %v7025_v18  ;;  %vm9461_vm6 = vcmp.eq.s32.totalorder %v9428_v51, %v9460_v41  ;;  %3713 = vlog2.f32 %v9463_v40  ;;  %vm9465_vm14 = vcmp.eq.s32.totalorder %v9428_v51, %v9464_v19  ;;  %vm9468_vm9 = vcmp.eq.s32.totalorder %v9428_v51, %v9467_v30  ;;  %v9473_v40 = vld [vmem:[#allocation149_spill] sm:$0xff]  ;;  %v3700_v18 = vpop.eup %3699  ;;  %v9477_v60 = vld [vmem:[#allocation136_spill] sm:$0xff] }
 0x200   : > { %v7034_v39 = vsel %vm9461_vm6, %v6959_v36, 0.0  ;;  %v7041_v62 = vsel %vm9465_vm14, %v6959_v36, 0.0  ;;  %v7047_v9 = vsel %vm9468_vm9, %v6959_v36, 0.0  ;;  %vm9471_vm1 = vcmp.eq.s32.totalorder %v9428_v51, %v9470_v25 }
 0x201   : > { %9462 = vst [vmem:[#allocation57_spill] sm:$0xff] %v7034_v39  ;;  %9466 = vst [vmem:[#allocation58_spill] sm:$0xff] %v7041_v62  ;;  %v7053_v47 = vsel %vm9471_vm1, %v6959_v36, 0.0  ;;  %v7055_v21 = vadd.f32 %v1890_v4, %v1889_v17  ;;  %v2292_v46 = vmul.f32 0.6931472, %v3698_v29  ;;  %3715 = vlog2.f32 %v9473_v40  ;;  %v9474_v62 = vld [vmem:[#allocation172_spill] sm:$0xff]  ;;  %v3702_v14 = vpop.eup %3701 }
 0x202   : > { %9469 = vst [vmem:[#allocation59_spill] sm:$0xff] %v7047_v9  ;;  %9472 = vst [vmem:[#allocation60_spill] sm:$0xff] %v7053_v47  ;;  %vm9475_vm2 = vcmp.eq.s32.totalorder %v9428_v51, %v9474_v62  ;;  %3717 = vlog2.f32 %v9477_v60  ;;  %v9478_v9 = vld [vmem:[#allocation173_spill] sm:$0xff]  ;;  %v9481_v17 = vld [vmem:[#allocation174_spill] sm:$0xff] }
 0x203   : > { %v7062_v39 = vsel %vm9475_vm2, %v6959_v36, 0.0  ;;  %vm9479_vm6 = vcmp.eq.s32.totalorder %v9428_v51, %v9478_v9  ;;  %vm9482_vm14 = vcmp.eq.s32.totalorder %v9428_v51, %v9481_v17  ;;  %v9484_v29 = vld [vmem:[#allocation175_spill] sm:$0xff]  ;;  %v9487_v60 = vld [vmem:[#allocation137_spill] sm:$0xff]  ;;  %v7085_v47 = vsub.f32 %v2292_v46, %v6811_v23  ;;  %v9499_v46 = vld [vmem:[#allocation176_spill] sm:$0xff] }
 0x204   : > { %9476 = vst [vmem:[#allocation65_spill] sm:$0xff] %v7062_v39  ;;  %v7069_v1 = vsel %vm9479_vm6, %v6959_v36, 0.0  ;;  %v7075_v4 = vsel %vm9482_vm14, %v6959_v36, 0.0  ;;  %vm9485_vm9 = vcmp.eq.s32.totalorder %v9428_v51, %v9484_v29  ;;  %v2294_v39 = vmul.f32 0.6931472, %v3700_v18  ;;  %v9496_v18 = vld [vmem:[#allocation120_spill] sm:$0xff] }
 0x205   : > { %9480 = vst [vmem:[#allocation66_spill] sm:$0xff] %v7069_v1  ;;  %9483 = vst [vmem:[#allocation70_spill] sm:$0xff] %v7075_v4  ;;  %v7081_v40 = vsel %vm9485_vm9, %v6959_v36, 0.0  ;;  %3719 = vlog2.f32 %v9487_v60  ;;  %v9489_v1 = vld [vmem:[#allocation119_spill] sm:$0xff]  ;;  %v9492_v4 = vld [vmem:[#allocation138_spill] sm:$0xff]  ;;  %vm9494_vm2 = vcmp.eq.s32.totalorder %v9428_v51, %v9493_v43  ;;  %vm9497_vm6 = vcmp.eq.s32.totalorder %v9428_v51, %v9496_v18 }
 0x206   : > { %9486 = vst [vmem:[#allocation71_spill] sm:$0xff] %v7081_v40  ;;  %9488 = vst [vmem:[#allocation72_spill] sm:$0xff] %v7085_v47  ;;  %vm9490_vm1 = vcmp.eq.s32.totalorder %v9428_v51, %v9489_v1  ;;  %3721 = vlog2.f32 %v9492_v4  ;;  %v7098_v40 = vsel %vm9494_vm2, %v6959_v36, 0.0  ;;  %v7104_v23 = vsel %vm9497_vm6, %v6959_v36, 0.0  ;;  %v9507_v1 = vld [vmem:[#allocation140_spill] sm:$0xff]  ;;  %v9516_v29 = vld [vmem:[#allocation142_spill] sm:$0xff] }
 0x207   : > { %v7091_v13 = vsel %vm9490_vm1, %v6959_v36, 0.0  ;;  %9495 = vst [vmem:[#allocation76_spill] sm:$0xff] %v7098_v40  ;;  %9498 = vst [vmem:[#allocation77_spill] sm:$0xff] %v7104_v23  ;;  %vm9500_vm14 = vcmp.eq.s32.totalorder %v9428_v51, %v9499_v46  ;;  %v2296_v4 = vmul.f32 0.6931472, %v3702_v14  ;;  %3723 = vlog2.f32 %v9502_v11  ;;  %v9504_v40 = vld [vmem:[#allocation121_spill] sm:$0xff] }
 0x208   : > { %9491 = vst [vmem:[#allocation75_spill] sm:$0xff] %v7091_v13  ;;  %v7110_v60 = vsel %vm9500_vm14, %v6959_v36, 0.0  ;;  %v3704_v13 = vpop.eup %3703  ;;  %v7114_v49 = vsub.f32 %v2294_v39, %v6813_v10  ;;  %vm9505_vm9 = vcmp.eq.s32.totalorder %v9428_v51, %v9504_v40  ;;  %3725 = vlog2.f32 %v9507_v1  ;;  %v9511_v10 = vld [vmem:[#allocation122_spill] sm:$0xff]  ;;  %v9514_v46 = vld [vmem:[#allocation141_spill] sm:$0xff] }
 0x209   : > { %9501 = vst [vmem:[#allocation79_spill] sm:$0xff] %v7110_v60  ;;  %v7120_v18 = vsel %vm9505_vm9, %v6959_v36, 0.0  ;;  %v3706_v23 = vpop.eup %3705  ;;  %v2298_v43 = vmul.f32 0.6931472, %v3704_v13  ;;  %v9508_v60 = vld [vmem:[#allocation177_spill] sm:$0xff]  ;;  %vm9512_vm2 = vcmp.eq.s32.totalorder %v9428_v51, %v9511_v10  ;;  %3727 = vlog2.f32 %v9514_v46 }
 0x20a   : > { %9503 = vst [vmem:[#allocation67_spill] sm:$0xff] %v7114_v49  ;;  %9506 = vst [vmem:[#allocation80_spill] sm:$0xff] %v7120_v18  ;;  %vm9509_vm1 = vcmp.eq.s32.totalorder %v9428_v51, %v9508_v60  ;;  %v7133_v11 = vsel %vm9512_vm2, %v6959_v36, 0.0  ;;  %v3708_v39 = vpop.eup %3707  ;;  %v2300_v40 = vmul.f32 0.6931472, %v3706_v23  ;;  %v7137_v13 = vsub.f32 %v2296_v4, %v6815_v8  ;;  %v9521_v8 = vld [vmem:[#allocation143_spill] sm:$0xff] }
 0x20b   : > { %v7127_v14 = vsel %vm9509_vm1, %v6959_v36, 0.0  ;;  %9513 = vst [vmem:[#allocation83_spill] sm:$0xff] %v7133_v11  ;;  %v2755_v1 = vcombine.low %v7085_v47, %v7114_v49  ;;  %v3710_v18 = vpop.eup %3709  ;;  %v2302_v60 = vmul.f32 0.6931472, %v3708_v39  ;;  %3729 = vlog2.f32 %v9516_v29  ;;  %v9518_v11 = vld [vmem:[#allocation178_spill] sm:$0xff]  ;;  %v9523_v47 = vld [vmem:[#allocation144_spill] sm:$0xff] }
 0x20c   : > { %9510 = vst [vmem:[#allocation81_spill] sm:$0xff] %v7127_v14  ;;  %9515 = vst [vmem:[#allocation84_spill] sm:$0xff] %v7137_v13  ;;  %v7143_v14 = vsub.f32 %v2298_v43, %v6817_v34  ;;  %vm9519_vm6 = vcmp.eq.s32.totalorder %v9428_v51, %v9518_v11  ;;  %v3712_v46 = vpop.eup %3711  ;;  %v2304_v10 = vmul.f32 0.6931472, %v3710_v18  ;;  %3731 = vlog2.f32 %v9521_v8  ;;  %v9525_v18 = vld [vmem:[#allocation145_spill] sm:$0xff] }
 0x20d   : > { %v7149_v23 = vsel %vm9519_vm6, %v6959_v36, 0.0  ;;  %v7153_v4 = vsub.f32 %v2300_v40, %v6819_v12  ;;  %v2765_v39 = vrot.slane %v2755_v1, %v6993_v32  ;;  %v3714_v49 = vpop.eup %3713  ;;  %v2306_v29 = vmul.f32 0.6931472, %v3712_v46  ;;  %v9527_v12 = vld [vmem:[#allocation123_spill] sm:$0xff] }
 0x20e   : > { %9517 = vst [vmem:[#allocation86_spill] sm:$0xff] %v7143_v14  ;;  %9520 = vst [vmem:[#allocation87_spill] sm:$0xff] %v7149_v23  ;;  %3733 = vlog2.f32 %v9523_v47  ;;  %v7158_v34 = vsub.f32 %v2302_v60, %v6825_v3  ;;  %v2756_v43 = vcombine.low %v7137_v13, %v7143_v14  ;;  %v3716_v23 = vpop.eup %3715  ;;  %v2308_v11 = vmul.f32 0.6931472, %v3714_v49  ;;  %v9530_v3 = vld [vmem:[#allocation146_spill] sm:$0xff] }
 0x20f   : > { %9522 = vst [vmem:[#allocation89_spill] sm:$0xff] %v7153_v4  ;;  %3735 = vlog2.f32 %v9525_v18  ;;  %v7164_v8 = vsub.f32 %v2304_v10, %v6831_v58  ;;  %vm9528_vm14 = vcmp.eq.s32.totalorder %v9428_v51, %v9527_v12  ;;  %v3718_v47 = vpop.eup %3717  ;;  %v2310_v1 = vmul.f32 0.6931472, %v3716_v23  ;;  %v9532_v58 = vld [vmem:[#allocation147_spill] sm:$0xff]  ;;  %v9534_v23 = vld [vmem:[#allocation148_spill] sm:$0xff] }
 0x210   : > { %9524 = vst [vmem:[#allocation90_spill] sm:$0xff] %v7158_v34  ;;  %v7170_v40 = vsel %vm9528_vm14, %v6959_v36, 0.0  ;;  %3737 = vlog2.f32 %v9530_v3  ;;  %v7174_v60 = vsub.f32 %v2306_v29, %v6849_v37  ;;  %v2757_v49 = vcombine.low %v7153_v4, %v7158_v34  ;;  %v3720_v46 = vpop.eup %3719  ;;  %v9544_v4 = vld [vmem:[#allocation155_spill] sm:$0xff] }
 0x211   : > { %9526 = vst [vmem:[#allocation92_spill] sm:$0xff] %v7164_v8  ;;  %9529 = vst [vmem:[#allocation93_spill] sm:$0xff] %v7170_v40  ;;  %v2312_v18 = vmul.f32 0.6931472, %v3718_v47  ;;  %3739 = vlog2.f32 %v9532_v58  ;;  %v7180_v10 = vsub.f32 %v2308_v11, %v6859_v28  ;;  %v2772_v14 = vrot.slane %v2756_v43, %v6993_v32  ;;  %v3722_v13 = vpop.eup %3721  ;;  %v9536_v47 = vld [vmem:[#allocation151_spill] sm:$0xff] }
 0x212   : > { %9531 = vst [vmem:[#allocation94_spill] sm:$0xff] %v7174_v60  ;;  %v2314_v40 = vmul.f32 0.6931472, %v3720_v46  ;;  %3741 = vlog2.f32 %v9534_v23  ;;  %v7185_v3 = vsub.f32 %v2310_v1, %v6861_v54  ;;  %v2758_v37 = vcombine.low %v7164_v8, %v7174_v60  ;;  %v3724_v29 = vpop.eup %3723  ;;  %v9538_v46 = vld [vmem:[#allocation152_spill] sm:$0xff]  ;;  %v9540_v8 = vld [vmem:[#allocation153_spill] sm:$0xff] }
 0x213   : > { %9533 = vst [vmem:[#allocation95_spill] sm:$0xff] %v7180_v10  ;;  %v2316_v34 = vmul.f32 0.6931472, %v3722_v13  ;;  %3743 = vlog2.f32 %v9536_v47  ;;  %v7191_v58 = vsub.f32 %v2312_v18, %v6863_v57  ;;  %v2779_v28 = vrot.slane %v2757_v49, %v6993_v32  ;;  %v3726_v11 = vpop.eup %3725  ;;  %v9542_v49 = vld [vmem:[#allocation154_spill] sm:$0xff] }
 0x214   : > { %9535 = vst [vmem:[#allocation97_spill] sm:$0xff] %v7185_v3  ;;  %v2318_v43 = vmul.f32 0.6931472, %v3724_v29  ;;  %3745 = vlog2.f32 %v9538_v46  ;;  %v7196_v23 = vsub.f32 %v2314_v40, %v6867_v56  ;;  %v2786_v54 = vrot.slane %v2758_v37, %v6993_v32  ;;  %v3728_v1 = vpop.eup %3727 }
 0x215   : > { %9537 = vst [vmem:[#allocation101_spill] sm:$0xff] %v7191_v58  ;;  %v2320_v60 = vmul.f32 0.6931472, %v3726_v11  ;;  %3747 = vlog2.f32 %v9540_v8  ;;  %v7201_v13 = vsub.f32 %v2316_v34, %v6871_v61  ;;  %v2787_v57 = vcombine.low %v2765_v39, %v2772_v14  ;;  %v3730_v18 = vpop.eup %3729  ;;  %v9546_v14 = vld [vmem:[#allocation156_spill] sm:$0xff] }
 0x216   : > { %9539 = vst [vmem:[#allocation102_spill] sm:$0xff] %v7196_v23  ;;  %v2322_v47 = vmul.f32 0.6931472, %v3728_v1  ;;  %3749 = vlog2.f32 %v9542_v49  ;;  %v7205_v29 = vsub.f32 %v2318_v43, %v6875_v38  ;;  %v2788_v46 = vcombine.low %v2779_v28, %v2786_v54  ;;  %v3732_v56 = vpop.eup %3731  ;;  %v9548_v43 = vld [vmem:[#allocation157_spill] sm:$0xff]  ;;  %v9550_v1 = vld [vmem:[#allocation158_spill] sm:$0xff]  ;;  %v9552_v49 = vld [vmem:[#allocation159_spill] sm:$0xff] }
 0x217   : > { %9541 = vst [vmem:[#allocation103_spill] sm:$0xff] %v7201_v13  ;;  %v2324_v40 = vmul.f32 0.6931472, %v3730_v18  ;;  %3751 = vlog2.f32 %v9544_v4  ;;  %v7209_v37 = vsub.f32 %v2320_v60, %v6887_v24  ;;  %v2795_v8 = vrot.slane %v2787_v57, %v6993_v32 }
 0x218   : > { %9543 = vst [vmem:[#allocation104_spill] sm:$0xff] %v7205_v29  ;;  %v3734_v61 = vpop.eup %3733  ;;  %v2326_v34 = vmul.f32 0.6931472, %v3732_v56  ;;  %3753 = vlog2.f32 %v9546_v14  ;;  %v7214_v39 = vsub.f32 %v2322_v47, %v6897_v35  ;;  %v2802_v38 = vrot.slane %v2788_v46, %v6993_v32 }
 0x219   : > { %9545 = vst [vmem:[#allocation105_spill] sm:$0xff] %v7209_v37  ;;  %v3736_v11 = vpop.eup %3735  ;;  %v2328_v28 = vmul.f32 0.6931472, %v3734_v61  ;;  %3755 = vlog2.f32 %v9548_v43  ;;  %v7219_v4 = vsub.f32 %v2324_v40, %v6905_v42  ;;  %v2804_v24 = vcombine.low %v7180_v10, %v7185_v3  ;;  %v9614_v10 = vld [vmem:[#allocation177_spill] sm:$0xff] }
 0x21a   : > { %9547 = vst [vmem:[#allocation106_spill] sm:$0xff] %v7214_v39  ;;  %v3738_v60 = vpop.eup %3737  ;;  %v2330_v54 = vmul.f32 0.6931472, %v3736_v11  ;;  %3757 = vlog2.f32 %v9550_v1  ;;  %v7225_v35 = vsub.f32 %v2326_v34, %v6909_v44  ;;  %v2803_v57 = vcombine.low %v2795_v8, %v2802_v38 }
 0x21b   : > { %9549 = vst [vmem:[#allocation107_spill] sm:$0xff] %v7219_v4  ;;  %v3740_v18 = vpop.eup %3739  ;;  %v2332_v47 = vmul.f32 0.6931472, %v3738_v60  ;;  %3759 = vlog2.f32 %v9552_v49  ;;  %v7229_v46 = vsub.f32 %v2328_v28, %v6911_v33  ;;  %v2805_v42 = vcombine.low %v7191_v58, %v7196_v23  ;;  %v7468_v58 = vpop.permute.xlu1 %1904 }
 0x21c   : > { %9551 = vst [vmem:[#allocation108_spill] sm:$0xff] %v7225_v35  ;;  %v3742_v56 = vpop.eup %3741  ;;  %v2334_v40 = vmul.f32 0.6931472, %v3740_v18  ;;  %v7234_v61 = vsub.f32 %v2330_v54, %v6917_v27  ;;  %v2806_v44 = vcombine.low %v7201_v13, %v7205_v29  ;;  %v2807_v8 = vcombine.low %v7209_v37, %v7214_v39  ;;  %2955 = vst [vmem:[%s7241_s23] sm:$0xff] %v2803_v57  ;;  %v9610_v37 = vld [vmem:[#allocation176_spill] sm:$0xff]  ;;  %v9612_v13 = vld [vmem:[#allocation121_spill] sm:$0xff] }
 0x21d   : > { %9553 = vst [vmem:[#allocation109_spill] sm:$0xff] %v7229_v46  ;;  %v3744_v33 = vpop.eup %3743  ;;  %v2336_v34 = vmul.f32 0.6931472, %v3742_v56  ;;  %v7245_v14 = vsub.f32 %v2332_v47, %v6921_v20  ;;  %v2814_v38 = vrot.slane %v2804_v24, %v6993_v32  ;;  %v2821_v27 = vrot.slane %v2805_v42, %v6993_v32 }
 0x21e   : > { %9554 = vst [vmem:[#allocation110_spill] sm:$0xff] %v7234_v61  ;;  %v3746_v11 = vpop.eup %3745  ;;  %v2338_v28 = vmul.f32 0.6931472, %v3744_v33  ;;  %v7250_v43 = vsub.f32 %v2334_v40, %v6927_v22  ;;  %v2828_v60 = vrot.slane %v2806_v44, %v6993_v32  ;;  %v2835_v54 = vrot.slane %v2807_v8, %v6993_v32 }
 0x21f   : > { %9555 = vst [vmem:[#allocation111_spill] sm:$0xff] %v7245_v14  ;;  %v3748_v1 = vpop.eup %3747  ;;  %v2340_v57 = vmul.f32 0.6931472, %v3746_v11  ;;  %v7255_v18 = vsub.f32 %v2336_v34, %v6941_v63  ;;  %v2836_v20 = vcombine.low %v2814_v38, %v2821_v27  ;;  %v2853_v24 = vcombine.low %v7219_v4, %v7225_v35  ;;  %v9607_v4 = vld [vmem:[#allocation99_spill] sm:$0xff] }
 0x220   : > { %9556 = vst [vmem:[#allocation112_spill] sm:$0xff] %v7250_v43  ;;  %v3750_v47 = vpop.eup %3749  ;;  %v2342_v49 = vmul.f32 0.6931472, %v3748_v1  ;;  %v7260_v42 = vsub.f32 %v2338_v28, %v6943_v26  ;;  %v2837_v22 = vcombine.low %v2828_v60, %v2835_v54  ;;  %v2854_v56 = vcombine.low %v7229_v46, %v7234_v61  ;;  %v9606_v46 = vld [vmem:[#allocation119_spill] sm:$0xff] }
 0x221   : > { %9557 = vst [vmem:[#allocation113_spill] sm:$0xff] %v7255_v18  ;;  %v3752_v40 = vpop.eup %3751  ;;  %v2344_v44 = vmul.f32 0.6931472, %v3750_v47  ;;  %v7265_v8 = vsub.f32 %v2340_v57, %v6951_v59  ;;  %v2844_v63 = vrot.slane %v2836_v20, %v6993_v32  ;;  %v2855_v33 = vcombine.low %v7245_v14, %v7250_v43  ;;  %v9604_v14 = vld [vmem:[#allocation175_spill] sm:$0xff] }
 0x222   : > { %9558 = vst [vmem:[#allocation114_spill] sm:$0xff] %v7260_v42  ;;  %v3754_v34 = vpop.eup %3753  ;;  %v2346_v38 = vmul.f32 0.6931472, %v3752_v40  ;;  %v7271_v27 = vsub.f32 %v2342_v49, %v6955_v45  ;;  %v2851_v26 = vrot.slane %v2837_v22, %v6993_v32  ;;  %v2856_v11 = vcombine.low %v7255_v18, %v7260_v42 }
 0x223   : > { %9559 = vst [vmem:[#allocation115_spill] sm:$0xff] %v7265_v8  ;;  %v3756_v28 = vpop.eup %3755  ;;  %v2348_v60 = vmul.f32 0.6931472, %v3754_v34  ;;  %v7277_v59 = vsub.f32 %v2344_v44, %v6961_v5  ;;  %v2863_v54 = vrot.slane %v2853_v24, %v6993_v32  ;;  %v2870_v1 = vrot.slane %v2854_v56, %v6993_v32 }
 0x224   : > { %9560 = vst [vmem:[#allocation116_spill] sm:$0xff] %v7271_v27  ;;  %v3758_v57 = vpop.eup %3757  ;;  %v2350_v20 = vmul.f32 0.6931472, %v3756_v28  ;;  %v7282_v45 = vsub.f32 %v2346_v38, %v6971_v7  ;;  %v2852_v47 = vcombine.low %v2844_v63, %v2851_v26  ;;  %v2877_v49 = vrot.slane %v2855_v33, %v6993_v32  ;;  %v9566_v38 = vld [vmem:[#allocation100_spill] sm:$0xff] }
 0x225   : > { %9561 = vst [vmem:[#allocation117_spill] sm:$0xff] %v7277_v59  ;;  %v3760_v22 = vpop.eup %3759  ;;  %v2352_v40 = vmul.f32 0.6931472, %v3758_v57  ;;  %v7286_v34 = vsub.f32 %v2348_v60, %v6973_v2  ;;  %v2884_v5 = vrot.slane %v2856_v11, %v6993_v32  ;;  %v2885_v44 = vcombine.low %v2863_v54, %v2870_v1  ;;  %v9570_v1 = vld [vmem:[#allocation124_spill] sm:$0xff] }
 0x226   : > { %9562 = vst [vmem:[#allocation118_spill] sm:$0xff] %v7282_v45  ;;  %v2354_v24 = vmul.f32 0.6931472, %v3760_v22  ;;  %v7290_v42 = vsub.f32 %v2350_v20, %v6989_v55  ;;  %v2902_v56 = vcombine.low %v7265_v8, %v7271_v27  ;;  %v2903_v7 = vcombine.low %v7277_v59, %v7282_v45  ;;  %2956 = vst [vmem:[%s7241_s23 + $0x8] sm:$0xff] %v2852_v47  ;;  %v1900_v55 = vpop.permute.xlu0 %1899  ;;  %v9576_v47 = vld [vmem:[#allocation179_spill] sm:$0xff] }
 0x227   : > { %9563 = vst [vmem:[#allocation55_spill] sm:$0xff] %v7286_v34  ;;  %v7298_v63 = vsub.f32 %v2352_v40, %v7027_v48  ;;  %v2886_v33 = vcombine.low %v2877_v49, %v2884_v5  ;;  %v2893_v2 = vrot.slane %v2885_v44, %v6993_v32  ;;  %vm9567_vm9 = vcmp.eq.s32.totalorder %v9428_v51, %v9566_v38  ;;  %v9579_v44 = vld [vmem:[#allocation180_spill] sm:$0xff] }
 0x228   : > { %9564 = vst [vmem:[#allocation15_spill] sm:$0xff] %v7290_v42  ;;  %v7305_v26 = vsel %vm9567_vm9, %v6959_v36, 0.0  ;;  %v7308_v11 = vsub.f32 %v2354_v24, %v7055_v21  ;;  %v2904_v28 = vcombine.low %v7286_v34, %v7290_v42  ;;  %v2912_v60 = vrot.slane %v2902_v56, %v6993_v32  ;;  %v9573_v21 = vld [vmem:[#allocation125_spill] sm:$0xff] }
 0x229   : > { %9565 = vst [vmem:[#allocation56_spill] sm:$0xff] %v7298_v63  ;;  %9568 = vst [vmem:[#allocation16_spill] sm:$0xff] %v7305_v26  ;;  %v2919_v48 = vrot.slane %v2903_v7, %v6993_v32  ;;  %v2900_v54 = vrot.slane %v2886_v33, %v6993_v32  ;;  %vm9571_vm1 = vcmp.eq.s32.totalorder %v9428_v51, %v9570_v1  ;;  %v9582_v7 = vld [vmem:[#allocation181_spill] sm:$0xff]  ;;  %v7446_v35 = vsel %vm1460_vm5, %v1900_v55, 0.0 }
 0x22a   : > { %9569 = vst [vmem:[#allocation61_spill] sm:$0xff] %v7308_v11  ;;  %v7319_v57 = vsel %vm9571_vm1, %v6959_v36, 0.0  ;;  %vm9574_vm2 = vcmp.eq.s32.totalorder %v9428_v51, %v9573_v21  ;;  %vm9577_vm6 = vcmp.eq.s32.totalorder %v9428_v51, %v9576_v47  ;;  %v2905_v22 = vcombine.low %v7298_v63, %v7308_v11  ;;  %v9585_v11 = vld [vmem:[#allocation126_spill] sm:$0xff] }
 0x22b   : > { %9572 = vst [vmem:[#allocation17_spill] sm:$0xff] %v7319_v57  ;;  %v7325_v20 = vsel %vm9574_vm2, %v6959_v36, 0.0  ;;  %v7331_v49 = vsel %vm9577_vm6, %v6959_v36, 0.0  ;;  %v2926_v40 = vrot.slane %v2904_v28, %v6993_v32  ;;  %v2934_v5 = vcombine.low %v2912_v60, %v2919_v48  ;;  %v9588_v60 = vld [vmem:[#allocation160_spill] sm:$0xff] }
 0x22c   : > { %9575 = vst [vmem:[#allocation62_spill] sm:$0xff] %v7325_v20  ;;  %9578 = vst [vmem:[#allocation18_spill] sm:$0xff] %v7331_v49  ;;  %vm9580_vm14 = vcmp.eq.s32.totalorder %v9428_v51, %v9579_v44  ;;  %v2901_v56 = vcombine.low %v2893_v2, %v2900_v54  ;;  %vm9583_vm9 = vcmp.eq.s32.totalorder %v9428_v51, %v9582_v7 }
 0x22d   : > { %v7340_v24 = vsel %vm9580_vm14, %v6959_v36, 0.0  ;;  %v7346_v33 = vsel %vm9583_vm9, %v6959_v36, 0.0  ;;  %vm9586_vm1 = vcmp.eq.s32.totalorder %v9428_v51, %v9585_v11  ;;  %vm9589_vm2 = vcmp.eq.s32.totalorder %v9588_v60, %v9429_v0 }
 0x22e   : > { %9581 = vst [vmem:[#allocation63_spill] sm:$0xff] %v7340_v24  ;;  %9584 = vst [vmem:[#allocation23_spill] sm:$0xff] %v7346_v33  ;;  %v7352_v28 = vsel %vm9586_vm1, %v6959_v36, 0.0  ;;  %v7357_v48 = vsel %vm9589_vm2, %v1900_v55, 0.0  ;;  %v2933_v2 = vrot.slane %v2905_v22, %v6993_v32  ;;  %v2942_v54 = vrot.slane %v2934_v5, %v6993_v32  ;;  %v9616_v33 = vld [vmem:[#allocation122_spill] sm:$0xff] }
 0x22f   : > { %9587 = vst [vmem:[#allocation64_spill] sm:$0xff] %v7352_v28  ;;  %vm9590_vm6 = vcmp.eq.s32.totalorder %v9588_v60, %v9433_v52  ;;  %vm9591_vm14 = vcmp.eq.s32.totalorder %v9588_v60, %v9437_v16  ;;  %2957 = vst [vmem:[%s7241_s23 + $0x10] sm:$0xff] %v2901_v56  ;;  %vm9592_vm9 = vcmp.eq.s32.totalorder %v9588_v60, %v9442_v15 }
 0x230   : > { %v7364_v63 = vsel %vm9590_vm6, %v1900_v55, 0.0  ;;  %v7369_v36 = vsel %vm9591_vm14, %v1900_v55, 0.0  ;;  %v7375_v51 = vsel %vm9592_vm9, %v1900_v55, 0.0  ;;  %vm9593_vm1 = vcmp.eq.s32.totalorder %v9588_v60, %v9446_v6 }
 0x231   : > { %v7380_v22 = vsel %vm9593_vm1, %v1900_v55, 0.0  ;;  %vm9594_vm2 = vcmp.eq.s32.totalorder %v9588_v60, %v9450_v53  ;;  %vm9595_vm6 = vcmp.eq.s32.totalorder %v9588_v60, %v9453_v31  ;;  %v2935_v56 = vcombine.low %v2926_v40, %v2933_v2 }
 0x232   : > { %v7385_v5 = vsel %vm9594_vm2, %v1900_v55, 0.0  ;;  %v7390_v42 = vsel %vm9595_vm6, %v1900_v55, 0.0  ;;  %vm9596_vm14 = vcmp.eq.s32.totalorder %v9588_v60, %v9456_v50  ;;  %vm9597_vm9 = vcmp.eq.s32.totalorder %v9588_v60, %v9460_v41 }
 0x233   : > { %v7396_v34 = vsel %vm9596_vm14, %v1900_v55, 0.0  ;;  %v7401_v45 = vsel %vm9597_vm9, %v1900_v55, 0.0  ;;  %vm9598_vm1 = vcmp.eq.s32.totalorder %v9588_v60, %v9464_v19  ;;  %vm9599_vm2 = vcmp.eq.s32.totalorder %v9588_v60, %v9467_v30 }
 0x234   : > { %v7406_v59 = vsel %vm9598_vm1, %v1900_v55, 0.0  ;;  %v7415_v40 = vsel %vm9599_vm2, %v1900_v55, 0.0  ;;  %vm9600_vm6 = vcmp.eq.s32.totalorder %v9588_v60, %v9470_v25  ;;  %vm9601_vm14 = vcmp.eq.s32.totalorder %v9588_v60, %v9474_v62 }
 0x235   : > { %v7420_v2 = vsel %vm9600_vm6, %v1900_v55, 0.0  ;;  %v7425_v27 = vsel %vm9601_vm14, %v1900_v55, 0.0  ;;  %vm9602_vm9 = vcmp.eq.s32.totalorder %v9588_v60, %v9478_v9  ;;  %v2949_v18 = vrot.slane %v2935_v56, %v6993_v32  ;;  %v9608_v32 = vld [vmem:[#allocation120_spill] sm:$0xff] }
 0x236   : > { %v7430_v8 = vsel %vm9602_vm9, %v1900_v55, 0.0  ;;  %vm9603_vm1 = vcmp.eq.s32.totalorder %v9588_v60, %v9481_v17  ;;  %vm9605_vm2 = vcmp.eq.s32.totalorder %v9588_v60, %v9604_v14  ;;  %v7451_v56 = vsel %vm1461_vm4, %v1900_v55, 0.0 }
 0x237   : > { %v7436_v43 = vsel %vm9603_vm1, %v1900_v55, 0.0  ;;  %v7441_v61 = vsel %vm9605_vm2, %v1900_v55, 0.0  ;;  %vm9609_vm6 = vcmp.eq.s32.totalorder %v9588_v60, %v9608_v32  ;;  %vm9611_vm14 = vcmp.eq.s32.totalorder %v9588_v60, %v9610_v37 }
 0x238   : > { %v7456_v39 = vsel %vm9609_vm6, %v1900_v55, 0.0  ;;  %v7461_v29 = vsel %vm9611_vm14, %v1900_v55, 0.0  ;;  %vm9613_vm5 = vcmp.eq.s32.totalorder %v9588_v60, %v9612_v13  ;;  %v2950_v3 = vcombine.low %v2942_v54, %v2949_v18  ;;  %v9618_v18 = vld [vmem:[#allocation178_spill] sm:$0xff] }
 0x239   : > { %v7466_v23 = vsel %vm9613_vm5, %v1900_v55, 0.0  ;;  %vm9615_vm4 = vcmp.eq.s32.totalorder %v9588_v60, %v9614_v10  ;;  %vm9617_vm9 = vcmp.eq.s32.totalorder %v9588_v60, %v9616_v33  ;;  %vm9619_vm1 = vcmp.eq.s32.totalorder %v9588_v60, %v9618_v18 }
 0x23a   : > { %v7481_v28 = vsel %vm9615_vm4, %v1900_v55, 0.0  ;;  %v7486_v24 = vsel %vm9617_vm9, %v1900_v55, 0.0  ;;  %v7491_v54 = vsel %vm9619_vm1, %v1900_v55, 0.0  ;;  %vm9620_vm2 = vcmp.eq.s32.totalorder %v9588_v60, %v9527_v12  ;;  %2958 = vst [vmem:[%s7241_s23 + $0x18] sm:$0xff] %v2950_v3 }
 0x23b   : > { %v7496_v49 = vsel %vm9620_vm2, %v1900_v55, 0.0  ;;  %vm9622_vm6 = vcmp.eq.s32.totalorder %v9588_v60, %v9566_v38  ;;  %vm9624_vm14 = vcmp.eq.s32.totalorder %v9588_v60, %v9570_v1  ;;  %vm9626_vm5 = vcmp.eq.s32.totalorder %v9588_v60, %v9573_v21 }
 0x23c   : > { %9621 = vst [vmem:[#allocation24_spill] sm:$0xff] %v7496_v49  ;;  %v7501_v20 = vsel %vm9622_vm6, %v1900_v55, 0.0  ;;  %v7506_v57 = vsel %vm9624_vm14, %v1900_v55, 0.0  ;;  %v7511_v26 = vsel %vm9626_vm5, %v1900_v55, 0.0  ;;  %vm9628_vm4 = vcmp.eq.s32.totalorder %v9588_v60, %v9576_v47 }
 0x23d   : > { %9623 = vst [vmem:[#allocation68_spill] sm:$0xff] %v7501_v20  ;;  %9625 = vst [vmem:[#allocation25_spill] sm:$0xff] %v7506_v57  ;;  %v7517_v49 = vsel %vm9628_vm4, %v1900_v55, 0.0  ;;  %vm9630_vm9 = vcmp.eq.s32.totalorder %v9588_v60, %v9579_v44  ;;  %vm9632_vm1 = vcmp.eq.s32.totalorder %v9588_v60, %v9582_v7  ;;  %vm9634_vm2 = vcmp.eq.s32.totalorder %v9588_v60, %v9585_v11 }
 0x23e   : > { %9627 = vst [vmem:[#allocation69_spill] sm:$0xff] %v7511_v26  ;;  %9629 = vst [vmem:[#allocation26_spill] sm:$0xff] %v7517_v49  ;;  %v7522_v20 = vsel %vm9630_vm9, %v1900_v55, 0.0  ;;  %v7527_v57 = vsel %vm9632_vm1, %v1900_v55, 0.0  ;;  %v7532_v26 = vsel %vm9634_vm2, %v1900_v55, 0.0 }
 0x23f   : > { %9631 = vst [vmem:[#allocation73_spill] sm:$0xff] %v7522_v20  ;;  %9633 = vst [vmem:[#allocation31_spill] sm:$0xff] %v7527_v57 }
 0x240   : > { %9635 = vst [vmem:[#allocation74_spill] sm:$0xff] %v7532_v26 }
 0x241   : > { %3898 = shalt.err (!%p3895_p11)
}
 0x242   : > { %s3899_s22 = scalar_lea.hbm %s7474_s16, 512  ;;  %s3903_s9 = scalar_lea.hbm %s8211_s4, 1024 }
 0x243   : > { %p3900_p0 = scmp.ne.s32.totalorder %s7474_s16, %s3899_s22  ;;  %p3904_p3 = scmp.lt.u32.totalorder %s7474_s16, %s8211_s4 }
 0x244   : > { %p3905_p10 = scmp.lt.u32.totalorder %s3903_s9, %s3899_s22  ;;  %p3907_p13 = scmp.lt.u32.totalorder %s3899_s22, %s7474_s16 }
 0x245   : > { %p3901_p4 = pnand %p3900_p0, %p9636_p2 }
 0x246   : > { %p3906_p6 = por %p3905_p10, %p3904_p3 }
 0x247   : > { %p3902_p1 = pneg %p3901_p4 }
 0x248   : > { %p3908_p12 = por %p3907_p13, %p3906_p6 }
 0x24a   : > { %p3909_p5 = pnand %p3908_p12, %p3902_p1 }
 0x24c   : > { %3912 = shalt.err (!%p3909_p5)
}
 0x24d   : > { %3442 = dma.vmem_to_hbm [thread:$0]  (%p9636_p2), %s7476_s10, 512, %s7474_s16, %s7536_s12   ;;  %v9637_v3 = vld [vmem:[#allocation161_spill] sm:$0xff]  ;;  %v7694_v13 = vsel %vm1500_vm8, %v7468_v58, 0.0  ;;  %v7700_v10 = vsel %vm1501_vm10, %v7468_v58, 0.0  ;;  %v7718_v12 = vsel %vm1504_vm0, %v7468_v58, 0.0  ;;  %v7724_v38 = vsel %vm1505_vm13, %v7468_v58, 0.0 }
 0x24e   : > { %vm9638_vm6 = vcmp.eq.s32.totalorder %v9637_v3, %v9429_v0  ;;  %vm9639_vm14 = vcmp.eq.s32.totalorder %v9637_v3, %v9433_v52  ;;  %vm9640_vm5 = vcmp.eq.s32.totalorder %v9637_v3, %v9437_v16  ;;  %vm9641_vm4 = vcmp.eq.s32.totalorder %v9637_v3, %v9442_v15  ;;  %9660 = vst [vmem:[#allocation78_spill] sm:$0xff] %v7694_v13  ;;  %v9670_v47 = vld [vmem:[#allocation37_spill] sm:$0xff]  ;;  %v9672_v44 = vld [vmem:[#allocation38_spill] sm:$0xff]  ;;  %s8065_s10 = scalar_lea.vmem [#allocation7], %s4206_s0  ;;  %s8095_s14 = scalar_lea.vmem [#allocation10], %s4206_s0 }
 0x24f   : > { %v1971_v55 = vsel %vm9638_vm6, %v7468_v58, 0.0  ;;  %v1972_v60 = vsel %vm9639_vm14, %v7468_v58, 0.0  ;;  %v1973_v26 = vsel %vm9640_vm5, %v7468_v58, 0.0  ;;  %v1974_v57 = vsel %vm9641_vm4, %v7468_v58, 0.0  ;;  %9661 = vst [vmem:[#allocation33_spill] sm:$0xff] %v7700_v10  ;;  %9666 = vst [vmem:[#allocation20_spill] sm:$0xff] %v7718_v12  ;;  %s8117_s8 = scalar_lea.hbm %s8212_s5, %s7409_s7 }
 0x250   : > { %vm9642_vm9 = vcmp.eq.s32.totalorder %v9637_v3, %v9446_v6  ;;  %vm9643_vm1 = vcmp.eq.s32.totalorder %v9637_v3, %v9450_v53  ;;  %vm9644_vm2 = vcmp.eq.s32.totalorder %v9637_v3, %v9453_v31  ;;  %vm9645_vm6 = vcmp.eq.s32.totalorder %v9637_v3, %v9456_v50  ;;  %9667 = vst [vmem:[#allocation39_spill] sm:$0xff] %v7724_v38  ;;  %s3252_s0 = sshll.u32 %s8095_s14, 4  ;;  %s4025_s11 = smov [#allocation10]   ;;  %s8119_s0 = int_to_ptr.vmem [resolvable:$true] %s3252_s0 }
 0x251   : > { %v1975_v0 = vsel %vm9642_vm9, %v7468_v58, 0.0  ;;  %v1976_v52 = vsel %vm9643_vm1, %v7468_v58, 0.0  ;;  %v1977_v16 = vsel %vm9644_vm2, %v7468_v58, 0.0  ;;  %v7592_v15 = vsel %vm9645_vm6, %v7468_v58, 0.0  ;;  %s3913_s17 = scalar_lea.vmem %s8119_s0, 512  ;;  %s3917_s25 = sshll.u32 %s4025_s11, 4  ;;  %s3918_s25 = int_to_ptr.vmem [resolvable:$false] %s3917_s25 }
 0x252   : > { %vm9646_vm14 = vcmp.eq.s32.totalorder %v9637_v3, %v9460_v41  ;;  %vm9647_vm5 = vcmp.eq.s32.totalorder %v9637_v3, %v9464_v19  ;;  %vm9648_vm4 = vcmp.eq.s32.totalorder %v9637_v3, %v9467_v30  ;;  %vm9649_vm9 = vcmp.eq.s32.totalorder %v9637_v3, %v9470_v25  ;;  %p3914_p7 = scmp.ne.s32.totalorder %s8119_s0, %s3913_s17  ;;  %s3919_s22 = scalar_lea.vmem %s3918_s25, 1024 }
 0x253   : > { %v7598_v6 = vsel %vm9646_vm14, %v7468_v58, 0.0  ;;  %v7604_v53 = vsel %vm9647_vm5, %v7468_v58, 0.0  ;;  %v7610_v31 = vsel %vm9648_vm4, %v7468_v58, 0.0  ;;  %v7616_v50 = vsel %vm9649_vm9, %v7468_v58, 0.0  ;;  %p3920_p11 = scmp.lt.s32.totalorder %s8119_s0, %s3918_s25  ;;  %p3921_p0 = scmp.lt.s32.totalorder %s3919_s22, %s3913_s17 }
 0x254   : > { %vm9650_vm1 = vcmp.eq.s32.totalorder %v9637_v3, %v9474_v62  ;;  %vm9651_vm2 = vcmp.eq.s32.totalorder %v9637_v3, %v9478_v9  ;;  %vm9652_vm6 = vcmp.eq.s32.totalorder %v9637_v3, %v9481_v17  ;;  %vm9653_vm14 = vcmp.eq.s32.totalorder %v9637_v3, %v9604_v14  ;;  %p3915_p8 = pnand %p3914_p7, %p9636_p2 }
 0x255   : > { %v7622_v41 = vsel %vm9650_vm1, %v7468_v58, 0.0  ;;  %v7628_v19 = vsel %vm9651_vm2, %v7468_v58, 0.0  ;;  %v7634_v30 = vsel %vm9652_vm6, %v7468_v58, 0.0  ;;  %v7640_v25 = vsel %vm9653_vm14, %v7468_v58, 0.0  ;;  %p3922_p4 = por %p3921_p0, %p3920_p11 }
 0x256   : > { %vm9654_vm5 = vcmp.eq.s32.totalorder %v9637_v3, %v9606_v46  ;;  %vm9655_vm4 = vcmp.eq.s32.totalorder %v9637_v3, %v9607_v4  ;;  %vm9656_vm9 = vcmp.eq.s32.totalorder %v9637_v3, %v9608_v32  ;;  %vm9657_vm1 = vcmp.eq.s32.totalorder %v9637_v3, %v9610_v37  ;;  %p3916_p9 = pneg %p3915_p8 }
 0x257   : > { %v7646_v62 = vsel %vm9654_vm5, %v7468_v58, 0.0  ;;  %v7652_v9 = vsel %vm9655_vm4, %v7468_v58, 0.0  ;;  %v7658_v17 = vsel %vm9656_vm9, %v7468_v58, 0.0  ;;  %v7664_v14 = vsel %vm9657_vm1, %v7468_v58, 0.0 }
 0x258   : > { %v7670_v46 = vsel %vm1496_vm11, %v7468_v58, 0.0  ;;  %v7676_v4 = vsel %vm1497_vm12, %v7468_v58, 0.0  ;;  %v7682_v32 = vsel %vm1498_vm7, %v7468_v58, 0.0  ;;  %vm9658_vm2 = vcmp.eq.s32.totalorder %v9637_v3, %v9618_v18  ;;  %p3923_p1 = pnand %p3922_p4, %p3916_p9 }
 0x259   : > { %v7688_v37 = vsel %vm9658_vm2, %v7468_v58, 0.0  ;;  %vm9662_vm12 = vcmp.eq.s32.totalorder %v9637_v3, %v9570_v1  ;;  %vm9664_vm11 = vcmp.eq.s32.totalorder %v9637_v3, %v9573_v21  ;;  %v7730_v1 = vsel %vm1506_vm15, %v7468_v58, 0.0 }
 0x25a   : > { %9659 = vst [vmem:[#allocation32_spill] sm:$0xff] %v7688_v37  ;;  %v7706_v33 = vsel %vm9662_vm12, %v7468_v58, 0.0  ;;  %v7712_v18 = vsel %vm9664_vm11, %v7468_v58, 0.0  ;;  %9668 = vst [vmem:[#allocation21_spill] sm:$0xff] %v7730_v1  ;;  %v7736_v21 = vsel %vm1507_vm3, %v7468_v58, 0.0  ;;  %v2003_v20 = vadd.f32 %v7357_v48, %v9670_v47  ;;  %v9678_v48 = vld [vmem:[#allocation46_spill] sm:$0xff] }
 0x25b   : > { %9663 = vst [vmem:[#allocation19_spill] sm:$0xff] %v7706_v33  ;;  %9665 = vst [vmem:[#allocation34_spill] sm:$0xff] %v7712_v18  ;;  %vm9671_vm0 = vcmask 1042432   ;;  %v2012_v38 = vadd.f32 %v7364_v63, %v9672_v44  ;;  %v9674_v18 = vld [vmem:[#allocation43_spill] sm:$0xff]  ;;  %v9676_v33 = vld [vmem:[#allocation45_spill] sm:$0xff] }
 0x25c   : > { %9669 = vst [vmem:[#allocation40_spill] sm:$0xff] %v7736_v21  ;;  %v2004_v12 = vsel %vm9671_vm0, %v1971_v55, 0.0  ;;  %vm9673_vm13 = vmmov %vm9671_vm0  ;;  %v2021_v7 = vadd.f32 %v7369_v36, %v9674_v18  ;;  %v2030_v11 = vadd.f32 %v7375_v51, %v9676_v33  ;;  %v2039_v55 = vadd.f32 %v7380_v22, %v9678_v48  ;;  %v9682_v51 = vld [vmem:[#allocation51_spill] sm:$0xff] }
 0x25d   : > { %v2013_v49 = vsel %vm9673_vm13, %v1972_v60, 0.0  ;;  %vm9675_vm15 = vmmov %vm9671_vm0  ;;  %v2005_v3 = vadd.f32 %v2004_v12, %v2003_v20  ;;  %v9680_v60 = vld [vmem:[#allocation50_spill] sm:$0xff] }
 0x25e   : > { %v2022_v1 = vsel %vm9675_vm15, %v1973_v26, 0.0  ;;  %vm9677_vm3 = vmmov %vm9671_vm0  ;;  %v2014_v21 = vadd.f32 %v2013_v49, %v2012_v38  ;;  %v2048_v10 = vadd.f32 %v7385_v5, %v9680_v60 }
 0x25f   : > { %v2031_v58 = vsel %vm9677_vm3, %v1974_v57, 0.0  ;;  %vm9679_vm7 = vmmov %vm9671_vm0  ;;  %v2023_v63 = vadd.f32 %v2022_v1, %v2021_v7  ;;  %v2006_v26 = vrot.slane %v2005_v3, 4  ;;  %v2057_v57 = vadd.f32 %v7390_v42, %v9682_v51 }
 0x260   : > { %v2040_v47 = vsel %vm9679_vm7, %v1975_v0, 0.0  ;;  %v2032_v44 = vadd.f32 %v2031_v58, %v2030_v11  ;;  %vm9681_vm8 = vmmov %vm9671_vm0  ;;  %v2015_v18 = vrot.slane %v2014_v21, 4  ;;  %v9684_v58 = vld [vmem:[#allocation52_spill] sm:$0xff] }
 0x261   : > { %v2049_v36 = vsel %vm9681_vm8, %v1976_v52, 0.0  ;;  %v2041_v13 = vadd.f32 %v2040_v47, %v2039_v55  ;;  %v2024_v20 = vrot.slane %v2023_v63, 4  ;;  %vm9683_vm10 = vmmov %vm9671_vm0  ;;  %v2007_v12 = vadd.f32 %v2006_v26, %v2005_v3 }
 0x262   : > { %v2033_v49 = vrot.slane %v2032_v44, 4  ;;  %v2050_v33 = vadd.f32 %v2049_v36, %v2048_v10  ;;  %v2058_v22 = vsel %vm9683_vm10, %v1977_v16, 0.0  ;;  %v2016_v0 = vadd.f32 %v2015_v18, %v2014_v21  ;;  %vm9685_vm6 = vmmov %vm9671_vm0 }
 0x263   : > { %v2042_v38 = vrot.slane %v2041_v13, 4  ;;  %v2059_v1 = vadd.f32 %v2058_v22, %v2057_v57  ;;  %v2025_v7 = vadd.f32 %v2024_v20, %v2023_v63  ;;  %v2066_v52 = vadd.f32 %v7396_v34, %v9684_v58  ;;  %vm9687_vm14 = vmmov %vm9671_vm0 }
 0x264   : > { %v2034_v11 = vadd.f32 %v2033_v49, %v2032_v44  ;;  %v2051_v5 = vrot.slane %v2050_v33, 4  ;;  %v2008_v48 = vrot.slane %v2007_v12, 2  ;;  %v2017_v55 = vrot.slane %v2016_v0, 2  ;;  %vm9689_vm5 = vmmov %vm9671_vm0 }
 0x265   : > { %v2043_v47 = vadd.f32 %v2042_v38, %v2041_v13  ;;  %v2060_v60 = vrot.slane %v2059_v1, 4  ;;  %v2026_v42 = vrot.slane %v2025_v7, 2  ;;  %v2067_v16 = vsel %vm9685_vm6, %v7592_v15, 0.0  ;;  %vm9691_vm4 = vmmov %vm9671_vm0 }
 0x266   : > { %v2035_v51 = vrot.slane %v2034_v11, 2  ;;  %v2052_v37 = vadd.f32 %v2051_v5, %v2050_v33  ;;  %v2009_v10 = vadd.f32 %v2008_v48, %v2007_v12  ;;  %v2018_v21 = vadd.f32 %v2017_v55, %v2016_v0  ;;  %v9686_v55 = vld [vmem:[#allocation57_spill] sm:$0xff]  ;;  %vm9693_vm9 = vmmov %vm9671_vm0 }
 0x267   : > { %v2044_v3 = vrot.slane %v2043_v47, 2  ;;  %v2061_v36 = vadd.f32 %v2060_v60, %v2059_v1  ;;  %v2027_v63 = vadd.f32 %v2026_v42, %v2025_v7  ;;  %v2068_v18 = vadd.f32 %v2067_v16, %v2066_v52  ;;  %vm9695_vm1 = vmmov %vm9671_vm0 }
 0x268   : > { %v2036_v44 = vadd.f32 %v2035_v51, %v2034_v11  ;;  %v2053_v26 = vrot.slane %v2052_v37, 2  ;;  %v2010_v57 = vrot.slane %v2009_v10, 1  ;;  %v2019_v34 = vrot.slane %v2018_v21, 1  ;;  %v9688_v51 = vld [vmem:[#allocation58_spill] sm:$0xff]  ;;  %vm9697_vm2 = vmmov %vm9671_vm0 }
 0x269   : > { %v2045_v20 = vadd.f32 %v2044_v3, %v2043_v47  ;;  %v2062_v49 = vrot.slane %v2061_v36, 2  ;;  %v2028_v13 = vrot.slane %v2027_v63, 1  ;;  %v2069_v58 = vrot.slane %v2068_v18, 4  ;;  %vm9699_vm12 = vmmov %vm9671_vm0 }
 0x26a   : > { %v2037_v22 = vrot.slane %v2036_v44, 1  ;;  %v2054_v38 = vadd.f32 %v2053_v26, %v2052_v37  ;;  %v7763_v33 = vadd.f32 %v2010_v57, %v2009_v10  ;;  %v7765_v5 = vadd.f32 %v2019_v34, %v2018_v21  ;;  %v9692_v26 = vld [vmem:[#allocation60_spill] sm:$0xff]  ;;  %vm9701_vm11 = vmmov %vm9671_vm0 }
 0x26b   : > { %v2046_v15 = vrot.slane %v2045_v20, 1  ;;  %v2063_v12 = vadd.f32 %v2062_v49, %v2061_v36  ;;  %v7767_v0 = vadd.f32 %v2028_v13, %v2027_v63  ;;  %v2070_v11 = vadd.f32 %v2069_v58, %v2068_v18  ;;  %v9690_v36 = vld [vmem:[#allocation59_spill] sm:$0xff]  ;;  %vm9704_vm13 = vmmov %vm9671_vm0 }
 0x26c   : > { %v7769_v1 = vadd.f32 %v2037_v22, %v2036_v44  ;;  %v2055_v7 = vrot.slane %v2054_v38, 1  ;;  %v2075_v47 = vadd.f32 %v7401_v45, %v9686_v55  ;;  %v2076_v37 = vsel %vm9687_vm14, %v7598_v6, 0.0  ;;  %vm9706_vm15 = vmmov %vm9671_vm0 }
 0x26d   : > { %v7771_v52 = vadd.f32 %v2046_v15, %v2045_v20  ;;  %v2064_v48 = vrot.slane %v2063_v12, 1  ;;  %v2071_v42 = vrot.slane %v2070_v11, 2  ;;  %v2084_v16 = vadd.f32 %v7406_v59, %v9688_v51  ;;  %vm9708_vm3 = vmmov %vm9671_vm0 }
 0x26e   : > { %v7777_v60 = vadd.f32 %v2055_v7, %v2054_v38  ;;  %v2085_v10 = vsel %vm9689_vm5, %v7604_v53, 0.0  ;;  %v2077_v3 = vadd.f32 %v2076_v37, %v2075_v47  ;;  %v2093_v63 = vadd.f32 %v7415_v40, %v9690_v36  ;;  %v9694_v53 = vld [vmem:[#allocation65_spill] sm:$0xff]  ;;  %v9698_v47 = vld [vmem:[#allocation70_spill] sm:$0xff]  ;;  %vm9710_vm7 = vmmov %vm9671_vm0 }
 0x26f   : > { %v7783_v21 = vadd.f32 %v2064_v48, %v2063_v12  ;;  %v2094_v45 = vsel %vm9691_vm4, %v7610_v31, 0.0  ;;  %v2072_v44 = vadd.f32 %v2071_v42, %v2070_v11  ;;  %v2086_v6 = vadd.f32 %v2085_v10, %v2084_v16  ;;  %v9696_v31 = vld [vmem:[#allocation66_spill] sm:$0xff]  ;;  %vm9712_vm8 = vmmov %vm9671_vm0 }
 0x270   : > { %v2102_v18 = vadd.f32 %v7420_v2, %v9692_v26  ;;  %v2103_v59 = vsel %vm9693_vm9, %v7616_v50, 0.0  ;;  %v2078_v57 = vrot.slane %v2077_v3, 4  ;;  %v2095_v34 = vadd.f32 %v2094_v45, %v2093_v63  ;;  %vm9714_vm10 = vmmov %vm9671_vm0 }
 0x271   : > { %v2111_v20 = vadd.f32 %v7425_v27, %v9694_v53  ;;  %v2112_v49 = vsel %vm9695_vm1, %v7622_v41, 0.0  ;;  %v2073_v40 = vrot.slane %v2072_v44, 1  ;;  %v2087_v13 = vrot.slane %v2086_v6, 4  ;;  %vm9717_vm6 = vmmov %vm9671_vm0 }
 0x272   : > { %v2104_v22 = vadd.f32 %v2103_v59, %v2102_v18  ;;  %v2120_v38 = vadd.f32 %v7430_v8, %v9696_v31  ;;  %v2079_v58 = vadd.f32 %v2078_v57, %v2077_v3  ;;  %v2096_v15 = vrot.slane %v2095_v34, 4  ;;  %vm9722_vm14 = vmmov %vm9671_vm0 }
 0x273   : > { %v2113_v2 = vadd.f32 %v2112_v49, %v2111_v20  ;;  %v2121_v50 = vsel %vm9697_vm2, %v7628_v19, 0.0  ;;  %v7801_v12 = vadd.f32 %v2073_v40, %v2072_v44  ;;  %v2088_v7 = vadd.f32 %v2087_v13, %v2086_v6  ;;  %v9700_v6 = vld [vmem:[#allocation71_spill] sm:$0xff]  ;;  %vm9728_vm5 = vmmov %vm9671_vm0 }
 0x274   : > { %v2105_v11 = vrot.slane %v2104_v22, 4  ;;  %v2122_v27 = vadd.f32 %v2121_v50, %v2120_v38  ;;  %v2080_v48 = vrot.slane %v2079_v58, 2  ;;  %v2097_v55 = vadd.f32 %v2096_v15, %v2095_v34  ;;  %vm9733_vm4 = vmmov %vm9671_vm0 }
 0x275   : > { %v2114_v41 = vrot.slane %v2113_v2, 4  ;;  %v2129_v37 = vadd.f32 %v7436_v43, %v9698_v47  ;;  %v2089_v42 = vrot.slane %v2088_v7, 2  ;;  %v2130_v16 = vsel %vm9699_vm12, %v7634_v30, 0.0  ;;  %vm9737_vm9 = vmmov %vm9671_vm0 }
 0x276   : > { %v2106_v51 = vadd.f32 %v2105_v11, %v2104_v22  ;;  %v2123_v8 = vrot.slane %v2122_v27, 4  ;;  %v2081_v10 = vadd.f32 %v2080_v48, %v2079_v58  ;;  %v2098_v3 = vrot.slane %v2097_v55, 2  ;;  %vm9741_vm1 = vmmov %vm9671_vm0 }
 0x277   : > { %v2115_v19 = vadd.f32 %v2114_v41, %v2113_v2  ;;  %v2131_v36 = vadd.f32 %v2130_v16, %v2129_v37  ;;  %v2090_v63 = vadd.f32 %v2089_v42, %v2088_v7  ;;  %v2138_v26 = vadd.f32 %v7441_v61, %v9700_v6  ;;  %v9702_v7 = vld [vmem:[#allocation75_spill] sm:$0xff]  ;;  %v9703_v42 = vld [vmem:[#allocation76_spill] sm:$0xff]  ;;  %vm9747_vm2 = vmmov %vm9671_vm0 }
 0x278   : > { %v2107_v45 = vrot.slane %v2106_v51, 2  ;;  %v2124_v44 = vadd.f32 %v2123_v8, %v2122_v27  ;;  %v2082_v18 = vrot.slane %v2081_v10, 1  ;;  %v2099_v59 = vadd.f32 %v2098_v3, %v2097_v55  ;;  %v9707_v6 = vld [vmem:[#allocation79_spill] sm:$0xff]  ;;  %vm9751_vm12 = vmmov %vm9671_vm0 }
 0x279   : > { %v2116_v57 = vrot.slane %v2115_v19, 2  ;;  %v2132_v43 = vrot.slane %v2131_v36, 4  ;;  %v2091_v34 = vrot.slane %v2090_v63, 1  ;;  %v2139_v30 = vsel %vm9701_vm11, %v7640_v25, 0.0  ;;  %vm9757_vm11 = vmmov %vm9671_vm0 }
 0x27a   : > { %v2108_v53 = vadd.f32 %v2107_v45, %v2106_v51  ;;  %v2125_v20 = vrot.slane %v2124_v44, 2  ;;  %v7811_v49 = vadd.f32 %v2082_v18, %v2081_v10  ;;  %v2100_v40 = vrot.slane %v2099_v59, 1  ;;  %v9705_v10 = vld [vmem:[#allocation77_spill] sm:$0xff] }
 0x27b   : > { %v2117_v13 = vadd.f32 %v2116_v57, %v2115_v19  ;;  %v2133_v22 = vadd.f32 %v2132_v43, %v2131_v36  ;;  %v7813_v31 = vadd.f32 %v2091_v34, %v2090_v63  ;;  %v2140_v61 = vadd.f32 %v2139_v30, %v2138_v26  ;;  %v9709_v57 = vld [vmem:[#allocation80_spill] sm:$0xff] }
 0x27c   : > { %v2109_v38 = vrot.slane %v2108_v53, 1  ;;  %v2126_v58 = vadd.f32 %v2125_v20, %v2124_v44  ;;  %v7815_v15 = vadd.f32 %v2100_v40, %v2099_v59  ;;  %v2147_v11 = vadd.f32 %v7446_v35, %v9702_v7 }
 0x27d   : > { %v2118_v2 = vrot.slane %v2117_v13, 1  ;;  %v2134_v50 = vrot.slane %v2133_v22, 2  ;;  %v2141_v48 = vrot.slane %v2140_v61, 4  ;;  %v2148_v55 = vsel %vm9671_vm0, %v7646_v62, 0.0 }
 0x27e   : > { %v7819_v27 = vadd.f32 %v2109_v38, %v2108_v53  ;;  %v2127_v25 = vrot.slane %v2126_v58, 1  ;;  %v2149_v37 = vadd.f32 %v2148_v55, %v2147_v11  ;;  %v2156_v51 = vadd.f32 %v7451_v56, %v9703_v42 }
 0x27f   : > { %v7823_v41 = vadd.f32 %v2118_v2, %v2117_v13  ;;  %v2135_v47 = vadd.f32 %v2134_v50, %v2133_v22  ;;  %v2142_v16 = vadd.f32 %v2141_v48, %v2140_v61  ;;  %v2157_v35 = vsel %vm9704_vm13, %v7652_v9, 0.0 }
 0x280   : > { %v7827_v8 = vadd.f32 %v2127_v25, %v2126_v58  ;;  %v2165_v3 = vadd.f32 %v7456_v39, %v9705_v10  ;;  %v2150_v36 = vrot.slane %v2149_v37, 4  ;;  %v2158_v63 = vadd.f32 %v2157_v35, %v2156_v51  ;;  %v9713_v25 = vld [vmem:[#allocation83_spill] sm:$0xff] }
 0x281   : > { %v2136_v19 = vrot.slane %v2135_v47, 1  ;;  %v2166_v62 = vsel %vm9706_vm15, %v7658_v17, 0.0  ;;  %v2143_v45 = vrot.slane %v2142_v16, 2  ;;  %v2174_v56 = vadd.f32 %v7461_v29, %v9707_v6  ;;  %v9711_v29 = vld [vmem:[#allocation81_spill] sm:$0xff] }
 0x282   : > { %v2167_v44 = vadd.f32 %v2166_v62, %v2165_v3  ;;  %v2175_v26 = vsel %vm9708_vm3, %v7664_v14, 0.0  ;;  %v2151_v9 = vadd.f32 %v2150_v36, %v2149_v37  ;;  %v2159_v59 = vrot.slane %v2158_v63, 4 }
 0x283   : > { %v7839_v18 = vadd.f32 %v2136_v19, %v2135_v47  ;;  %v2183_v39 = vadd.f32 %v7466_v23, %v9709_v57  ;;  %v2144_v43 = vadd.f32 %v2143_v45, %v2142_v16  ;;  %v2176_v53 = vadd.f32 %v2175_v26, %v2174_v56  ;;  %v9715_v16 = vld [vmem:[#allocation87_spill] sm:$0xff]  ;;  %v9716_v45 = vld [vmem:[#allocation32_spill] sm:$0xff]  ;;  %v9719_v57 = vld [vmem:[#allocation93_spill] sm:$0xff] }
 0x284   : > { %v2168_v34 = vrot.slane %v2167_v44, 4  ;;  %v2184_v17 = vsel %vm9710_vm7, %v7670_v46, 0.0  ;;  %v2152_v20 = vrot.slane %v2151_v9, 2  ;;  %v2160_v30 = vadd.f32 %v2159_v59, %v2158_v63 }
 0x285   : > { %v2185_v40 = vadd.f32 %v2184_v17, %v2183_v39  ;;  %v2192_v13 = vadd.f32 %v7481_v28, %v9711_v29  ;;  %v2145_v14 = vrot.slane %v2144_v43, 1  ;;  %v2177_v38 = vrot.slane %v2176_v53, 4  ;;  %v9720_v39 = vld [vmem:[#allocation24_spill] sm:$0xff] }
 0x286   : > { %v2169_v22 = vadd.f32 %v2168_v34, %v2167_v44  ;;  %v2193_v58 = vsel %vm9712_vm8, %v7676_v4, 0.0  ;;  %v2153_v61 = vadd.f32 %v2152_v20, %v2151_v9  ;;  %v2161_v23 = vrot.slane %v2160_v30, 2  ;;  %v9721_v20 = vld [vmem:[#allocation78_spill] sm:$0xff] }
 0x287   : > { %v2186_v2 = vrot.slane %v2185_v40, 4  ;;  %v2194_v50 = vadd.f32 %v2193_v58, %v2192_v13  ;;  %v7849_v7 = vadd.f32 %v2145_v14, %v2144_v43  ;;  %v2178_v46 = vadd.f32 %v2177_v38, %v2176_v53  ;;  %v9724_v14 = vld [vmem:[#allocation16_spill] sm:$0xff] }
 0x288   : > { %v2170_v11 = vrot.slane %v2169_v22, 2  ;;  %v2201_v48 = vadd.f32 %v7486_v24, %v9713_v25  ;;  %v2154_v55 = vrot.slane %v2153_v61, 1  ;;  %v2162_v47 = vadd.f32 %v2161_v23, %v2160_v30 }
 0x289   : > { %v2187_v28 = vadd.f32 %v2186_v2, %v2185_v40  ;;  %v2195_v37 = vrot.slane %v2194_v50, 4  ;;  %v2179_v51 = vrot.slane %v2178_v46, 2  ;;  %v2202_v4 = vsel %vm9714_vm10, %v7682_v32, 0.0  ;;  %v9727_v2 = vld [vmem:[#allocation33_spill] sm:$0xff] }
 0x28a   : > { %v2171_v42 = vadd.f32 %v2170_v11, %v2169_v22  ;;  %v2210_v35 = vadd.f32 %v7491_v54, %v9715_v16  ;;  %v7857_v10 = vadd.f32 %v2154_v55, %v2153_v61  ;;  %v2163_v3 = vrot.slane %v2162_v47, 1  ;;  %v9725_v22 = vld [vmem:[#allocation68_spill] sm:$0xff]  ;;  %v9730_v55 = vld [vmem:[#allocation25_spill] sm:$0xff] }
 0x28b   : > { %v2188_v19 = vrot.slane %v2187_v28, 2  ;;  %v2196_v36 = vadd.f32 %v2195_v37, %v2194_v50  ;;  %v2180_v62 = vadd.f32 %v2179_v51, %v2178_v46  ;;  %v2203_v24 = vadd.f32 %v2202_v4, %v2201_v48  ;;  %v9729_v48 = vld [vmem:[#allocation17_spill] sm:$0xff]  ;;  %v9734_v4 = vld [vmem:[#allocation62_spill] sm:$0xff] }
 0x28c   : > { %v2172_v63 = vrot.slane %v2171_v42, 1  ;;  %v2211_v44 = vsel %vm9717_vm6, %v9716_v45, 0.0  ;;  %v7861_v6 = vadd.f32 %v2163_v3, %v2162_v47  ;;  %v2219_v43 = vadd.f32 %v9720_v39, %v9719_v57  ;;  %v9735_v16 = vld [vmem:[#allocation69_spill] sm:$0xff] }
 0x28d   : > { %v2189_v56 = vadd.f32 %v2188_v19, %v2187_v28  ;;  %v2197_v26 = vrot.slane %v2196_v36, 2  ;;  %v2212_v9 = vadd.f32 %v2211_v44, %v2210_v35  ;;  %v2181_v59 = vrot.slane %v2180_v62, 1  ;;  %v9738_v44 = vld [vmem:[#allocation18_spill] sm:$0xff] }
 0x28e   : > { %v7863_v32 = vadd.f32 %v2172_v63, %v2171_v42  ;;  %v2204_v54 = vrot.slane %v2203_v24, 4  ;;  %v2220_v30 = vsel %vm9722_vm14, %v9721_v20, 0.0  ;;  %v2228_v38 = vadd.f32 %v9725_v22, %v9724_v14  ;;  %v9732_v42 = vld [vmem:[#allocation19_spill] sm:$0xff] }
 0x28f   : > { %v2190_v34 = vrot.slane %v2189_v56, 1  ;;  %v2198_v53 = vadd.f32 %v2197_v26, %v2196_v36  ;;  %v2213_v17 = vrot.slane %v2212_v9, 4  ;;  %v7869_v40 = vadd.f32 %v2181_v59, %v2180_v62  ;;  %v9742_v20 = vld [vmem:[#allocation63_spill] sm:$0xff] }
 0x290   : > { %9718 = vst [vmem:[#allocation22_spill] sm:$0xff] %v7863_v32  ;;  %v2205_v29 = vadd.f32 %v2204_v54, %v2203_v24  ;;  %v2221_v13 = vadd.f32 %v2220_v30, %v2219_v43  ;;  %v2229_v50 = vsel %vm9728_vm5, %v9727_v2, 0.0  ;;  %v2237_v47 = vadd.f32 %v9730_v55, %v9729_v48  ;;  %v9736_v24 = vld [vmem:[#allocation34_spill] sm:$0xff]  ;;  %v9743_v30 = vld [vmem:[#allocation73_spill] sm:$0xff] }
 0x291   : > { %9723 = vst [vmem:[#allocation41_spill] sm:$0xff] %v7869_v40  ;;  %v7873_v58 = vadd.f32 %v2190_v34, %v2189_v56  ;;  %v2199_v61 = vrot.slane %v2198_v53, 1  ;;  %v2214_v23 = vadd.f32 %v2213_v17, %v2212_v9  ;;  %v2230_v25 = vadd.f32 %v2229_v50, %v2228_v38  ;;  %v9739_v56 = vld [vmem:[#allocation26_spill] sm:$0xff]  ;;  %v9740_v9 = vld [vmem:[#allocation20_spill] sm:$0xff]  ;;  %v9746_v50 = vld [vmem:[#allocation39_spill] sm:$0xff] }
 0x292   : > { %v2206_v11 = vrot.slane %v2205_v29, 2  ;;  %v2222_v46 = vrot.slane %v2221_v13, 4  ;;  %v2238_v51 = vsel %vm9733_vm4, %v9732_v42, 0.0  ;;  %v2246_v35 = vadd.f32 %v9735_v16, %v9734_v4  ;;  %v9748_v42 = vld [vmem:[#allocation23_spill] sm:$0xff]  ;;  %v9750_v16 = vld [vmem:[#allocation21_spill] sm:$0xff] }
 0x293   : > { %9726 = vst [vmem:[#allocation27_spill] sm:$0xff] %v7873_v58  ;;  %v7879_v28 = vadd.f32 %v2199_v61, %v2198_v53  ;;  %v2215_v37 = vrot.slane %v2214_v23, 2  ;;  %v2231_v36 = vrot.slane %v2230_v25, 4  ;;  %v2239_v63 = vadd.f32 %v2238_v51, %v2237_v47  ;;  %v9749_v51 = vld [vmem:[#allocation31_spill] sm:$0xff]  ;;  %v9794_v58 = vld [vmem:[#allocation56_spill] sm:$0xff] }
 0x294   : > { %v2207_v3 = vadd.f32 %v2206_v11, %v2205_v29  ;;  %v2223_v19 = vadd.f32 %v2222_v46, %v2221_v13  ;;  %v2247_v45 = vsel %vm9737_vm9, %v9736_v24, 0.0  ;;  %v2255_v26 = vadd.f32 %v9739_v56, %v9738_v44  ;;  %v9753_v44 = vld [vmem:[#allocation64_spill] sm:$0xff]  ;;  %v9754_v56 = vld [vmem:[#allocation74_spill] sm:$0xff] }
 0x295   : > { %9731 = vst [vmem:[#allocation42_spill] sm:$0xff] %v7879_v28  ;;  %v2216_v62 = vadd.f32 %v2215_v37, %v2214_v23  ;;  %v2256_v59 = vsel %vm9741_vm1, %v9740_v9, 0.0  ;;  %v2232_v39 = vadd.f32 %v2231_v36, %v2230_v25  ;;  %v2240_v43 = vrot.slane %v2239_v63, 4  ;;  %v9795_v28 = vld [vmem:[#allocation61_spill] sm:$0xff] }
 0x296   : > { %v2208_v54 = vrot.slane %v2207_v3, 1  ;;  %v2224_v57 = vrot.slane %v2223_v19, 2  ;;  %v2248_v53 = vadd.f32 %v2247_v45, %v2246_v35  ;;  %v2257_v17 = vadd.f32 %v2256_v59, %v2255_v26 }
 0x297   : > { %v2217_v34 = vrot.slane %v2216_v62, 1  ;;  %v2264_v29 = vadd.f32 %v9743_v30, %v9742_v20  ;;  %v2233_v22 = vrot.slane %v2232_v39, 2  ;;  %v2241_v38 = vadd.f32 %v2240_v43, %v2239_v63 }
 0x298   : > { %v7893_v13 = vadd.f32 %v2208_v54, %v2207_v3  ;;  %v2225_v14 = vadd.f32 %v2224_v57, %v2223_v19  ;;  %v2249_v23 = vrot.slane %v2248_v53, 4  ;;  %v2258_v2 = vrot.slane %v2257_v17, 4  ;;  %v9756_v57 = vld [vmem:[#allocation40_spill] sm:$0xff] }
 0x299   : > { %v7895_v61 = vadd.f32 %v2217_v34, %v2216_v62  ;;  %v2265_v11 = vsel %vm9747_vm2, %v9746_v50, 0.0  ;;  %v2234_v25 = vadd.f32 %v2233_v22, %v2232_v39  ;;  %v2242_v48 = vrot.slane %v2241_v38, 2  ;;  %v9760_v22 = vld [vmem:[#allocation67_spill] sm:$0xff] }
 0x29a   : > { %9744 = vst [vmem:[#allocation28_spill] sm:$0xff] %v7893_v13  ;;  %v2226_v46 = vrot.slane %v2225_v14, 1  ;;  %v2266_v55 = vadd.f32 %v2265_v11, %v2264_v29  ;;  %v2250_v47 = vadd.f32 %v2249_v23, %v2248_v53  ;;  %v2259_v37 = vadd.f32 %v2258_v2, %v2257_v17  ;;  %v9759_v29 = vld [vmem:[#allocation72_spill] sm:$0xff]  ;;  %v9792_v13 = vld [vmem:[#allocation55_spill] sm:$0xff] }
 0x29b   : > { %9745 = vst [vmem:[#allocation47_spill] sm:$0xff] %v7895_v61  ;;  %v2273_v4 = vadd.f32 %v9749_v51, %v9748_v42  ;;  %v2274_v35 = vsel %vm9751_vm12, %v9750_v16, 0.0  ;;  %v2235_v19 = vrot.slane %v2234_v25, 1  ;;  %v2243_v36 = vadd.f32 %v2242_v48, %v2241_v38  ;;  %v9793_v61 = vld [vmem:[#allocation15_spill] sm:$0xff] }
 0x29c   : > { %v7903_v3 = vadd.f32 %v2226_v46, %v2225_v14  ;;  %v2267_v63 = vrot.slane %v2266_v55, 4  ;;  %v2251_v62 = vrot.slane %v2250_v47, 2  ;;  %v2260_v24 = vrot.slane %v2259_v37, 2 }
 0x29d   : > { %v2275_v45 = vadd.f32 %v2274_v35, %v2273_v4  ;;  %v2282_v26 = vadd.f32 %v9754_v56, %v9753_v44  ;;  %v7907_v9 = vadd.f32 %v2235_v19, %v2234_v25  ;;  %v2244_v59 = vrot.slane %v2243_v36, 1  ;;  %v9761_v25 = vld [vmem:[#allocation84_spill] sm:$0xff] }
 0x29e   : > { %9752 = vst [vmem:[#allocation29_spill] sm:$0xff] %v7903_v3  ;;  %v2268_v54 = vadd.f32 %v2267_v63, %v2266_v55  ;;  %v2283_v39 = vsel %vm9757_vm11, %v9756_v57, 0.0  ;;  %v2252_v43 = vadd.f32 %v2251_v62, %v2250_v47  ;;  %v2261_v34 = vadd.f32 %v2260_v24, %v2259_v37  ;;  %v9762_v55 = vld [vmem:[#allocation86_spill] sm:$0xff]  ;;  %v9763_v47 = vld [vmem:[#allocation89_spill] sm:$0xff]  ;;  %v9767_v62 = vld [vmem:[#allocation92_spill] sm:$0xff] }
 0x29f   : > { %9755 = vst [vmem:[#allocation48_spill] sm:$0xff] %v7907_v9  ;;  %v2276_v53 = vrot.slane %v2275_v45, 4  ;;  %v2284_v17 = vadd.f32 %v2283_v39, %v2282_v26  ;;  %v7911_v20 = vadd.f32 %v2244_v59, %v2243_v36  ;;  %v2387_v14 = vsub.f32 0.0, %v9759_v29  ;;  %v9766_v36 = vld [vmem:[#allocation90_spill] sm:$0xff]  ;;  %v9769_v59 = vld [vmem:[#allocation95_spill] sm:$0xff]  ;;  %v9770_v57 = vld [vmem:[#allocation97_spill] sm:$0xff] }
 0x2a0   : > { %v2269_v30 = vrot.slane %v2268_v54, 2  ;;  %v2388_v38 = vsub.f32 0.0, %v9760_v22  ;;  %v2253_v23 = vrot.slane %v2252_v43, 1  ;;  %v2262_v2 = vrot.slane %v2261_v34, 1 }
 0x2a1   : > { %9758 = vst [vmem:[#allocation30_spill] sm:$0xff] %v7911_v20  ;;  %v2277_v50 = vadd.f32 %v2276_v53, %v2275_v45  ;;  %v2285_v11 = vrot.slane %v2284_v17, 4  ;;  %v2389_v48 = vsub.f32 0.0, %v9761_v25  ;;  %v2390_v42 = vsub.f32 0.0, %v9762_v55  ;;  %v9768_v45 = vld [vmem:[#allocation94_spill] sm:$0xff]  ;;  %v9776_v55 = vld [vmem:[#allocation105_spill] sm:$0xff] }
 0x2a2   : > { %v2270_v46 = vadd.f32 %v2269_v30, %v2268_v54  ;;  %v2391_v37 = vsub.f32 0.0, %v9763_v47  ;;  %v7918_v51 = vadd.f32 %v2253_v23, %v2252_v43  ;;  %v7920_v4 = vadd.f32 %v2262_v2, %v2261_v34  ;;  %v9772_v43 = vld [vmem:[#allocation101_spill] sm:$0xff]  ;;  %v9773_v30 = vld [vmem:[#allocation102_spill] sm:$0xff] }
 0x2a3   : > { %v2278_v16 = vrot.slane %v2277_v50, 2  ;;  %v2286_v35 = vadd.f32 %v2285_v11, %v2284_v17  ;;  %v2392_v63 = vsub.f32 0.0, %v9766_v36  ;;  %v2393_v24 = vsub.f32 0.0, %v9767_v62  ;;  %v9774_v17 = vld [vmem:[#allocation103_spill] sm:$0xff]  ;;  %v9775_v11 = vld [vmem:[#allocation104_spill] sm:$0xff] }
 0x2a4   : > { %9764 = vst [vmem:[#allocation49_spill] sm:$0xff] %v7918_v51  ;;  %9765 = vst [vmem:[#allocation35_spill] sm:$0xff] %v7920_v4  ;;  %v2271_v19 = vrot.slane %v2270_v46, 1  ;;  %v2394_v44 = vsub.f32 0.0, %v9768_v45  ;;  %v2395_v54 = vsub.f32 0.0, %v9769_v59  ;;  %v2396_v39 = vsub.f32 0.0, %v9770_v57 }
 0x2a5   : > { %v2279_v56 = vadd.f32 %v2278_v16, %v2277_v50  ;;  %v2287_v26 = vrot.slane %v2286_v35, 2  ;;  %v2397_v34 = vsub.f32 0.0, %v9772_v43  ;;  %v2398_v29 = vsub.f32 0.0, %v9773_v30  ;;  %v9777_v50 = vld [vmem:[#allocation106_spill] sm:$0xff]  ;;  %v9778_v36 = vld [vmem:[#allocation107_spill] sm:$0xff]  ;;  %v9779_v45 = vld [vmem:[#allocation108_spill] sm:$0xff] }
 0x2a6   : > { %v7927_v53 = vadd.f32 %v2271_v19, %v2270_v46  ;;  %v2399_v22 = vsub.f32 0.0, %v9774_v17  ;;  %v2400_v25 = vsub.f32 0.0, %v9775_v11  ;;  %v2401_v47 = vsub.f32 0.0, %v9776_v55  ;;  %v9780_v46 = vld [vmem:[#allocation109_spill] sm:$0xff]  ;;  %v9782_v30 = vld [vmem:[#allocation110_spill] sm:$0xff]  ;;  %v9783_v17 = vld [vmem:[#allocation111_spill] sm:$0xff] }
 0x2a7   : > { %v2280_v23 = vrot.slane %v2279_v56, 1  ;;  %v2288_v2 = vadd.f32 %v2287_v26, %v2286_v35  ;;  %v2402_v16 = vsub.f32 0.0, %v9777_v50  ;;  %v2403_v62 = vsub.f32 0.0, %v9778_v36  ;;  %v9784_v35 = vld [vmem:[#allocation112_spill] sm:$0xff]  ;;  %v9785_v11 = vld [vmem:[#allocation113_spill] sm:$0xff]  ;;  %v9786_v55 = vld [vmem:[#allocation114_spill] sm:$0xff] }
 0x2a8   : > { %9771 = vst [vmem:[#allocation53_spill] sm:$0xff] %v7927_v53  ;;  %v2404_v59 = vsub.f32 0.0, %v9779_v45  ;;  %v2405_v19 = vsub.f32 0.0, %v9780_v46  ;;  %v2406_v4 = vsub.f32 0.0, %v9782_v30  ;;  %v2407_v53 = vsub.f32 0.0, %v9783_v17  ;;  %v9787_v50 = vld [vmem:[#allocation115_spill] sm:$0xff] }
 0x2a9   : > { %v7938_v57 = vadd.f32 %v2280_v23, %v2279_v56  ;;  %v2289_v43 = vrot.slane %v2288_v2, 1  ;;  %v2408_v26 = vsub.f32 0.0, %v9784_v35  ;;  %v2409_v20 = vsub.f32 0.0, %v9785_v11  ;;  %v9789_v45 = vld [vmem:[#allocation116_spill] sm:$0xff]  ;;  %v9790_v46 = vld [vmem:[#allocation117_spill] sm:$0xff]  ;;  %v9791_v23 = vld [vmem:[#allocation118_spill] sm:$0xff] }
 0x2aa   : > { %v2410_v51 = vsub.f32 0.0, %v9786_v55  ;;  %v2411_v3 = vsub.f32 0.0, %v9787_v50  ;;  %v2412_v9 = vsub.f32 0.0, %v9789_v45  ;;  %v2413_v56 = vsub.f32 0.0, %v9790_v46 }
 0x2ab   : > { %9781 = vst [vmem:[#allocation36_spill] sm:$0xff] %v7938_v57  ;;  %v7946_v36 = vadd.f32 %v2289_v43, %v2288_v2  ;;  %v2414_v57 = vsub.f32 0.0, %v9791_v23  ;;  %v2415_v30 = vsub.f32 0.0, %v9792_v13  ;;  %v2416_v17 = vsub.f32 0.0, %v9793_v61 }
 0x2ac   : > { %v2417_v35 = vsub.f32 0.0, %v9794_v58  ;;  %v2418_v11 = vsub.f32 0.0, %v9795_v28  ;;  %v2419_v32 = vmul.f32 1.442695, %v2387_v14  ;;  %v2421_v55 = vmul.f32 1.442695, %v2388_v38 }
 0x2ad   : > { %9788 = vst [vmem:[#allocation54_spill] sm:$0xff] %v7946_v36  ;;  %v2423_v40 = vmul.f32 1.442695, %v2389_v48  ;;  %v2991_v2 = vcombine.low %v7763_v33, %v7765_v5  ;;  %v2425_v43 = vmul.f32 1.442695, %v2390_v42  ;;  %v2992_v46 = vcombine.low %v7767_v0, %v7769_v1 }
 0x2ae   : > { %v2427_v50 = vmul.f32 1.442695, %v2391_v37  ;;  %v2429_v45 = vmul.f32 1.442695, %v2392_v63  ;;  %3761 = vpow2.f32 %v2419_v32  ;;  %v2431_v13 = vmul.f32 1.442695, %v2393_v24 }
 0x2af   : > { %v2433_v23 = vmul.f32 1.442695, %v2394_v44  ;;  %v2435_v61 = vmul.f32 1.442695, %v2395_v54  ;;  %3763 = vpow2.f32 %v2421_v55  ;;  %v2437_v58 = vmul.f32 1.442695, %v2396_v39 }
 0x2b0   : > { %v2439_v36 = vmul.f32 1.442695, %v2397_v34  ;;  %v2441_v28 = vmul.f32 1.442695, %v2398_v29  ;;  %3765 = vpow2.f32 %v2423_v40  ;;  %v2443_v14 = vmul.f32 1.442695, %v2399_v22 }
 0x2b1   : > { %v2445_v38 = vmul.f32 1.442695, %v2400_v25  ;;  %v2447_v48 = vmul.f32 1.442695, %v2401_v47  ;;  %3767 = vpow2.f32 %v2425_v43  ;;  %v2449_v33 = vmul.f32 1.442695, %v2402_v16 }
 0x2b2   : > { %v2451_v5 = vmul.f32 1.442695, %v2403_v62  ;;  %v2453_v42 = vmul.f32 1.442695, %v2404_v59  ;;  %3769 = vpow2.f32 %v2427_v50  ;;  %v7959_v37 = vmul.f32 1.442695, %v2405_v19 }
 0x2b3   : > { %v7961_v0 = vmul.f32 1.442695, %v2406_v4  ;;  %v7963_v1 = vmul.f32 1.442695, %v2407_v53  ;;  %3771 = vpow2.f32 %v2429_v45  ;;  %v7965_v32 = vmul.f32 1.442695, %v2408_v26 }
 0x2b4   : > { %v7967_v63 = vmul.f32 1.442695, %v2409_v20  ;;  %v7969_v40 = vmul.f32 1.442695, %v2410_v51  ;;  %3773 = vpow2.f32 %v2431_v13  ;;  %v7971_v24 = vmul.f32 1.442695, %v2411_v3 }
 0x2b5   : > { %v7973_v44 = vmul.f32 1.442695, %v2412_v9  ;;  %v7975_v54 = vmul.f32 1.442695, %v2413_v56  ;;  %3775 = vpow2.f32 %v2433_v23  ;;  %v7977_v39 = vmul.f32 1.442695, %v2414_v57 }
 0x2b6   : > { %v7979_v4 = vmul.f32 1.442695, %v2415_v30  ;;  %v7981_v53 = vmul.f32 1.442695, %v2416_v17  ;;  %3777 = vpow2.f32 %v2435_v61  ;;  %v7983_v34 = vmul.f32 1.442695, %v2417_v35 }
 0x2b7   : > { %v7985_v20 = vmul.f32 1.442695, %v2418_v11  ;;  %v2993_v3 = vcombine.low %v7771_v52, %v7777_v60  ;;  %3779 = vpow2.f32 %v2437_v58  ;;  %v2994_v9 = vcombine.low %v7783_v21, %v7801_v12  ;;  %v9796_v51 = vld [vmem:[#allocation44_spill] sm:$0xff] }
 0x2b8   : > { %v3001_v29 = vrot.slane %v2991_v2, %v9796_v51  ;;  %v3008_v22 = vrot.slane %v2992_v46, %v9796_v51  ;;  %v3762_v25 = vpop.eup %3761  ;;  %3781 = vpow2.f32 %v2439_v36  ;;  %v3040_v16 = vcombine.low %v7811_v49, %v7813_v31 }
 0x2b9   : > { %v3015_v47 = vrot.slane %v2993_v3, %v9796_v51  ;;  %v3041_v62 = vcombine.low %v7815_v15, %v7819_v27  ;;  %v3764_v59 = vpop.eup %3763  ;;  %3783 = vpow2.f32 %v2441_v28  ;;  %v3022_v52 = vrot.slane %v2994_v9, %v9796_v51 }
 0x2ba   : > { %v3023_v60 = vcombine.low %v3001_v29, %v3008_v22  ;;  %v3042_v21 = vcombine.low %v7823_v41, %v7827_v8  ;;  %v3766_v12 = vpop.eup %3765  ;;  %3785 = vpow2.f32 %v2443_v14  ;;  %v2515_v19 = vcombine.low %v3762_v25, %v3764_v59  ;;  %v9798_v14 = vld [vmem:[#allocation22_spill] sm:$0xff]  ;;  %v9801_v22 = vld [vmem:[#allocation47_spill] sm:$0xff]  ;;  %v9802_v25 = vld [vmem:[#allocation28_spill] sm:$0xff] }
 0x2bb   : > { %v3043_v57 = vcombine.low %v7839_v18, %v7849_v7  ;;  %v3050_v26 = vrot.slane %v3040_v16, %v9796_v51  ;;  %v3768_v49 = vpop.eup %3767  ;;  %3787 = vpow2.f32 %v2445_v38  ;;  %v3024_v31 = vcombine.low %v3015_v47, %v3022_v52 }
 0x2bc   : > { %v8005_v15 = vrot.slane %v3023_v60, %v9796_v51  ;;  %v3057_v27 = vrot.slane %v3041_v62, %v9796_v51  ;;  %v3770_v36 = vpop.eup %3769  ;;  %3789 = vpow2.f32 %v2447_v48  ;;  %v2516_v56 = vcombine.low %v3766_v12, %v3768_v49  ;;  %v9799_v48 = vld [vmem:[#allocation42_spill] sm:$0xff] }
 0x2bd   : > { %v2525_v41 = vrot.slane %v2515_v19, %v9796_v51  ;;  %v3064_v8 = vrot.slane %v3042_v21, %v9796_v51  ;;  %v3772_v30 = vpop.eup %3771  ;;  %3791 = vpow2.f32 %v2449_v33  ;;  %v8011_v18 = vrot.slane %v3024_v31, %v9796_v51  ;;  %v9800_v33 = vld [vmem:[#allocation27_spill] sm:$0xff] }
 0x2be   : > { %v3071_v7 = vrot.slane %v3043_v57, %v9796_v51  ;;  %v3072_v17 = vcombine.low %v3050_v26, %v3057_v27  ;;  %v3774_v35 = vpop.eup %3773  ;;  %3793 = vpow2.f32 %v2451_v5  ;;  %v2517_v11 = vcombine.low %v3770_v36, %v3772_v30  ;;  %v9804_v36 = vld [vmem:[#allocation29_spill] sm:$0xff] }
 0x2bf   : > { %v2532_v55 = vrot.slane %v2516_v56, %v9796_v51  ;;  %v3089_v2 = vcombine.low %v7857_v10, %v7861_v6  ;;  %v3776_v43 = vpop.eup %3775  ;;  %3795 = vpow2.f32 %v2453_v42  ;;  %v3039_v50 = vcombine.low %v8005_v15, %v8011_v18  ;;  %v9797_v6 = vld [vmem:[#allocation41_spill] sm:$0xff] }
 0x2c0   : > { %v3073_v45 = vcombine.low %v3064_v8, %v3071_v7  ;;  %v8020_v46 = vrot.slane %v3072_v17, %v9796_v51  ;;  %v3778_v13 = vpop.eup %3777  ;;  %3797 = vpow2.f32 %v7959_v37  ;;  %v2518_v23 = vcombine.low %v3774_v35, %v3776_v43 }
 0x2c1   : > { %v2539_v61 = vrot.slane %v2517_v11, %v9796_v51  ;;  %v2547_v58 = vcombine.low %v2525_v41, %v2532_v55  ;;  %v3780_v28 = vpop.eup %3779  ;;  %3799 = vpow2.f32 %v7961_v0  ;;  %v3090_v38 = vcombine.low %v9798_v14, %v9797_v6 }
 0x2c2   : > { %v8026_v10 = vrot.slane %v3073_v45, %v9796_v51  ;;  %v3091_v5 = vcombine.low %v9800_v33, %v9799_v48  ;;  %v3782_v42 = vpop.eup %3781  ;;  %3801 = vpow2.f32 %v7963_v1  ;;  %v2546_v37 = vrot.slane %v2518_v23, %v9796_v51  ;;  %v9807_v23 = vld [vmem:[#allocation49_spill] sm:$0xff]  ;;  %v9810_v48 = vld [vmem:[#allocation35_spill] sm:$0xff] }
 0x2c3   : > { %v2555_v3 = vrot.slane %v2547_v58, %v9796_v51  ;;  %v2564_v9 = vcombine.low %v3778_v13, %v3780_v28  ;;  %v3784_v29 = vpop.eup %3783  ;;  %3803 = vpow2.f32 %v7965_v32  ;;  %v3092_v47 = vcombine.low %v9802_v25, %v9801_v22 }
 0x2c4   : > { %v3088_v0 = vcombine.low %v8020_v46, %v8026_v10  ;;  %v3099_v16 = vrot.slane %v3089_v2, %v9796_v51  ;;  %v3786_v62 = vpop.eup %3785  ;;  %3805 = vpow2.f32 %v7967_v63  ;;  %v2548_v1 = vcombine.low %v2539_v61, %v2546_v37  ;;  %v9808_v61 = vld [vmem:[#allocation30_spill] sm:$0xff]  ;;  %v9816_v46 = vld [vmem:[#allocation88_spill] sm:$0xff] }
 0x2c5   : > { %v2565_v59 = vcombine.low %v3782_v42, %v3784_v29  ;;  %v2574_v52 = vrot.slane %v2564_v9, %v9796_v51  ;;  %v3788_v60 = vpop.eup %3787  ;;  %3807 = vpow2.f32 %v7969_v40  ;;  %v3106_v32 = vrot.slane %v3090_v38, %v9796_v51  ;;  %v9803_v40 = vld [vmem:[#allocation48_spill] sm:$0xff] }
 0x2c6   : > { %v3113_v21 = vrot.slane %v3091_v5, %v9796_v51  ;;  %v3120_v12 = vrot.slane %v3092_v47, %v9796_v51  ;;  %v3790_v19 = vpop.eup %3789  ;;  %3809 = vpow2.f32 %v7971_v24  ;;  %v2562_v57 = vrot.slane %v2548_v1, %v9796_v51  ;;  %v9811_v5 = vld [vmem:[#allocation54_spill] sm:$0xff]  ;;  %v9812_v42 = vld [vmem:[#allocation36_spill] sm:$0xff]  ;;  %v9814_v1 = vld [vmem:[#allocation85_spill] sm:$0xff] }
 0x2c7   : > { %v2566_v26 = vcombine.low %v3786_v62, %v3788_v60  ;;  %v2581_v63 = vrot.slane %v2565_v59, %v9796_v51  ;;  %v3792_v49 = vpop.eup %3791  ;;  %3811 = vpow2.f32 %v7973_v44  ;;  %v3121_v31 = vcombine.low %v3099_v16, %v3106_v32 }
 0x2c8   : > { %v3122_v27 = vcombine.low %v3113_v21, %v3120_v12  ;;  %v3138_v56 = vcombine.low %v9804_v36, %v9803_v40  ;;  %v3794_v41 = vpop.eup %3793  ;;  %3813 = vpow2.f32 %v7975_v54  ;;  %v2563_v8 = vcombine.low %v2555_v3, %v2562_v57  ;;  %v9805_v54 = vld [vmem:[#allocation82_spill] sm:$0xff] }
 0x2c9   : > { %v2567_v30 = vcombine.low %v3790_v19, %v3792_v49  ;;  %v2588_v24 = vrot.slane %v2566_v26, %v9796_v51  ;;  %v3796_v7 = vpop.eup %3795  ;;  %3815 = vpow2.f32 %v7977_v39  ;;  %v2596_v17 = vcombine.low %v2574_v52, %v2581_v63 }
 0x2ca   : > { %v3129_v35 = vrot.slane %v3121_v31, %v9796_v51  ;;  %v3136_v44 = vrot.slane %v3122_v27, %v9796_v51  ;;  %v3798_v11 = vpop.eup %3797  ;;  %3817 = vpow2.f32 %v7979_v4  ;;  %v2613_v2 = vcombine.low %v3794_v41, %v3796_v7 }
 0x2cb   : > { %v2595_v55 = vrot.slane %v2567_v30, %v9796_v51  ;;  %vm9806_vm0 = vcmp.ne.s32.totalorder %v9805_v54, 255  ;;  %v3800_v45 = vpop.eup %3799  ;;  %3819 = vpow2.f32 %v7981_v53  ;;  %v2604_v13 = vrot.slane %v2596_v17, %v9796_v51  ;;  %v9809_v53 = vld [vmem:[#allocation53_spill] sm:$0xff] }
 0x2cc   : > { %v2715_v43 = vsel %vm9806_vm0, %v2563_v8, 1.0  ;;  %v3137_v39 = vcombine.low %v3129_v35, %v3136_v44  ;;  %v3139_v58 = vcombine.low %v9808_v61, %v9807_v23  ;;  %v3802_v4 = vpop.eup %3801  ;;  %3821 = vpow2.f32 %v7983_v34  ;;  %vm9813_vm13 = vmmov %vm9806_vm0 }
 0x2cd   : > { %2719 = vst [vmem:[%s8065_s10] sm:$0xff] %v2715_v43  ;;  %v2597_v28 = vcombine.low %v2588_v24, %v2595_v55  ;;  %v2614_v6 = vcombine.low %v3798_v11, %v3800_v45  ;;  %v2623_v14 = vrot.slane %v2613_v2, %v9796_v51  ;;  %v3804_v38 = vpop.eup %3803  ;;  %3823 = vpow2.f32 %v7985_v20  ;;  %v9819_v11 = vld [vmem:[#allocation91_spill] sm:$0xff] }
 0x2ce   : > { %v3140_v33 = vcombine.low %v9810_v48, %v9809_v53  ;;  %v3141_v37 = vcombine.low %v9812_v42, %v9811_v5  ;;  %v3148_v3 = vrot.slane %v3138_v56, %v9796_v51  ;;  %v3806_v9 = vpop.eup %3805  ;;  %v2615_v34 = vcombine.low %v3802_v4, %v3804_v38 }
 0x2cf   : > { %v2611_v29 = vrot.slane %v2597_v28, %v9796_v51  ;;  %v2630_v22 = vrot.slane %v2614_v6, %v9796_v51  ;;  %v3155_v25 = vrot.slane %v3139_v58, %v9796_v51  ;;  %v3808_v47 = vpop.eup %3807  ;;  %v3191_v62 = vsel %vm9813_vm13, %v3039_v50, 0.0 }
 0x2d0   : > { %v3162_v20 = vrot.slane %v3140_v33, %v9796_v51  ;;  %v3169_v16 = vrot.slane %v3141_v37, %v9796_v51  ;;  %vm9815_vm15 = vcmp.ne.s32.totalorder %v9814_v1, 255  ;;  %v3810_v52 = vpop.eup %3809  ;;  %v2616_v32 = vcombine.low %v3806_v9, %v3808_v47  ;;  %3195 = vst [vmem:[%s8095_s14] sm:$0xff] %v3191_v62 }
 0x2d1   : > { %v3192_v59 = vsel %vm9815_vm15, %v3088_v0, 0.0  ;;  %v2612_v60 = vcombine.low %v2604_v13, %v2611_v29  ;;  %v2637_v21 = vrot.slane %v2615_v34, %v9796_v51  ;;  %v2645_v12 = vcombine.low %v2623_v14, %v2630_v22  ;;  %v3812_v15 = vpop.eup %3811  ;;  %vm9818_vm7 = vmmov %vm9815_vm15 }
 0x2d2   : > { %3196 = vst [vmem:[%s8095_s14 + $0x8] sm:$0xff] %v3192_v59  ;;  %v3170_v18 = vcombine.low %v3148_v3, %v3155_v25  ;;  %v3171_v50 = vcombine.low %v3162_v20, %v3169_v16  ;;  %vm9817_vm3 = vcmp.ne.s32.totalorder %v9816_v46, 255  ;;  %v3814_v0 = vpop.eup %3813  ;;  %v2644_v19 = vrot.slane %v2616_v32, %v9796_v51 }
 0x2d3   : > { %v3193_v10 = vsel %vm9817_vm3, %v3137_v39, 0.0  ;;  %v2662_v57 = vcombine.low %v3810_v52, %v3812_v15  ;;  %v2716_v26 = vsel %vm9818_vm7, %v2612_v60, 1.0  ;;  %v3816_v63 = vpop.eup %3815  ;;  %v2653_v36 = vrot.slane %v2645_v12, %v9796_v51 }
 0x2d4   : > { %3197 = vst [vmem:[%s8095_s14 + $0x10] sm:$0xff] %v3193_v10  ;;  %2720 = vst [vmem:[%s8065_s10 + $0x8] sm:$0xff] %v2716_v26  ;;  %v3178_v49 = vrot.slane %v3170_v18, %v9796_v51  ;;  %v3185_v31 = vrot.slane %v3171_v50, %v9796_v51  ;;  %v3818_v27 = vpop.eup %3817  ;;  %v2646_v40 = vcombine.low %v2637_v21, %v2644_v19  ;;  %vm9820_vm8 = vcmp.ne.s32.totalorder %v9819_v11, 255 }
 0x2d5   : > { %v2663_v56 = vcombine.low %v3814_v0, %v3816_v63  ;;  %v2672_v41 = vrot.slane %v2662_v57, %v9796_v51  ;;  %v3820_v8 = vpop.eup %3819 }
 0x2d6   : > { %v3186_v30 = vcombine.low %v3178_v49, %v3185_v31  ;;  %v3822_v24 = vpop.eup %3821  ;;  %v2660_v7 = vrot.slane %v2646_v40, %v9796_v51  ;;  %v2664_v17 = vcombine.low %v3818_v27, %v3820_v8 }
 0x2d7   : > { %v2679_v35 = vrot.slane %v2663_v56, %v9796_v51  ;;  %v3824_v44 = vpop.eup %3823 }
 0x2d8   : > { %v3194_v55 = vsel %vm9820_vm8, %v3186_v30, 0.0  ;;  %v2661_v2 = vcombine.low %v2653_v36, %v2660_v7  ;;  %v2665_v54 = vcombine.low %v3822_v24, %v3824_v44  ;;  %v2686_v43 = vrot.slane %v2664_v17, %v9796_v51 }
 0x2d9   : > { %v2694_v45 = vcombine.low %v2672_v41, %v2679_v35  ;;  %3198 = vst [vmem:[%s8095_s14 + $0x18] sm:$0xff] %v3194_v55 }
 0x2da   : > { %3926 = shalt.err (!%p3923_p1)
}
 0x2db   : > { %s3927_s28 = scalar_lea.hbm %s8117_s8, 512  ;;  %s3931_s23 = scalar_lea.hbm %s8212_s5, 1024 }
 0x2dc   : > { %p3928_p3 = scmp.ne.s32.totalorder %s8117_s8, %s3927_s28  ;;  %p3932_p13 = scmp.lt.u32.totalorder %s8117_s8, %s8212_s5 }
 0x2dd   : > { %p3933_p12 = scmp.lt.u32.totalorder %s3931_s23, %s3927_s28  ;;  %p3935_p7 = scmp.lt.u32.totalorder %s3927_s28, %s8117_s8 }
 0x2de   : > { %p3929_p10 = pnand %p3928_p3, %p9636_p2 }
 0x2df   : > { %p3934_p5 = por %p3933_p12, %p3932_p13 }
 0x2e0   : > { %p3930_p6 = pneg %p3929_p10 }
 0x2e1   : > { %p3936_p8 = por %p3935_p7, %p3934_p5 }
 0x2e3   : > { %p3937_p9 = pnand %p3936_p8, %p3930_p6 }
 0x2e5   : > { %3940 = shalt.err (!%p3937_p9)
}
 0x2e6   : > { %3443 = dma.vmem_to_hbm [thread:$0]  (%p9636_p2), %s8119_s0, 512, %s8117_s8, %s7536_s12   ;;  %v2693_v13 = vrot.slane %v2665_v54, %v9796_v51  ;;  %vm9821_vm10 = vmmov %vm9817_vm3  ;;  %v2702_v61 = vrot.slane %v2694_v45, %v9796_v51 }
 0x2e7   : > { %v2717_v39 = vsel %vm9821_vm10, %v2661_v2, 1.0  ;;  %s3224_s15 = sshll.u32 %s8065_s10, 4  ;;  %s8158_s11 = scalar_lea.hbm %s8210_s3, %s7409_s7  ;;  %vm9822_vm6 = vmmov %vm9820_vm8  ;;  %s8160_s15 = int_to_ptr.vmem [resolvable:$true] %s3224_s15 }
 0x2e8   : > { %2721 = vst [vmem:[%s8065_s10 + $0x10] sm:$0xff] %v2717_v39  ;;  %v2695_v23 = vcombine.low %v2686_v43, %v2693_v13  ;;  %s3200_s12 = scalar_lea.sflag [#allocation4], %s4195_s13  ;;  %s3941_s0 = scalar_lea.vmem %s8160_s15, 512 }
 0x2e9   : > { %p3942_p11 = scmp.ne.s32.totalorder %s8160_s15, %s3941_s0  ;;  %s4026_s8 = smov [#allocation7]  }
 0x2ea   : > { %v2709_v58 = vrot.slane %v2695_v23, %v9796_v51  ;;  %s3945_s25 = sshll.u32 %s4026_s8, 4  ;;  %s3946_s25 = int_to_ptr.vmem [resolvable:$false] %s3945_s25 }
 0x2eb   : > { %p3943_p0 = pnand %p3942_p11, %p9636_p2  ;;  %s3947_s7 = scalar_lea.vmem %s3946_s25, 1024 }
 0x2ec   : > { %v2710_v4 = vcombine.low %v2702_v61, %v2709_v58  ;;  %p3948_p1 = scmp.lt.s32.totalorder %s8160_s15, %s3946_s25  ;;  %p3949_p3 = scmp.lt.s32.totalorder %s3947_s7, %s3941_s0 }
 0x2ed   : > { %p3944_p4 = pneg %p3943_p0 }
 0x2ee   : > { %v2718_v28 = vsel %vm9822_vm6, %v2710_v4, 1.0  ;;  %p3950_p10 = por %p3949_p3, %p3948_p1 }
 0x2ef   : > { %2722 = vst [vmem:[%s8065_s10 + $0x18] sm:$0xff] %v2718_v28 }
 0x2f0   : > { %p3951_p6 = pnand %p3950_p10, %p3944_p4 }
 0x2f2   : > { %3954 = shalt.err (!%p3951_p6)
}
 0x2f3   : > { %s3955_s13 = scalar_lea.hbm %s8158_s11, 512  ;;  %s3959_s28 = scalar_lea.hbm %s8210_s3, 1024 }
 0x2f4   : > { %p3956_p13 = scmp.ne.s32.totalorder %s8158_s11, %s3955_s13  ;;  %p3960_p7 = scmp.lt.u32.totalorder %s8158_s11, %s8210_s3 }
 0x2f5   : > { %p3961_p8 = scmp.lt.u32.totalorder %s3959_s28, %s3955_s13  ;;  %p3963_p11 = scmp.lt.u32.totalorder %s3955_s13, %s8158_s11 }
 0x2f6   : > { %p3957_p12 = pnand %p3956_p13, %p9636_p2 }
 0x2f7   : > { %p3962_p9 = por %p3961_p8, %p3960_p7 }
 0x2f8   : > { %p3958_p5 = pneg %p3957_p12 }
 0x2f9   : > { %p3964_p0 = por %p3963_p11, %p3962_p9 }
 0x2fb   : > { %p3965_p4 = pnand %p3964_p0, %p3958_p5 }
 0x2fd   : > { %3968 = shalt.err (!%p3965_p4)
}
 0x2fe   : > { %3441 = dma.vmem_to_hbm [thread:$0]  (%p9636_p2), %s8160_s15, 512, %s8158_s11, %s3200_s12  }
 0x2ff PF: > { %s3264_s23 = sand.u32 1, %s4003_s18   ;;  %p9823_p1 = scmp.ne.s32.totalorder %s8576_s30, 0 }
 0x300   : > { %p9824_p3 = scmp.ge.s32.totalorder %s4015_s21, 2  ;;  %s3265_s6 = scalar_lea.sflag [#allocation4], %s3264_s23 }
 0x302   : > { %p3455_p10 = pnand %p9824_p3, %p9823_p1 }
 0x304   : > { %3994 = dma.done.wait (!%p3455_p10), %s3265_s6, 512  }
 0x305   : > { %3996 = vsyncadd (!%p3455_p10), %s3265_s6, 4294966784  ;;  %s9825_s14 = sadd.s32 4294967294, %s4015_s21  }
 0x306   : > { %s3273_s16 = sand.u32 1, %s9825_s14  }
 0x307   : > { %s3274_s17 = scalar_lea.sflag [#allocation9], %s3273_s16 }
 0x308   : > { %3998 = dma.done.wait (!%p3455_p10), %s3274_s17, 1024  }
 0x309   : > { %4000 = vsyncadd (!%p3455_p10), %s3274_s17, 4294966272  ;;  %p25_p2 = scmp.ge.s32.totalorder %s4082_s24, 4   ;;  %s9826_s18 = smov %s4007_s19 }
 0x30a   : > { %s9827_s19 = smov %s4011_s20  ;;  %s9828_s20 = smov %s4094_s27 }
 0x30b   : > { %s9829_s21 = smov %s4082_s24  ;;  %27 = sbr.rel (!%p25_p2) target bundleno = 11 (0xb), region = 122 }
 0x312   :  { %3288 = vsyncpa [#allocation3], 1 }
 0x313   :  { %3290 = vsyncpa [#allocation3 + $0x1], 1 }
 0x314   :  { %3291 = vsyncpa [#allocation6], 1 }
 0x315   :  { %3293 = vsyncpa [#allocation6 + $0x1], 1 }
 0x316   :  { %3294 = vsyncpa [#allocation4], 1 }
 0x317   :  { %3296 = vsyncpa [#allocation4 + $0x1], 1 }
 0x318   :  { %3297 = vsyncpa [#allocation9], 1 }
 0x319   :  { %3299 = vsyncpa [#allocation9 + $0x1], 1 }

</bundles_post_ra>
